<compile_context>
chip_gen: v7x
topology: tpu7x:2x2x1
jax: 0.10.0
libtpu: 0.0.40
codegen_flags: <defaults>
</compile_context>

<pallas_src>
import math
import functools

import jax
import jax.numpy as jnp
from jax.experimental import pallas as pl
from jax.experimental.pallas import tpu as pltpu


def _encoder_layer_kernel(
    x_ref,                      # (TB*S, D)  float32 activations
    wqkv_ref, bqkv_ref,         # (D, 3D) bf16 , (1, 3D) f32
    wo_ref, bo_ref,             # (D, D)  bf16 , (1, D)  f32
    w1_ref, b1_ref,             # (D, F)  bf16 , (1, F)  f32
    w2_ref, b2_ref,             # (F, D)  bf16 , (1, D)  f32
    g1_ref, beta1_ref, g2_ref, beta2_ref,   # (1, D) f32 layernorm params
    out_ref,                    # (TB*S, D)  float32
    *, nhead: int, tb: int, seq: int, eps: float = 1e-5,
):
    f32 = jnp.float32
    bf16 = jnp.bfloat16

    x = x_ref[...].astype(f32)                    # (R, D), R = tb*seq
    R, D = x.shape
    d_qkv = D // nhead
    scale = 1.0 / math.sqrt(d_qkv)

    def matmul(a_f32, w_ref, b_ref):
        # bf16 operands on the MXU, f32 accumulation, f32 bias add.
        return (jnp.dot(a_f32.astype(bf16), w_ref[...],
                        preferred_element_type=f32) + b_ref[...])

    # ---- fused QKV projection: one (R,D) x (D,3D) MXU matmul ----
    qkv = matmul(x, wqkv_ref, bqkv_ref)           # (R, 3D) f32
    q = qkv[:, 0 * D:1 * D]
    k = qkv[:, 1 * D:2 * D]
    v = qkv[:, 2 * D:3 * D]

    # ---- batched self-attention (batch dim = tb [* nhead]) ----
    if nhead == 1:
        q3 = q.reshape(tb, seq, d_qkv)
        k3 = k.reshape(tb, seq, d_qkv)
        v3 = v.reshape(tb, seq, d_qkv)
    else:
        def to_heads(t):
            return (t.reshape(tb, seq, nhead, d_qkv)
                     .transpose(0, 2, 1, 3)
                     .reshape(tb * nhead, seq, d_qkv))
        q3, k3, v3 = to_heads(q), to_heads(k), to_heads(v)

    s = jnp.einsum("bqd,bkd->bqk", q3.astype(bf16), k3.astype(bf16),
                   preferred_element_type=f32) * scale          # (B', S, S) f32
    s = s - jnp.max(s, axis=-1, keepdims=True)
    e = jnp.exp(s)
    p = e * pl.reciprocal(jnp.sum(e, axis=-1, keepdims=True), approx=True)
    ctx = jnp.einsum("bqk,bkd->bqd", p.astype(bf16), v3.astype(bf16),
                     preferred_element_type=f32)                # (B', S, d_qkv)

    if nhead == 1:
        attn = ctx.reshape(R, D)
    else:
        attn = (ctx.reshape(tb, nhead, seq, d_qkv)
                   .transpose(0, 2, 1, 3)
                   .reshape(R, D))

    attn = matmul(attn, wo_ref, bo_ref)                          # (R, D)

    def layernorm(z, g_ref, b_ref):
        mu = jnp.mean(z, axis=-1, keepdims=True)
        var = jnp.mean((z - mu) ** 2, axis=-1, keepdims=True)
        return (z - mu) * jax.lax.rsqrt(var + eps) * g_ref[...] + b_ref[...]

    # residual + layernorm 1  (dropouts are identity in eval mode)
    y = layernorm(x + attn, g1_ref, beta1_ref)

    # ---- feed-forward ----
    ff = jnp.maximum(matmul(y, w1_ref, b1_ref), 0.0)
    ff = matmul(ff, w2_ref, b2_ref)

    # residual + layernorm 2
    out = layernorm(y + ff, g2_ref, beta2_ref)
    out_ref[...] = out.astype(out_ref.dtype)


def _pick_batch_tile(batch, seq, target_rows=128):
    """Largest tb dividing batch with tb*seq close to target_rows."""
    tb = max(1, min(batch, target_rows // max(1, seq)))
    while batch % tb:
        tb -= 1
    return tb


def cm_encoder_layer(a_src, params, *, nhead: int):
    """a_src: (S, B, d_model) float32 -> (S, B, d_model), PyTorch seq-first layout."""
    S, B, D = a_src.shape
    F = params["w1"].shape[1]
    assert D % nhead == 0

    tb = _pick_batch_tile(B, S)          # batch elements per grid step
    rows = tb * S                        # MXU LHS rows per step
    grid = (B // tb,)

    # Fuse Q/K/V weights into one (D, 3D) matrix; matmul weights in bf16
    # (MXU-native, halves weight VMEM — matters on v7x's 64 MiB), biases and
    # layernorm params stay f32.
    bf16 = jnp.bfloat16
    wqkv = jnp.concatenate(
        [params["wq"], params["wk"], params["wv"]], axis=1).astype(bf16)
    bqkv = jnp.concatenate([params["bq"], params["bk"], params["bv"]], axis=1)
    wo = params["wo"].astype(bf16)
    w1 = params["w1"].astype(bf16)
    w2 = params["w2"].astype(bf16)

    # (S, B, D) -> (B*S, D): a single fused XLA transpose+reshape so every grid
    # step reads tb*S contiguous rows (whole batch elements per block).
    x2d = jnp.transpose(a_src, (1, 0, 2)).reshape(B * S, D)

    full = lambda shape: pl.BlockSpec(shape, lambda i: (0, 0))
    in_specs = [
        pl.BlockSpec((rows, D), lambda i: (i, 0)),   # x
        full((D, 3 * D)), full((1, 3 * D)),          # wqkv, bqkv
        full((D, D)), full((1, D)),                  # wo, bo
        full((D, F)), full((1, F)),                  # w1, b1
        full((F, D)), full((1, D)),                  # w2, b2
        full((1, D)), full((1, D)),                  # ln1 gamma, beta
        full((1, D)), full((1, D)),                  # ln2 gamma, beta
    ]

    kernel = functools.partial(_encoder_layer_kernel, nhead=nhead, tb=tb, seq=S)

    out2d = pl.pallas_call(
        kernel,
        out_shape=jax.ShapeDtypeStruct((B * S, D), jnp.float32),
        grid_spec=pltpu.PrefetchScalarGridSpec(
            num_scalar_prefetch=0,
            grid=grid,
            in_specs=in_specs,
            out_specs=pl.BlockSpec((rows, D), lambda i: (i, 0)),
        ),
        compiler_params=pltpu.CompilerParams(dimension_semantics=("parallel",)),
    )(
        x2d,
        wqkv, bqkv, wo, params["bo"], w1, params["b1"], w2, params["b2"],
        params["g1"], params["beta1"], params["g2"], params["beta2"],
    )
    return jnp.transpose(out2d.reshape(B, S, D), (1, 0, 2))


def _reference(a_src, params, *, nhead: int):
    """Pure-JAX reference mirroring the PyTorch forward (eval mode), using the
    same bf16-operand / f32-accumulate matmul precision as the kernel."""
    S, B, D = a_src.shape
    d_qkv = D // nhead
    bf16 = jnp.bfloat16
    x = jnp.transpose(a_src, (1, 0, 2))  # (B, S, D)

    def lin(a, w, b):
        return jnp.dot(a.astype(bf16), w.astype(bf16),
                       preferred_element_type=jnp.float32) + b[0]

    q = lin(x, params["wq"], params["bq"]).reshape(B, S, nhead, d_qkv).transpose(0, 2, 1, 3)
    k = lin(x, params["wk"], params["bk"]).reshape(B, S, nhead, d_qkv).transpose(0, 2, 1, 3)
    v = lin(x, params["wv"], params["bv"]).reshape(B, S, nhead, d_qkv).transpose(0, 2, 1, 3)
    scores = jnp.einsum("bhst,bhut->bhsu", q.astype(bf16), k.astype(bf16),
                        preferred_element_type=jnp.float32) / math.sqrt(d_qkv)
    p = jax.nn.softmax(scores, axis=-1)
    a = jnp.einsum("bhsu,bhut->bhst", p.astype(bf16), v.astype(bf16),
                   preferred_element_type=jnp.float32)
    a = a.transpose(0, 2, 1, 3).reshape(B, S, D)
    a = lin(a, params["wo"], params["bo"])

    def ln(z, g, bta, eps=1e-5):
        mu = jnp.mean(z, axis=-1, keepdims=True)
        var = jnp.mean((z - mu) ** 2, axis=-1, keepdims=True)
        return (z - mu) / jnp.sqrt(var + eps) * g[0] + bta[0]

    x1 = ln(x + a, params["g1"], params["beta1"])
    ff = lin(jnp.maximum(lin(x1, params["w1"], params["b1"]), 0.0),
             params["w2"], params["b2"])
    x2 = ln(x1 + ff, params["g2"], params["beta2"])
    return jnp.transpose(x2, (1, 0, 2))


def _init_params(key, d_model, nhead, dim_feedforward):
    ks = jax.random.split(key, 12)
    D, F = d_model, dim_feedforward
    sd, sf, sb = 1.0 / math.sqrt(D), 1.0 / math.sqrt(F), 0.02
    return {
        "wq": sd * jax.random.normal(ks[0], (D, D), jnp.float32),
        "bq": sb * jax.random.normal(ks[1], (1, D), jnp.float32),
        "wk": sd * jax.random.normal(ks[2], (D, D), jnp.float32),
        "bk": sb * jax.random.normal(ks[3], (1, D), jnp.float32),
        "wv": sd * jax.random.normal(ks[4], (D, D), jnp.float32),
        "bv": sb * jax.random.normal(ks[5], (1, D), jnp.float32),
        "wo": sd * jax.random.normal(ks[6], (D, D), jnp.float32),
        "bo": sb * jax.random.normal(ks[7], (1, D), jnp.float32),
        "w1": sd * jax.random.normal(ks[8], (D, F), jnp.float32),
        "b1": sb * jax.random.normal(ks[9], (1, F), jnp.float32),
        "w2": sf * jax.random.normal(ks[10], (F, D), jnp.float32),
        "b2": sb * jax.random.normal(ks[11], (1, D), jnp.float32),
        "g1": jnp.ones((1, D), jnp.float32),
        "beta1": jnp.zeros((1, D), jnp.float32),
        "g2": jnp.ones((1, D), jnp.float32),
        "beta2": jnp.zeros((1, D), jnp.float32),
    }


if __name__ == "__main__":
    # dpaNet builds cmEncoderLayer(d_model=bottleneck B, nhead=1, dim_ff=H)
    # inside Dual_DPA_Block; d_model=128 keeps all blocks lane-dense.
    S, B, d_model, nhead, dim_feedforward = 8, 32, 128, 1, 256
    key = jax.random.PRNGKey(0)
    k_x, k_p = jax.random.split(key)
    a_src = jax.random.normal(k_x, (S, B, d_model), jnp.float32)
    params = _init_params(k_p, d_model, nhead, dim_feedforward)

    out = jax.block_until_ready(cm_encoder_layer(a_src, params, nhead=nhead))
    ref = _reference(a_src, params, nhead=nhead)

    assert out.shape == (S, B, d_model)
    assert jnp.allclose(out, ref, atol=2e-2, rtol=2e-2), (
        "mismatch vs reference: max abs diff = "
        f"{float(jnp.max(jnp.abs(out - ref)))}")
    print("KERNEL_OK")
</pallas_src>

<mosaic_0001>
module attributes {stable_mosaic.version = 11 : i64} {
  func.func @_encoder_layer_kernel(%arg0: i32, %arg1: memref<128x128xf32, #tpu.memory_space<vmem>>, %arg2: memref<128x384xbf16, #tpu.memory_space<vmem>>, %arg3: memref<1x384xf32, #tpu.memory_space<vmem>>, %arg4: memref<128x128xbf16, #tpu.memory_space<vmem>>, %arg5: memref<1x128xf32, #tpu.memory_space<vmem>>, %arg6: memref<128x256xbf16, #tpu.memory_space<vmem>>, %arg7: memref<1x256xf32, #tpu.memory_space<vmem>>, %arg8: memref<256x128xbf16, #tpu.memory_space<vmem>>, %arg9: memref<1x128xf32, #tpu.memory_space<vmem>>, %arg10: memref<1x128xf32, #tpu.memory_space<vmem>>, %arg11: memref<1x128xf32, #tpu.memory_space<vmem>>, %arg12: memref<1x128xf32, #tpu.memory_space<vmem>>, %arg13: memref<1x128xf32, #tpu.memory_space<vmem>>, %arg14: memref<128x128xf32, #tpu.memory_space<vmem>>) attributes {dimension_semantics = [#tpu.dimension_semantics<parallel>], iteration_bounds = array<i64: 2>, scalar_prefetch = 0 : i64, scratch_operands = 0 : i64, tpu.core_type = #tpu.core_type<tc>, window_params = [{transform_indices = @transform_0, window_bounds = array<i64: 128, 128>}, {pipeline_mode = #tpu.pipeline_mode<synchronous>, transform_indices = @transform_1, window_bounds = array<i64: 128, 384>}, {pipeline_mode = #tpu.pipeline_mode<synchronous>, transform_indices = @transform_2, window_bounds = array<i64: 1, 384>}, {pipeline_mode = #tpu.pipeline_mode<synchronous>, transform_indices = @transform_3, window_bounds = array<i64: 128, 128>}, {pipeline_mode = #tpu.pipeline_mode<synchronous>, transform_indices = @transform_4, window_bounds = array<i64: 1, 128>}, {pipeline_mode = #tpu.pipeline_mode<synchronous>, transform_indices = @transform_5, window_bounds = array<i64: 128, 256>}, {pipeline_mode = #tpu.pipeline_mode<synchronous>, transform_indices = @transform_6, window_bounds = array<i64: 1, 256>}, {pipeline_mode = #tpu.pipeline_mode<synchronous>, transform_indices = @transform_7, window_bounds = array<i64: 256, 128>}, {pipeline_mode = #tpu.pipeline_mode<synchronous>, transform_indices = @transform_8, window_bounds = array<i64: 1, 128>}, {pipeline_mode = #tpu.pipeline_mode<synchronous>, transform_indices = @transform_9, window_bounds = array<i64: 1, 128>}, {pipeline_mode = #tpu.pipeline_mode<synchronous>, transform_indices = @transform_10, window_bounds = array<i64: 1, 128>}, {pipeline_mode = #tpu.pipeline_mode<synchronous>, transform_indices = @transform_11, window_bounds = array<i64: 1, 128>}, {pipeline_mode = #tpu.pipeline_mode<synchronous>, transform_indices = @transform_12, window_bounds = array<i64: 1, 128>}, {transform_indices = @transform_13, window_bounds = array<i64: 128, 128>}]} {
    %c0 = arith.constant 0 : index
    %c0_0 = arith.constant 0 : index
    %0 = vector.load %arg1[%c0, %c0_0] : memref<128x128xf32, #tpu.memory_space<vmem>>, vector<128x128xf32>
    %1 = arith.truncf %0 : vector<128x128xf32> to vector<128x128xbf16>
    %c0_1 = arith.constant 0 : index
    %c0_2 = arith.constant 0 : index
    %2 = vector.load %arg2[%c0_1, %c0_2] : memref<128x384xbf16, #tpu.memory_space<vmem>>, vector<128x384xbf16>
    %cst = arith.constant dense<0.000000e+00> : vector<128x384xf32>
    %3 = tpu.matmul %1, %2, %cst {dimension_numbers = #tpu.dot_dimension_numbers<[1], [0], [0], [1], [0, 0, 1, 1], [], []>} : vector<128x128xbf16>, vector<128x384xbf16>, vector<128x384xf32> -> vector<128x384xf32>
    %c0_3 = arith.constant 0 : index
    %c0_4 = arith.constant 0 : index
    %4 = vector.load %arg3[%c0_3, %c0_4] : memref<1x384xf32, #tpu.memory_space<vmem>>, vector<1x384xf32>
    %5 = vector.broadcast %4 : vector<1x384xf32> to vector<128x384xf32>
    %6 = arith.addf %3, %5 : vector<128x384xf32>
    %7 = vector.extract_strided_slice %6 {offsets = [0, 0], sizes = [128, 128], strides = [1, 1]} : vector<128x384xf32> to vector<128x128xf32>
    %8 = vector.extract_strided_slice %6 {offsets = [0, 128], sizes = [128, 128], strides = [1, 1]} : vector<128x384xf32> to vector<128x128xf32>
    %9 = vector.extract_strided_slice %6 {offsets = [0, 256], sizes = [128, 128], strides = [1, 1]} : vector<128x384xf32> to vector<128x128xf32>
    %10 = vector.shape_cast %7 : vector<128x128xf32> to vector<16x8x128xf32>
    %11 = vector.shape_cast %8 : vector<128x128xf32> to vector<16x8x128xf32>
    %12 = vector.shape_cast %9 : vector<128x128xf32> to vector<16x8x128xf32>
    %13 = arith.truncf %10 : vector<16x8x128xf32> to vector<16x8x128xbf16>
    %14 = arith.truncf %11 : vector<16x8x128xf32> to vector<16x8x128xbf16>
    "tpu.trace_start"() <{level = 10 : i32, message = "bqd,bkd->bqk"}> : () -> ()
    %cst_5 = arith.constant dense<0.000000e+00> : vector<16x8x8xf32>
    %15 = tpu.matmul %13, %14, %cst_5 {dimension_numbers = #tpu.dot_dimension_numbers<[2], [2], [1], [1], [0, 0, 0, 1, 1, 1], [0], [0]>} : vector<16x8x128xbf16>, vector<16x8x128xbf16>, vector<16x8x8xf32> -> vector<16x8x8xf32>
    "tpu.trace_stop"() : () -> ()
    %cst_6 = arith.constant 0.0883883461 : f32
    %16 = vector.broadcast %cst_6 : f32 to vector<16x8x8xf32>
    %17 = arith.mulf %15, %16 : vector<16x8x8xf32>
    %cst_7 = arith.constant dense<0xFF800000> : vector<16x8xf32>
    %18 = vector.multi_reduction <maximumf>, %17, %cst_7 [2] : vector<16x8x8xf32> to vector<16x8xf32>
    %19 = vector.shape_cast %18 : vector<16x8xf32> to vector<16x8x1xf32>
    %20 = vector.broadcast %19 : vector<16x8x1xf32> to vector<16x8x8xf32>
    %21 = arith.subf %17, %20 : vector<16x8x8xf32>
    %22 = math.exp %21 : vector<16x8x8xf32>
    %cst_8 = arith.constant dense<0.000000e+00> : vector<16x8xf32>
    %23 = vector.multi_reduction <add>, %22, %cst_8 [2] : vector<16x8x8xf32> to vector<16x8xf32>
    %24 = vector.shape_cast %23 : vector<16x8xf32> to vector<16x8x1xf32>
    %25 = tpu.reciprocal %24 {approx = true} : vector<16x8x1xf32> -> vector<16x8x1xf32>
    %26 = vector.broadcast %25 : vector<16x8x1xf32> to vector<16x8x8xf32>
    %27 = arith.mulf %22, %26 : vector<16x8x8xf32>
    %28 = arith.truncf %27 : vector<16x8x8xf32> to vector<16x8x8xbf16>
    %29 = arith.truncf %12 : vector<16x8x128xf32> to vector<16x8x128xbf16>
    "tpu.trace_start"() <{level = 10 : i32, message = "bqk,bkd->bqd"}> : () -> ()
    %cst_9 = arith.constant dense<0.000000e+00> : vector<16x8x128xf32>
    %30 = tpu.matmul %28, %29, %cst_9 {dimension_numbers = #tpu.dot_dimension_numbers<[2], [1], [1], [2], [0, 0, 0, 1, 1, 2], [0], [0]>} : vector<16x8x8xbf16>, vector<16x8x128xbf16>, vector<16x8x128xf32> -> vector<16x8x128xf32>
    "tpu.trace_stop"() : () -> ()
    %31 = vector.shape_cast %30 : vector<16x8x128xf32> to vector<128x128xf32>
    %32 = arith.truncf %31 : vector<128x128xf32> to vector<128x128xbf16>
    %c0_10 = arith.constant 0 : index
    %c0_11 = arith.constant 0 : index
    %33 = vector.load %arg4[%c0_10, %c0_11] : memref<128x128xbf16, #tpu.memory_space<vmem>>, vector<128x128xbf16>
    %cst_12 = arith.constant dense<0.000000e+00> : vector<128x128xf32>
    %34 = tpu.matmul %32, %33, %cst_12 {dimension_numbers = #tpu.dot_dimension_numbers<[1], [0], [0], [1], [0, 0, 1, 1], [], []>} : vector<128x128xbf16>, vector<128x128xbf16>, vector<128x128xf32> -> vector<128x128xf32>
    %c0_13 = arith.constant 0 : index
    %c0_14 = arith.constant 0 : index
    %35 = vector.load %arg5[%c0_13, %c0_14] : memref<1x128xf32, #tpu.memory_space<vmem>>, vector<1x128xf32>
    %36 = vector.broadcast %35 : vector<1x128xf32> to vector<128x128xf32>
    %37 = arith.addf %34, %36 : vector<128x128xf32>
    %38 = arith.addf %0, %37 : vector<128x128xf32>
    %cst_15 = arith.constant dense<0.000000e+00> : vector<128xf32>
    %39 = vector.multi_reduction <add>, %38, %cst_15 [1] : vector<128x128xf32> to vector<128xf32>
    %40 = vector.shape_cast %39 : vector<128xf32> to vector<128x1xf32>
    %cst_16 = arith.constant 1.280000e+02 : f32
    %41 = vector.broadcast %cst_16 : f32 to vector<128x1xf32>
    %42 = arith.divf %40, %41 : vector<128x1xf32>
    %43 = vector.broadcast %42 : vector<128x1xf32> to vector<128x128xf32>
    %44 = arith.subf %38, %43 : vector<128x128xf32>
    %45 = arith.mulf %44, %44 : vector<128x128xf32>
    %cst_17 = arith.constant dense<0.000000e+00> : vector<128xf32>
    %46 = vector.multi_reduction <add>, %45, %cst_17 [1] : vector<128x128xf32> to vector<128xf32>
    %47 = vector.shape_cast %46 : vector<128xf32> to vector<128x1xf32>
    %cst_18 = arith.constant 1.280000e+02 : f32
    %48 = vector.broadcast %cst_18 : f32 to vector<128x1xf32>
    %49 = arith.divf %47, %48 : vector<128x1xf32>
    %50 = vector.broadcast %42 : vector<128x1xf32> to vector<128x128xf32>
    %51 = arith.subf %38, %50 : vector<128x128xf32>
    %cst_19 = arith.constant 9.99999974E-6 : f32
    %52 = vector.broadcast %cst_19 : f32 to vector<128x1xf32>
    %53 = arith.addf %49, %52 : vector<128x1xf32>
    %54 = math.rsqrt %53 : vector<128x1xf32>
    %55 = vector.broadcast %54 : vector<128x1xf32> to vector<128x128xf32>
    %56 = arith.mulf %51, %55 : vector<128x128xf32>
    %c0_20 = arith.constant 0 : index
    %c0_21 = arith.constant 0 : index
    %57 = vector.load %arg10[%c0_20, %c0_21] : memref<1x128xf32, #tpu.memory_space<vmem>>, vector<1x128xf32>
    %58 = vector.broadcast %57 : vector<1x128xf32> to vector<128x128xf32>
    %59 = arith.mulf %56, %58 : vector<128x128xf32>
    %c0_22 = arith.constant 0 : index
    %c0_23 = arith.constant 0 : index
    %60 = vector.load %arg11[%c0_22, %c0_23] : memref<1x128xf32, #tpu.memory_space<vmem>>, vector<1x128xf32>
    %61 = vector.broadcast %60 : vector<1x128xf32> to vector<128x128xf32>
    %62 = arith.addf %59, %61 : vector<128x128xf32>
    %63 = arith.truncf %62 : vector<128x128xf32> to vector<128x128xbf16>
    %c0_24 = arith.constant 0 : index
    %c0_25 = arith.constant 0 : index
    %64 = vector.load %arg6[%c0_24, %c0_25] : memref<128x256xbf16, #tpu.memory_space<vmem>>, vector<128x256xbf16>
    %cst_26 = arith.constant dense<0.000000e+00> : vector<128x256xf32>
    %65 = tpu.matmul %63, %64, %cst_26 {dimension_numbers = #tpu.dot_dimension_numbers<[1], [0], [0], [1], [0, 0, 1, 1], [], []>} : vector<128x128xbf16>, vector<128x256xbf16>, vector<128x256xf32> -> vector<128x256xf32>
    %c0_27 = arith.constant 0 : index
    %c0_28 = arith.constant 0 : index
    %66 = vector.load %arg7[%c0_27, %c0_28] : memref<1x256xf32, #tpu.memory_space<vmem>>, vector<1x256xf32>
    %67 = vector.broadcast %66 : vector<1x256xf32> to vector<128x256xf32>
    %68 = arith.addf %65, %67 : vector<128x256xf32>
    %cst_29 = arith.constant 0.000000e+00 : f32
    %69 = vector.broadcast %cst_29 : f32 to vector<128x256xf32>
    %70 = arith.maximumf %68, %69 : vector<128x256xf32>
    %71 = arith.truncf %70 : vector<128x256xf32> to vector<128x256xbf16>
    %c0_30 = arith.constant 0 : index
    %c0_31 = arith.constant 0 : index
    %72 = vector.load %arg8[%c0_30, %c0_31] : memref<256x128xbf16, #tpu.memory_space<vmem>>, vector<256x128xbf16>
    %cst_32 = arith.constant dense<0.000000e+00> : vector<128x128xf32>
    %73 = tpu.matmul %71, %72, %cst_32 {dimension_numbers = #tpu.dot_dimension_numbers<[1], [0], [0], [1], [0, 0, 1, 1], [], []>} : vector<128x256xbf16>, vector<256x128xbf16>, vector<128x128xf32> -> vector<128x128xf32>
    %c0_33 = arith.constant 0 : index
    %c0_34 = arith.constant 0 : index
    %74 = vector.load %arg9[%c0_33, %c0_34] : memref<1x128xf32, #tpu.memory_space<vmem>>, vector<1x128xf32>
    %75 = vector.broadcast %74 : vector<1x128xf32> to vector<128x128xf32>
    %76 = arith.addf %73, %75 : vector<128x128xf32>
    %77 = arith.addf %62, %76 : vector<128x128xf32>
    %cst_35 = arith.constant dense<0.000000e+00> : vector<128xf32>
    %78 = vector.multi_reduction <add>, %77, %cst_35 [1] : vector<128x128xf32> to vector<128xf32>
    %79 = vector.shape_cast %78 : vector<128xf32> to vector<128x1xf32>
    %cst_36 = arith.constant 1.280000e+02 : f32
    %80 = vector.broadcast %cst_36 : f32 to vector<128x1xf32>
    %81 = arith.divf %79, %80 : vector<128x1xf32>
    %82 = vector.broadcast %81 : vector<128x1xf32> to vector<128x128xf32>
    %83 = arith.subf %77, %82 : vector<128x128xf32>
    %84 = arith.mulf %83, %83 : vector<128x128xf32>
    %cst_37 = arith.constant dense<0.000000e+00> : vector<128xf32>
    %85 = vector.multi_reduction <add>, %84, %cst_37 [1] : vector<128x128xf32> to vector<128xf32>
    %86 = vector.shape_cast %85 : vector<128xf32> to vector<128x1xf32>
    %cst_38 = arith.constant 1.280000e+02 : f32
    %87 = vector.broadcast %cst_38 : f32 to vector<128x1xf32>
    %88 = arith.divf %86, %87 : vector<128x1xf32>
    %89 = vector.broadcast %81 : vector<128x1xf32> to vector<128x128xf32>
    %90 = arith.subf %77, %89 : vector<128x128xf32>
    %cst_39 = arith.constant 9.99999974E-6 : f32
    %91 = vector.broadcast %cst_39 : f32 to vector<128x1xf32>
    %92 = arith.addf %88, %91 : vector<128x1xf32>
    %93 = math.rsqrt %92 : vector<128x1xf32>
    %94 = vector.broadcast %93 : vector<128x1xf32> to vector<128x128xf32>
    %95 = arith.mulf %90, %94 : vector<128x128xf32>
    %c0_40 = arith.constant 0 : index
    %c0_41 = arith.constant 0 : index
    %96 = vector.load %arg12[%c0_40, %c0_41] : memref<1x128xf32, #tpu.memory_space<vmem>>, vector<1x128xf32>
    %97 = vector.broadcast %96 : vector<1x128xf32> to vector<128x128xf32>
    %98 = arith.mulf %95, %97 : vector<128x128xf32>
    %c0_42 = arith.constant 0 : index
    %c0_43 = arith.constant 0 : index
    %99 = vector.load %arg13[%c0_42, %c0_43] : memref<1x128xf32, #tpu.memory_space<vmem>>, vector<1x128xf32>
    %100 = vector.broadcast %99 : vector<1x128xf32> to vector<128x128xf32>
    %101 = arith.addf %98, %100 : vector<128x128xf32>
    %c0_44 = arith.constant 0 : index
    %c0_45 = arith.constant 0 : index
    %102 = vector.load %arg14[%c0_44, %c0_45] : memref<128x128xf32, #tpu.memory_space<vmem>>, vector<128x128xf32>
    tpu.vector_store %arg14[%c0_44, %c0_45], %101 {strides = array<i32>} : memref<128x128xf32, #tpu.memory_space<vmem>>, vector<128x128xf32>,
    return
  }
  func.func @transform_0(%arg0: i32) -> (i32, i32) {
    %c0_i32 = arith.constant 0 : i32
    %c0_i32_0 = arith.constant 0 : i32
    return %arg0, %c0_i32 : i32, i32
  }
  func.func @transform_1(%arg0: i32) -> (i32, i32) {
    %c0_i32 = arith.constant 0 : i32
    %c0_i32_0 = arith.constant 0 : i32
    %c0_i32_1 = arith.constant 0 : i32
    return %c0_i32, %c0_i32_0 : i32, i32
  }
  func.func @transform_2(%arg0: i32) -> (i32, i32) {
    %c0_i32 = arith.constant 0 : i32
    %c0_i32_0 = arith.constant 0 : i32
    %c0_i32_1 = arith.constant 0 : i32
    return %c0_i32, %c0_i32_0 : i32, i32
  }
  func.func @transform_3(%arg0: i32) -> (i32, i32) {
    %c0_i32 = arith.constant 0 : i32
    %c0_i32_0 = arith.constant 0 : i32
    %c0_i32_1 = arith.constant 0 : i32
    return %c0_i32, %c0_i32_0 : i32, i32
  }
  func.func @transform_4(%arg0: i32) -> (i32, i32) {
    %c0_i32 = arith.constant 0 : i32
    %c0_i32_0 = arith.constant 0 : i32
    %c0_i32_1 = arith.constant 0 : i32
    return %c0_i32, %c0_i32_0 : i32, i32
  }
  func.func @transform_5(%arg0: i32) -> (i32, i32) {
    %c0_i32 = arith.constant 0 : i32
    %c0_i32_0 = arith.constant 0 : i32
    %c0_i32_1 = arith.constant 0 : i32
    return %c0_i32, %c0_i32_0 : i32, i32
  }
  func.func @transform_6(%arg0: i32) -> (i32, i32) {
    %c0_i32 = arith.constant 0 : i32
    %c0_i32_0 = arith.constant 0 : i32
    %c0_i32_1 = arith.constant 0 : i32
    return %c0_i32, %c0_i32_0 : i32, i32
  }
  func.func @transform_7(%arg0: i32) -> (i32, i32) {
    %c0_i32 = arith.constant 0 : i32
    %c0_i32_0 = arith.constant 0 : i32
    %c0_i32_1 = arith.constant 0 : i32
    return %c0_i32, %c0_i32_0 : i32, i32
  }
  func.func @transform_8(%arg0: i32) -> (i32, i32) {
    %c0_i32 = arith.constant 0 : i32
    %c0_i32_0 = arith.constant 0 : i32
    %c0_i32_1 = arith.constant 0 : i32
    return %c0_i32, %c0_i32_0 : i32, i32
  }
  func.func @transform_9(%arg0: i32) -> (i32, i32) {
    %c0_i32 = arith.constant 0 : i32
    %c0_i32_0 = arith.constant 0 : i32
    %c0_i32_1 = arith.constant 0 : i32
    return %c0_i32, %c0_i32_0 : i32, i32
  }
  func.func @transform_10(%arg0: i32) -> (i32, i32) {
    %c0_i32 = arith.constant 0 : i32
    %c0_i32_0 = arith.constant 0 : i32
    %c0_i32_1 = arith.constant 0 : i32
    return %c0_i32, %c0_i32_0 : i32, i32
  }
  func.func @transform_11(%arg0: i32) -> (i32, i32) {
    %c0_i32 = arith.constant 0 : i32
    %c0_i32_0 = arith.constant 0 : i32
    %c0_i32_1 = arith.constant 0 : i32
    return %c0_i32, %c0_i32_0 : i32, i32
  }
  func.func @transform_12(%arg0: i32) -> (i32, i32) {
    %c0_i32 = arith.constant 0 : i32
    %c0_i32_0 = arith.constant 0 : i32
    %c0_i32_1 = arith.constant 0 : i32
    return %c0_i32, %c0_i32_0 : i32, i32
  }
  func.func @transform_13(%arg0: i32) -> (i32, i32) {
    %c0_i32 = arith.constant 0 : i32
    %c0_i32_0 = arith.constant 0 : i32
    return %arg0, %c0_i32 : i32, i32
  }
}

</mosaic_0001>

<bundles_post_ra>
// kernel: tpu_custom_call.1
= control target key start
LH: loop header
LB: loop body
LE: loop exit
PB: predicated region body
PF: predicated region fallthrough
CT: control target
= control target key end

     0   :  { %s6370_s0 = inlined_call_operand.hbm [shape: f32[256,128], index: 0, kind: input, shape index: {}]   ;;  %s6371_s1 = inlined_call_operand.hbm [shape: bf16[128,384], index: 1, kind: input, shape index: {}]   ;;  %s6372_s2 = inlined_call_operand.vmem [shape: f32[1,384], index: 2, kind: input, shape index: {}]   ;;  %s6373_s3 = inlined_call_operand.hbm [shape: bf16[128,128], index: 3, kind: input, shape index: {}]   ;;  %s6374_s4 = inlined_call_operand.vmem [shape: f32[1,128], index: 4, kind: input, shape index: {}]   ;;  %s6375_s5 = inlined_call_operand.hbm [shape: bf16[128,256], index: 5, kind: input, shape index: {}]   ;;  %s6376_s6 = inlined_call_operand.vmem [shape: f32[1,256], index: 6, kind: input, shape index: {}]   ;;  %s6377_s7 = inlined_call_operand.hbm [shape: bf16[256,128], index: 7, kind: input, shape index: {}]   ;;  %s6378_s8 = inlined_call_operand.vmem [shape: f32[1,128], index: 8, kind: input, shape index: {}]   ;;  %s6379_s9 = inlined_call_operand.vmem [shape: f32[1,128], index: 9, kind: input, shape index: {}]   ;;  %s6380_s10 = inlined_call_operand.vmem [shape: f32[1,128], index: 10, kind: input, shape index: {}]   ;;  %s6381_s11 = inlined_call_operand.vmem [shape: f32[1,128], index: 11, kind: input, shape index: {}]   ;;  %s6382_s12 = inlined_call_operand.vmem [shape: f32[1,128], index: 12, kind: input, shape index: {}]   ;;  %s6383_s13 = inlined_call_operand.hbm [shape: f32[256,128], index: 13, kind: output, shape index: {}]  }
   0x1   :  { %6392 = sst [smem:[#allocation18_spill]] %s6371_s1 }
   0x2   :  { %6393 = sst [smem:[#allocation19_spill]] %s6378_s8 }
   0x3   :  { %6394 = sst [smem:[#allocation20_spill]] %s6381_s11 }
   0x4   :  { %6395 = sst [smem:[#allocation21_spill]] %s6382_s12 }
   0x5   :  { %6396 = sst [smem:[#allocation22_spill]] %s6383_s13 }
   0x6   :  { %18 = vsyncpa [#allocation3], 0 }
   0x7   :  { %20 = vsyncpa [#allocation3 + $0x1], 0 }
   0x8   :  { %21 = vsyncpa [#allocation6], 0 }
   0x9   :  { %22 = vsyncpa [#allocation9], 0 }
   0xa   :  { %23 = vsyncpa [#allocation4], 0 }
   0xb   :  { %25 = vsyncpa [#allocation4 + $0x1], 0  ;;  %s5037_s25 = smov 0   ;;  %s5039_s26 = smov 0  }
   0xc   :  { %s5041_s27 = smov 0   ;;  %s5043_s28 = smov 0  }
   0xd LB: > { %6397 = sst [smem:[#allocation16_spill]] %s4936_s25  ;;  %s5058_s29 = sadd.s32 4294967295, %s4948_s28   ;;  %s4948_s28 = sphi %s5043_s28, %s6427_s28   ;;  %s4944_s27 = sphi %s5041_s27, %s6426_s27   ;;  %s4940_s26 = sphi %s5039_s26, %s6425_s26   ;;  %s4936_s25 = sphi %s5037_s25, %s6424_s25  }
   0xe   : > { %s3868_s30 = sadd.s32 4294967294, %s4948_s28   ;;  %p51_p0 = scmp.ne.s32.totalorder %s4940_s26, %s4936_s25 }
   0xf   : > { %p6386_p1 = scmp.eq.s32.totalorder %s5058_s29, 0  ;;  %p333_p3 = scmp.eq.s32.totalorder %s3868_s30, 1 }
  0x10   : > { %p3869_p5 = scmp.ge.s32.totalorder %s4948_s28, 1  ;;  %p340_p7 = scmp.lt.s32.totalorder %s4948_s28, 3 }
  0x11   : > { %p5067_p4 = por %p6386_p1, %p51_p0  ;;  %p5072_p6 = por %p333_p3, %p51_p0 }
  0x12   : > { %p5077_p8 = pnand %p3869_p5, %p340_p7  ;;  %s4950_s17 = smov [#allocation5]  }
  0x13   : > { %s6398_s14 = scalar_select %p5067_p4, 1, 0 }
  0x14   : > { %s6399_s15 = scalar_select %p5072_p6, 1, 0 }
  0x15   : > { %s6401_s16 = scalar_select %p5077_p8, 1, 0 }
  0x16   : > { %6400 = sst [smem:[#allocation17_spill]] %s6399_s15  ;;  %s352_s18 = sshll.u32 %s4950_s17, 4  ;;  %s5081_s18 = int_to_ptr.vmem [resolvable:$true] %s352_s18 }
  0x17   : > { %p4430_p9 = pneg %p5077_p8  ;;  %s4951_s20 = smov [#allocation8]  }
  0x18   : > { %s384_s21 = sshll.u32 %s4951_s20, 4  ;;  %s6403_s1 = sld [smem:[#allocation18_spill]]  ;;  %s5092_s21 = int_to_ptr.vmem [resolvable:$true] %s384_s21 }
  0x19   : > { %p5088_p11 = pnand %p4430_p9, %p6386_p1 }
  0x1b   : > { %p5102_p13 = pneg %p5088_p11 }
  0x1e   : > { %s4732_s24 = scalar_lea.hbm %s6403_s1, 3072 }
  0x1f   : > { %p4733_p12 = scmp.ne.s32.totalorder %s6403_s1, %s4732_s24  ;;  %p4739_p5 = scmp.lt.u32.totalorder %s4732_s24, %s6403_s1 }
  0x21   : > { %p4735_p0 = pnand %p5102_p13, %p4733_p12 }
  0x23   : > { %p4736_p3 = pneg %p4735_p0 }
  0x25   : > { %p4741_p7 = pnand %p4739_p5, %p4736_p3 }
  0x27   : > { %4744 = shalt.err (!%p4741_p7)
}
  0x28   : > { %s4745_s22 = scalar_lea.vmem %s5081_s18, 3072  ;;  %p4753_p2 = scmp.lt.s32.totalorder %s5081_s18, %s5081_s18 }
  0x29   : > { %p4746_p9 = scmp.ne.s32.totalorder %s5081_s18, %s4745_s22  ;;  %p4754_p6 = scmp.lt.s32.totalorder %s4745_s22, %s4745_s22 }
  0x2b   : > { %p4748_p10 = pnand %p4746_p9, %p5102_p13  ;;  %p4755_p12 = por %p4754_p6, %p4753_p2 }
  0x2d   : > { %p4749_p1 = pneg %p4748_p10 }
  0x2f   : > { %p4756_p0 = pnand %p4755_p12, %p4749_p1 }
  0x31   : > { %4759 = shalt.err (!%p4756_p0)
}
  0x32   : > { %s4952_s23 = smov 192   ;;  %s4953_s25 = smov 12  }
  0x33   : > { %4433 = dma.hbm_to_vmem [thread:$0]  (!%p5088_p11), %s6403_s1, 3072, %s5081_s18, [#allocation6], %s4952_s23, %s4952_s23, %s4953_s25  }
  0x34   : > { %s4760_s13 = scalar_lea.hbm %s6375_s5, 2048 }
  0x35   : > { %p4761_p2 = scmp.ne.s32.totalorder %s6375_s5, %s4760_s13  ;;  %p4767_p10 = scmp.lt.u32.totalorder %s4760_s13, %s6375_s5 }
  0x37   : > { %p4763_p1 = pnand %p4761_p2, %p5102_p13 }
  0x39   : > { %p4764_p6 = pneg %p4763_p1 }
  0x3b   : > { %p4769_p3 = pnand %p4767_p10, %p4764_p6 }
  0x3d   : > { %4772 = shalt.err (!%p4769_p3)
}
  0x3e   : > { %s4773_s18 = scalar_lea.vmem %s5092_s21, 2048  ;;  %p4781_p12 = scmp.lt.s32.totalorder %s5092_s21, %s5092_s21 }
  0x3f   : > { %p4774_p5 = scmp.ne.s32.totalorder %s5092_s21, %s4773_s18  ;;  %p4782_p0 = scmp.lt.s32.totalorder %s4773_s18, %s4773_s18 }
  0x41   : > { %p4776_p7 = pnand %p4774_p5, %p5102_p13  ;;  %p4783_p2 = por %p4782_p0, %p4781_p12 }
  0x43   : > { %p4777_p9 = pneg %p4776_p7 }
  0x45   : > { %p4784_p1 = pnand %p4783_p2, %p4777_p9 }
  0x47   : > { %4787 = shalt.err (!%p4784_p1)
}
  0x48   : > { %s6390_s11 = smov 128   ;;  %s6391_s8 = smov 8  }
  0x49   : > { %4439 = dma.hbm_to_vmem [thread:$0]  (!%p5088_p11), %s6375_s5, 2048, %s5092_s21, [#allocation9], %s6390_s11, %s6390_s11, %s6391_s8  }
  0x4a   : > { %s4956_s23 = smov [#allocation7]   ;;  %s4788_s17 = scalar_lea.hbm %s6373_s3, 1024 }
  0x4b   : > { %s368_s25 = sshll.u32 %s4956_s23, 4  ;;  %p4789_p6 = scmp.ne.s32.totalorder %s6373_s3, %s4788_s17  ;;  %s369_s25 = int_to_ptr.vmem [resolvable:$true] %s368_s25 }
  0x4c   : > { %p4795_p5 = scmp.lt.u32.totalorder %s4788_s17, %s6373_s3 }
  0x4d   : > { %p4791_p10 = pnand %p4789_p6, %p5102_p13 }
  0x4f   : > { %p4792_p3 = pneg %p4791_p10 }
  0x51   : > { %p4797_p7 = pnand %p4795_p5, %p4792_p3 }
  0x53   : > { %4800 = shalt.err (!%p4797_p7)
}
  0x54   : > { %s4801_s21 = scalar_lea.vmem %s369_s25, 1024  ;;  %p4809_p2 = scmp.lt.s32.totalorder %s369_s25, %s369_s25 }
  0x55   : > { %p4802_p9 = scmp.ne.s32.totalorder %s369_s25, %s4801_s21  ;;  %p4810_p1 = scmp.lt.s32.totalorder %s4801_s21, %s4801_s21 }
  0x57   : > { %p4804_p12 = pnand %p4802_p9, %p5102_p13  ;;  %p4811_p4 = por %p4810_p1, %p4809_p2 }
  0x59   : > { %p4805_p0 = pneg %p4804_p12 }
  0x5b   : > { %p4812_p8 = pnand %p4811_p4, %p4805_p0 }
  0x5d   : > { %4815 = shalt.err (!%p4812_p8)
}
  0x5e   : > { %s4957_s12 = smov 64   ;;  %s4958_s13 = smov 4  }
  0x5f   : > { %4436 = dma.hbm_to_vmem [thread:$0]  (!%p5088_p11), %s6373_s3, 1024, %s369_s25, [#allocation6], %s4957_s12, %s4957_s12, %s4958_s13  }
  0x60   : > { %s4959_s24 = smov [#allocation10]   ;;  %s4816_s22 = scalar_lea.hbm %s6377_s7, 2048 }
  0x61   : > { %s400_s30 = sshll.u32 %s4959_s24, 4  ;;  %p4817_p4 = scmp.ne.s32.totalorder %s6377_s7, %s4816_s22  ;;  %s401_s30 = int_to_ptr.vmem [resolvable:$true] %s400_s30 }
  0x62   : > { %p4823_p10 = scmp.lt.u32.totalorder %s4816_s22, %s6377_s7 }
  0x63   : > { %p4819_p8 = pnand %p4817_p4, %p5102_p13 }
  0x65   : > { %p4820_p6 = pneg %p4819_p8 }
  0x67   : > { %p4825_p3 = pnand %p4823_p10, %p4820_p6 }
  0x69   : > { %4828 = shalt.err (!%p4825_p3)
}
  0x6a   : > { %s4829_s25 = scalar_lea.vmem %s401_s30, 2048  ;;  %p4837_p12 = scmp.lt.s32.totalorder %s401_s30, %s401_s30 }
  0x6b   : > { %p4830_p5 = scmp.ne.s32.totalorder %s401_s30, %s4829_s25  ;;  %p4838_p0 = scmp.lt.s32.totalorder %s4829_s25, %s4829_s25 }
  0x6d   : > { %p4832_p7 = pnand %p4830_p5, %p5102_p13  ;;  %p4839_p2 = por %p4838_p0, %p4837_p12 }
  0x6f   : > { %p4833_p9 = pneg %p4832_p7 }
  0x71   : > { %p4840_p1 = pnand %p4839_p2, %p4833_p9 }
  0x73   : > { %4843 = shalt.err (!%p4840_p1)
}
  0x74   : > { %4442 = dma.hbm_to_vmem [thread:$0]  (!%p5088_p11), %s6377_s7, 2048, %s401_s30, [#allocation9], %s4957_s12, %s4957_s12, %s4958_s13  }
  0x75   : > { %s5186_s15 = sadd.s32 1, %s4948_s28   ;;  %s38_s11 = sadd.s32 1, %s4944_s27 }
  0x76   : > { %s35_s19 = ssub.s32 %s4948_s28, %s5186_s15  ;;  %p45_p13 = scmp.ne.s32.totalorder %s4944_s27, %s4940_s26 }
  0x77   : > { %p36_p4 = scmp.eq.s32.totalorder %s35_s19, 0  ;;  %p46_p8 = scmp.eq.s32.totalorder %s4948_s28, 0 }
  0x78   : > { %p6405_p6 = scmp.eq.s32.totalorder %s5058_s29, 1  ;;  %p4455_p3 = scmp.lt.s32.totalorder %s4948_s28, 2 }
  0x79   : > { %s5202_s24 = scalar_select %p36_p4, %s4944_s27, %s38_s11  }
  0x7a   : > { %p5196_p10 = por %p6405_p6, %p45_p13  ;;  %p47_p5 = por %p46_p8, %p45_p13 }
  0x7b   : > { %s429_s17 = sand.u32 1, %s4944_s27   ;;  %s3976_s12 = sshll.u32 %s4948_s28, 11 }
  0x7c   : > { %s3875_s20 = sshll.u32 %s429_s17, 7  ;;  %s5209_s22 = scalar_lea.hbm %s6370_s0, %s3976_s12 }
  0x7d   : > { %s433_s18 = scalar_lea.vmem [#allocation2], %s3875_s20  ;;  %p5213_p11 = pnand %p4455_p3, %p47_p5 }
  0x7e   : > { %s440_s21 = sshll.u32 %s433_s18, 4  ;;  %s5217_s1 = scalar_lea.sflag [#allocation3], %s429_s17  ;;  %s5211_s21 = int_to_ptr.vmem [resolvable:$true] %s440_s21 }
  0x7f   : > { %s4844_s23 = scalar_lea.hbm %s5209_s22, 2048  ;;  %p4846_p9 = pneg %p5213_p11 }
  0x80   : > { %p4845_p7 = scmp.ne.s32.totalorder %s5209_s22, %s4844_s23  ;;  %s4849_s20 = scalar_lea.hbm %s6370_s0, 4096 }
  0x81   : > { %p4850_p2 = scmp.lt.u32.totalorder %s5209_s22, %s6370_s0  ;;  %p4851_p1 = scmp.lt.u32.totalorder %s4849_s20, %s4844_s23 }
  0x82   : > { %p4847_p12 = pnand %p4846_p9, %p4845_p7  ;;  %p4853_p4 = scmp.lt.u32.totalorder %s4844_s23, %s5209_s22 }
  0x83   : > { %p4852_p13 = por %p4851_p1, %p4850_p2 }
  0x84   : > { %p4848_p0 = pneg %p4847_p12 }
  0x85   : > { %p4854_p8 = por %p4853_p4, %p4852_p13 }
  0x87   : > { %p4855_p6 = pnand %p4854_p8, %p4848_p0 }
  0x89   : > { %4858 = shalt.err (!%p4855_p6)
}
  0x8a   : > { %s4859_s17 = scalar_lea.vmem %s5211_s21, 2048  ;;  %s4960_s30 = smov [#allocation2]  }
  0x8b   : > { %p4860_p3 = scmp.ne.s32.totalorder %s5211_s21, %s4859_s17  ;;  %s4864_s18 = sshll.u32 %s4960_s30, 4  ;;  %s4865_s18 = int_to_ptr.vmem [resolvable:$false] %s4864_s18 }
  0x8c   : > { %s4866_s11 = scalar_lea.vmem %s4865_s18, 4096  ;;  %p4867_p12 = scmp.lt.s32.totalorder %s5211_s21, %s4865_s18 }
  0x8d   : > { %p4862_p5 = pnand %p4860_p3, %p4846_p9  ;;  %p4868_p2 = scmp.lt.s32.totalorder %s4866_s11, %s4859_s17 }
  0x8f   : > { %p4863_p7 = pneg %p4862_p5  ;;  %p4869_p1 = por %p4868_p2, %p4867_p12 }
  0x91   : > { %p4870_p13 = pnand %p4869_p1, %p4863_p7 }
  0x93   : > { %4873 = shalt.err (!%p4870_p13)
}
  0x94   : > { %s6408_s23 = smov 8   ;;  %s6409_s19 = smov 128  }
  0x95   : > { %4446 = dma.hbm_to_vmem [thread:$0]  (!%p5213_p11), %s5209_s22, 2048, %s5211_s21, %s5217_s1, %s6409_s19, %s6409_s19, %s6408_s23  }
  0x96   : > { %p6410_p9 = scmp.ne.s32.totalorder %s6401_s16, 0 }
  0x97   : > { %s5251_s20 = sand.u32 (!%p6410_p9), 1, %s4940_s26   ;;  %p6411_p0 = scmp.ne.s32.totalorder (!%p6410_p9), %s6398_s14, 0 }
  0x98   : > { %452 = sbr.rel (%p6410_p9) target bundleno = 2550 (0x9f6), region = 72  ;;  %s3879_s12 = sshll.u32 (!%p6410_p9), %s5251_s20, 7 }
  0x99   : > { %s455_s13 = scalar_lea.sflag (!%p6410_p9), [#allocation3], %s5251_s20  ;;  %s5257_s25 = scalar_lea.vmem (!%p6410_p9), [#allocation2], %s3879_s12 }
  0x9f   : > { %4919 = dma.done.wait (%p6411_p0), %s455_s13, 2048  }
  0xa0   : > { %4921 = vsyncadd (%p6411_p0), %s455_s13, 4294965248  ;;  %p6412_p11 = scmp.eq.s32.totalorder %s5058_s29, 0 }
  0xa2   : > { %4923 = dma.done.wait (%p6412_p11), [#allocation6], 4096   ;;  %p6413_p4 = pmov %p6412_p11 }
  0xa4   : > { %4925 = vsyncadd (%p6413_p4), [#allocation6], 4294963200  ;;  %p6414_p8 = pmov %p6413_p4 }
  0xa5   : > { %p6415_p6 = pmov %p6413_p4 }
  0xa6   : > { %4927 = dma.done.wait (%p6414_p8), [#allocation9], 4096  }
  0xa7   : > { %4929 = vsyncadd (%p6415_p6), [#allocation9], 4294963200  ;;  %v4961_v0 = vmov 0   ;;  %v4508_v1 = vld [vmem:[#allocation5 + $0x4] ss:$12 sps:$4 sm:$0xff]   ;;  %v521_v10 = vld [vmem:[%s5257_s25 + $0x8] sm:$0xff]  ;;  %v578_v50 = vlaneseq }
  0xa8   : > { %753 = vmatprep.mubr.bf16.mxu0 %v4961_v0  ;;  %v4510_v2 = vld [vmem:[#allocation5] ss:$12 sps:$4 sm:$0xff]   ;;  %721 = vmatprep.subr.bf16.mxu0 %v4508_v1  ;;  %v4511_v3 = vld [vmem:[#allocation5 + $0x1c] ss:$12 sps:$4 sm:$0xff]   ;;  %v4513_v4 = vld [vmem:[#allocation5 + $0x18] ss:$12 sps:$4 sm:$0xff]  }
  0xa9   : > { %722 = vmatpush1.bf16.msra.mxu0 %v4510_v2  ;;  %v4514_v5 = vld [vmem:[#allocation5 + $0x34] ss:$12 sps:$4 sm:$0xff]   ;;  %v4516_v6 = vld [vmem:[#allocation5 + $0x30] ss:$12 sps:$4 sm:$0xff]   ;;  %v4517_v7 = vld [vmem:[#allocation5 + $0x4c] ss:$12 sps:$4 sm:$0xff]  }
  0xaa   : > { %723 = vmatprep.subr.bf16.mxu0 %v4511_v3  ;;  %v520_v8 = vld [vmem:[%s5257_s25] sm:$0xff]  ;;  %v4519_v9 = vld [vmem:[#allocation5 + $0x48] ss:$12 sps:$4 sm:$0xff]   ;;  %v4528_v20 = vld [vmem:[#allocation5 + $0x90] ss:$12 sps:$4 sm:$0xff]   ;;  %v4962_v49 = vmov 0.0  }
  0xab   : > { %v4520_v11 = vld [vmem:[#allocation5 + $0x64] ss:$12 sps:$4 sm:$0xff]   ;;  %v536_v12 = vpack.c.bf16 %v521_v10, %v520_v8  ;;  %v4522_v13 = vld [vmem:[#allocation5 + $0x60] ss:$12 sps:$4 sm:$0xff]   ;;  %v4523_v14 = vld [vmem:[#allocation5 + $0x7c] ss:$12 sps:$4 sm:$0xff]  }
  0xac   : > { %v4532_v15 = vld [vmem:[#allocation5 + $0x8] ss:$12 sps:$4 sm:$0xff]   ;;  %v4533_v16 = vld [vmem:[#allocation5 + $0x20] ss:$12 sps:$4 sm:$0xff]   ;;  %v4525_v17 = vld [vmem:[#allocation5 + $0x78] ss:$12 sps:$4 sm:$0xff]  }
  0xad   : > { %724 = vmatpush1.bf16.msra.mxu0 %v4513_v4  ;;  %4154 = vmatprep.mubr.bf16.mxu1 %v536_v12  ;;  %v4526_v18 = vld [vmem:[#allocation5 + $0x94] ss:$12 sps:$4 sm:$0xff]   ;;  %v4534_v19 = vld [vmem:[#allocation5 + $0x38] ss:$12 sps:$4 sm:$0xff]   ;;  %v4535_v22 = vld [vmem:[#allocation5 + $0x50] ss:$12 sps:$4 sm:$0xff]  }
  0xae   : > { %725 = vmatprep.subr.bf16.mxu0 %v4514_v5  ;;  %4138 = vmatprep.subr.bf16.mxu1 %v4532_v15  ;;  %v4529_v21 = vld [vmem:[#allocation5 + $0xac] ss:$12 sps:$4 sm:$0xff]   ;;  %v4531_v23 = vld [vmem:[#allocation5 + $0xa8] ss:$12 sps:$4 sm:$0xff]   ;;  %v4539_v30 = vld [vmem:[#allocation5 + $0xb0] ss:$12 sps:$4 sm:$0xff]  }
  0xaf   : > { %4139 = vmatpush3.bf16.msra.mxu1 %v4532_v15  ;;  %v4536_v24 = vld [vmem:[#allocation5 + $0x68] ss:$12 sps:$4 sm:$0xff]   ;;  %v4537_v25 = vld [vmem:[#allocation5 + $0x80] ss:$12 sps:$4 sm:$0xff]   ;;  %v523_v27 = vld [vmem:[%s5257_s25 + $0x18] sm:$0xff]  ;;  %vm4963_vm0 = vmmov 0  }
  0xb0   : > { %4140 = vmatprep.subr.bf16.mxu1 %v4533_v16  ;;  %v522_v26 = vld [vmem:[%s5257_s25 + $0x10] sm:$0xff]  ;;  %v4538_v28 = vld [vmem:[#allocation5 + $0x98] ss:$12 sps:$4 sm:$0xff]   ;;  %v525_v32 = vld [vmem:[%s5257_s25 + $0x28] sm:$0xff]  ;;  %v5301_v51 = vshrl.u32 %v578_v50, 7  ;;  %vm1831_vm1 = vcmask 1043456  }
  0xb1   : > { %726 = vmatpush1.bf16.msra.mxu0 %v4516_v6  ;;  %v537_v29 = vpack.c.bf16 %v523_v27, %v522_v26  ;;  %v524_v31 = vld [vmem:[%s5257_s25 + $0x20] sm:$0xff]  ;;  %v526_v34 = vld [vmem:[%s5257_s25 + $0x30] sm:$0xff]  ;;  %v527_v35 = vld [vmem:[%s5257_s25 + $0x38] sm:$0xff]  ;;  %vm1619_vm2 = vcmask 64512   ;;  %s6417_s22 = sld [smem:[#allocation20_spill]]  ;;  %s6418_s17 = sld [smem:[#allocation21_spill]] }
  0xb2   : > { %727 = vmatprep.subr.bf16.mxu0 %v4517_v7  ;;  %v538_v33 = vpack.c.bf16 %v525_v32, %v524_v31  ;;  %v539_v36 = vpack.c.bf16 %v527_v35, %v526_v34  ;;  %v528_v37 = vld [vmem:[%s5257_s25 + $0x40] sm:$0xff]  ;;  %v529_v38 = vld [vmem:[%s5257_s25 + $0x48] sm:$0xff]  ;;  %v530_v40 = vld [vmem:[%s5257_s25 + $0x50] sm:$0xff]  ;;  %v588_v52 = vsub.s32 2, %v5301_v51  ;;  %v584_v55 = vsub.s32 1, %v5301_v51  ;;  %s6258_s30 = scalar_lea.vmem [#allocation11], %s3879_s12 }
  0xb3   : > { %4141 = vmatpush3.bf16.msra.mxu1 %v4533_v16  ;;  %v540_v39 = vpack.c.bf16 %v529_v38, %v528_v37  ;;  %v531_v41 = vld [vmem:[%s5257_s25 + $0x58] sm:$0xff]  ;;  %v532_v42 = vld [vmem:[%s5257_s25 + $0x60] sm:$0xff]  ;;  %v533_v43 = vld [vmem:[%s5257_s25 + $0x68] sm:$0xff]  ;;  %v580_v57 = vsub.s32 0, %v5301_v51  ;;  %s3977_s12 = sshll.u32 %s5058_s29, 11  ;;  %s3757_s18 = sshll.u32 %s6258_s30, 4  ;;  %s6323_s18 = int_to_ptr.vmem [resolvable:$true] %s3757_s18 }
  0xb4   : > { %4142 = vmatprep.subr.bf16.mxu1 %v4534_v19  ;;  %v541_v44 = vpack.c.bf16 %v531_v41, %v530_v40  ;;  %v542_v45 = vpack.c.bf16 %v533_v43, %v532_v42  ;;  %v534_v46 = vld [vmem:[%s5257_s25 + $0x70] sm:$0xff]  ;;  %v535_v47 = vld [vmem:[%s5257_s25 + $0x78] sm:$0xff]  ;;  %v576_v53 = vld [vmem:[%s6372_s2] sm:$0x7]  ;;  %s6419_s19 = sld [smem:[#allocation22_spill]]  ;;  %s3744_s29 = scalar_lea.sflag [#allocation4], %s5251_s20 }
  0xb5   : > { %728 = vmatpush1.bf16.msra.mxu0 %v4519_v9  ;;  %v543_v48 = vpack.c.bf16 %v535_v47, %v534_v46  ;;  %v5307_v54 = vrot.slane %v576_v53, %v588_v52  ;;  %v5312_v56 = vrot.slane %v576_v53, %v584_v55  ;;  %v5318_v62 = vrot.slane %v576_v53, %v580_v57  ;;  %s4964_s14 = smov [#allocation11]  }
  0xb6   : > { %729 = vmatprep.subr.bf16.mxu0 %v4520_v11  ;;  %s4878_s16 = sshll.u32 %s4964_s14, 4  ;;  %s4879_s16 = int_to_ptr.vmem [resolvable:$false] %s4878_s16 }
  0xb7   : > { %4143 = vmatpush3.bf16.msra.mxu1 %v4534_v19  ;;  %p4881_p12 = scmp.lt.s32.totalorder %s6323_s18, %s4879_s16 }
  0xb8   : > { %4144 = vmatprep.subr.bf16.mxu1 %v4535_v22 }
  0xb9   : > { %730 = vmatpush1.bf16.msra.mxu0 %v4522_v13 }
  0xba   : > { %731 = vmatprep.subr.bf16.mxu0 %v4523_v14  ;;  %s6321_s13 = scalar_lea.hbm %s6419_s19, %s3977_s12 }
  0xbb   : > { %4145 = vmatpush3.bf16.msra.mxu1 %v4535_v22 }
  0xbc   : > { %4146 = vmatprep.subr.bf16.mxu1 %v4536_v24 }
  0xbd   : > { %732 = vmatpush1.bf16.msra.mxu0 %v4525_v17 }
  0xbe   : > { %733 = vmatprep.subr.bf16.mxu0 %v4526_v18 }
  0xbf   : > { %4147 = vmatpush3.bf16.msra.mxu1 %v4536_v24 }
  0xc0   : > { %4148 = vmatprep.subr.bf16.mxu1 %v4537_v25 }
  0xc1   : > { %734 = vmatpush1.bf16.msra.mxu0 %v4528_v20 }
  0xc2   : > { %735 = vmatprep.subr.bf16.mxu0 %v4529_v21 }
  0xc3   : > { %4149 = vmatpush3.bf16.msra.mxu1 %v4537_v25 }
  0xc4   : > { %4150 = vmatprep.subr.bf16.mxu1 %v4538_v28 }
  0xc5   : > { %736 = vmatpush1.bf16.msra.mxu0 %v4531_v23 }
  0xc6   : > { %4194 = vmatprep.subr.bf16.mxu0 %v4962_v49 }
  0xc7   : > { %4151 = vmatpush3.bf16.msra.mxu1 %v4538_v28 }
  0xc8   : > { %754 = vmatmul.mubr.bf16.vlgmr.msra.gmra.mrb[0].mxu0 %v536_v12  ;;  %4152 = vmatprep.subr.bf16.mxu1 %v4539_v30 }
  0xc9   : > { %763 = vmatprep.mubr.bf16.mxu0 %v4961_v0 }
  0xcb   : > { %4153 = vmatpush3.bf16.msra.mxu1 %v4539_v30 }
  0xcc   : > { %4170 = vmatprep.subr.bf16.mxu1 %v4962_v49 }
  0xce   : > { %4155 = vmatmul.mubr.bf16.vlgmr.msra.gmra.mrb[0].mxu1 %v537_v29 }
  0xcf   : > { %4158 = vmatprep.mubr.bf16.mxu1 %v538_v33 }
  0xd0   : > { %764 = vmatmul.mubr.bf16.gmra.mrb[4].mxu0 %v537_v29 }
  0xd1   : > { %773 = vmatprep.mubr.bf16.mxu0 %v4961_v0 }
  0xd6   : > { %4159 = vmatmul.mubr.bf16.gmra.mrb[4].mxu1 %v539_v36 }
  0xd7   : > { %4162 = vmatprep.mubr.bf16.mxu1 %v540_v39 }
  0xd8   : > { %774 = vmatmul.mubr.bf16.gmra.mrb[8].mxu0 %v538_v33 }
  0xd9   : > { %783 = vmatprep.mubr.bf16.mxu0 %v4961_v0 }
  0xde   : > { %4163 = vmatmul.mubr.bf16.gmra.mrb[8].mxu1 %v541_v44 }
  0xdf   : > { %4166 = vmatprep.mubr.bf16.mxu1 %v542_v45 }
  0xe0   : > { %784 = vmatmul.mubr.bf16.gmra.mrb[12].mxu0 %v539_v36 }
  0xe1   : > { %793 = vmatprep.mubr.bf16.mxu0 %v4961_v0 }
  0xe6   : > { %4167 = vmatmul.mubr.bf16.gmra.mrb[12].mxu1 %v543_v48 }
  0xe7   : > { %4172 = vmatprep.mubr.msk.bf16.mxu1 %vm4963_vm0, %v4962_v49 }
  0xe8   : > { %794 = vmatmul.mubr.bf16.gmra.mrb[16].mxu0 %v540_v39 }
  0xe9   : > { %803 = vmatprep.mubr.bf16.mxu0 %v4961_v0 }
  0xf0   : > { %804 = vmatmul.mubr.bf16.gmra.mrb[20].mxu0 %v541_v44 }
  0xf1   : > { %813 = vmatprep.mubr.bf16.mxu0 %v4961_v0 }
  0xf8   : > { %814 = vmatmul.mubr.bf16.gmra.mrb[24].mxu0 %v542_v45 }
  0xf9   : > { %823 = vmatprep.mubr.bf16.mxu0 %v4961_v0 }
 0x100   : > { %824 = vmatmul.mubr.bf16.gmra.mrb[28].mxu0 %v543_v48 }
 0x101   : > { %4196 = vmatprep.mubr.msk.bf16.mxu0 %vm4963_vm0, %v4962_v49 }
 0x19b   : > { %v755_v58 = vpop.f32.mrb[0].mxu0 }
 0x19c   : > { %v757_v59 = vpop.f32.mrb[1].mxu0  ;;  %v756_v2 = vadd.f32 %v755_v58, %v5318_v62 }
 0x19d   : > { %v758_v60 = vadd.f32 %v757_v59, %v5312_v56  ;;  %v759_v61 = vpop.f32.mrb[2].mxu0 }
 0x19e   : > { %v761_v63 = vpop.f32.mrb[3].mxu0  ;;  %v931_v7 = vpack.c.bf16 %v756_v2, %v756_v2  ;;  %v760_v11 = vadd.f32 %v759_v61, %v5318_v62 }
 0x19f   : > { %v947_v1 = vpack.c.bf16 %v758_v60, %v758_v60  ;;  %v762_v3 = vadd.f32 %v761_v63, %v5312_v56 }
 0x1a0   : > { %v932_v22 = vpack.c.bf16 %v760_v11, %v760_v11 }
 0x1a1   : > { %4171 = vmatpush3.bf16.xpose.msra.mxu1 %v947_v1  ;;  %v948_v9 = vpack.c.bf16 %v762_v3, %v762_v3  ;;  %v4156_v13 = vpop.f32.mrb[0].mxu1 }
 0x1a2   : > { %4176 = vmatprep.subr.bf16.mxu1 %v4962_v49  ;;  %v877_v15 = vadd.f32 %v4156_v13, %v5307_v54  ;;  %v868_v16 = vpop.f32.mrb[1].mxu1 }
 0x1a3   : > { %v765_v4 = vpop.f32.mrb[4].mxu0  ;;  %v5335_v20 = vadd.f32 %v868_v16, %v5307_v54  ;;  %v4157_v21 = vpop.f32.mrb[2].mxu1 }
 0x1a4   : > { %v767_v5 = vpop.f32.mrb[5].mxu0  ;;  %v1814_v24 = vpack.c.bf16 %v877_v15, %v877_v15  ;;  %v880_v25 = vadd.f32 %v4157_v21, %v5307_v54  ;;  %v871_v26 = vpop.f32.mrb[3].mxu1  ;;  %v766_v32 = vadd.f32 %v765_v4, %v5318_v62 }
 0x1a5   : > { %v5323_v6 = vpop.f32.mrb[6].mxu0  ;;  %v768_v10 = vadd.f32 %v767_v5, %v5312_v56  ;;  %v5339_v28 = vadd.f32 %v871_v26, %v5307_v54 }
 0x1a6   : > { %v771_v8 = vpop.f32.mrb[7].mxu0  ;;  %v5343_v30 = vsel %vm1831_vm1, %v1814_v24, 0  ;;  %v1815_v31 = vpack.c.bf16 %v880_v25, %v880_v25  ;;  %v933_v45 = vpack.c.bf16 %v766_v32, %v766_v32  ;;  %v770_v3 = vadd.f32 %v5323_v6, %v5318_v62 }
 0x1a7   : > { %v949_v17 = vpack.c.bf16 %v768_v10, %v768_v10  ;;  %v772_v34 = vadd.f32 %v771_v8, %v5312_v56 }
 0x1a8   : > { %4173 = vmatmul.mubr.bf16.vlgmr.msra.gmra.mrb[16].mxu1 %v931_v7  ;;  %v5350_v33 = vsel %vm1831_vm1, %v1815_v31, 0 }
 0x1a9   : > { %4177 = vmatpush3.bf16.xpose.msra.mxu1 %v948_v9  ;;  %4178 = vmatprep.mubr.msk.bf16.mxu1 %vm4963_vm0, %v4962_v49  ;;  %v4160_v36 = vpop.f32.mrb[4].mxu1  ;;  %v950_v52 = vpack.c.bf16 %v772_v34, %v772_v34 }
 0x1aa   : > { %4182 = vmatprep.subr.bf16.mxu1 %v4962_v49  ;;  %v893_v39 = vadd.f32 %v4160_v36, %v5307_v54  ;;  %v884_v40 = vpop.f32.mrb[5].mxu1 }
 0x1ab   : > { %v775_v12 = vpop.f32.mrb[8].mxu0  ;;  %v885_v43 = vadd.f32 %v884_v40, %v5307_v54  ;;  %v4161_v44 = vpop.f32.mrb[6].mxu1 }
 0x1ac   : > { %v777_v14 = vpop.f32.mrb[9].mxu0  ;;  %v776_v29 = vadd.f32 %v775_v12, %v5318_v62  ;;  %v1818_v47 = vpack.c.bf16 %v893_v39, %v893_v39  ;;  %v896_v48 = vadd.f32 %v4161_v44, %v5307_v54  ;;  %v887_v50 = vpop.f32.mrb[7].mxu1 }
 0x1ad   : > { %v778_v18 = vadd.f32 %v777_v14, %v5312_v56  ;;  %v5332_v19 = vpop.f32.mrb[10].mxu0  ;;  %v1816_v58 = vpack.c.bf16 %v885_v43, %v885_v43  ;;  %v888_v59 = vadd.f32 %v887_v50, %v5307_v54 }
 0x1ae   : > { %v781_v23 = vpop.f32.mrb[11].mxu0  ;;  %v935_v37 = vpack.c.bf16 %v776_v29, %v776_v29  ;;  %v5363_v61 = vsel %vm1831_vm1, %v1818_v47, 0  ;;  %v1819_v63 = vpack.c.bf16 %v896_v48, %v896_v48  ;;  %v780_v36 = vadd.f32 %v5332_v19, %v5318_v62 }
 0x1af   : > { %v951_v27 = vpack.c.bf16 %v778_v18, %v778_v18  ;;  %v5366_v1 = vsel %vm1831_vm1, %v1816_v58, 0  ;;  %v1817_v2 = vpack.c.bf16 %v888_v59, %v888_v59  ;;  %v782_v5 = vadd.f32 %v781_v23, %v5312_v56 }
 0x1b0   : > { %4179 = vmatmul.mubr.bf16.vlgmr.msra.gmra.mrb[20].mxu1 %v932_v22  ;;  %v5375_v4 = vsel %vm1831_vm1, %v1819_v63, 0 }
 0x1b1   : > { %4183 = vmatpush3.bf16.xpose.msra.mxu1 %v949_v17  ;;  %4195 = vmatpush3.bf16.xpose.msra.mxu0 %v951_v27  ;;  %v5381_v8 = vsel %vm1831_vm1, %v1817_v2, 0  ;;  %v4164_v6 = vpop.f32.mrb[8].mxu1  ;;  %v934_v17 = vpack.c.bf16 %v770_v3, %v770_v3  ;;  %v952_v24 = vpack.c.bf16 %v782_v5, %v782_v5 }
 0x1b2   : > { %4184 = vmatprep.mubr.msk.bf16.mxu1 %vm4963_vm0, %v4962_v49  ;;  %4188 = vmatprep.subr.bf16.mxu1 %v4962_v49  ;;  %v909_v11 = vadd.f32 %v4164_v6, %v5307_v54  ;;  %v900_v12 = vpop.f32.mrb[9].mxu1 }
 0x1b3   : > { %v785_v35 = vpop.f32.mrb[12].mxu0  ;;  %4206 = vmatprep.subr.bf16.mxu0 %v4962_v49  ;;  %v901_v15 = vadd.f32 %v900_v12, %v5307_v54  ;;  %v4165_v16 = vpop.f32.mrb[10].mxu1 }
 0x1b4   : > { %v787_v38 = vpop.f32.mrb[13].mxu0  ;;  %v786_v60 = vadd.f32 %v785_v35, %v5318_v62  ;;  %v1822_v21 = vpack.c.bf16 %v909_v11, %v909_v11  ;;  %v912_v22 = vadd.f32 %v4165_v16, %v5307_v54  ;;  %v903_v23 = vpop.f32.mrb[11].mxu1 }
 0x1b5   : > { %v788_v41 = vadd.f32 %v787_v38, %v5312_v56  ;;  %v5356_v42 = vpop.f32.mrb[14].mxu0  ;;  %v1820_v26 = vpack.c.bf16 %v901_v15, %v901_v15  ;;  %v904_v27 = vadd.f32 %v903_v23, %v5307_v54 }
 0x1b6   : > { %v791_v46 = vpop.f32.mrb[15].mxu0  ;;  %v937_v9 = vpack.c.bf16 %v786_v60, %v786_v60  ;;  %v5392_v31 = vsel %vm1831_vm1, %v1822_v21, 0  ;;  %v1823_v32 = vpack.c.bf16 %v912_v22, %v912_v22  ;;  %v790_v12 = vadd.f32 %v5356_v42, %v5318_v62 }
 0x1b7   : > { %v953_v53 = vpack.c.bf16 %v788_v41, %v788_v41  ;;  %v5395_v34 = vsel %vm1831_vm1, %v1820_v26, 0  ;;  %v1821_v35 = vpack.c.bf16 %v904_v27, %v904_v27  ;;  %v792_v38 = vadd.f32 %v791_v46, %v5312_v56 }
 0x1b8   : > { %4185 = vmatmul.mubr.bf16.vlgmr.msra.gmra.mrb[24].mxu1 %v933_v45  ;;  %4197 = vmatmul.mubr.bf16.vlgmr.msra.gmra.mrb[32].mxu0 %v935_v37  ;;  %v5404_v37 = vsel %vm1831_vm1, %v1823_v32, 0  ;;  %v938_v23 = vpack.c.bf16 %v790_v12, %v790_v12 }
 0x1b9   : > { %4189 = vmatpush3.bf16.xpose.msra.mxu1 %v950_v52  ;;  %4207 = vmatpush3.bf16.xpose.msra.mxu0 %v953_v53  ;;  %v5410_v40 = vsel %vm1831_vm1, %v1821_v35, 0  ;;  %v4168_v19 = vpop.f32.mrb[12].mxu1  ;;  %v936_v52 = vpack.c.bf16 %v780_v36, %v780_v36  ;;  %v954_v63 = vpack.c.bf16 %v792_v38, %v792_v38 }
 0x1ba   : > { %4190 = vmatprep.mubr.msk.bf16.mxu1 %vm4963_vm0, %v4962_v49  ;;  %4208 = vmatprep.mubr.msk.bf16.mxu0 %vm4963_vm0, %v4962_v49  ;;  %v925_v44 = vadd.f32 %v4168_v19, %v5307_v54  ;;  %v916_v45 = vpop.f32.mrb[13].mxu1 }
 0x1bb   : > { %v795_v7 = vpop.f32.mrb[16].mxu0  ;;  %4200 = vmatprep.subr.bf16.mxu1 %v4962_v49  ;;  %4218 = vmatprep.subr.bf16.mxu0 %v4962_v49  ;;  %v917_v46 = vadd.f32 %v916_v45, %v5307_v54  ;;  %v4169_v50 = vpop.f32.mrb[14].mxu1 }
 0x1bc   : > { %v797_v10 = vpop.f32.mrb[17].mxu0  ;;  %v796_v29 = vadd.f32 %v795_v7, %v5318_v62  ;;  %v1826_v58 = vpack.c.bf16 %v925_v44, %v925_v44  ;;  %v928_v59 = vadd.f32 %v4169_v50, %v5307_v54  ;;  %v919_v60 = vpop.f32.mrb[15].mxu1 }
 0x1bd   : > { %v798_v13 = vadd.f32 %v797_v10, %v5312_v56  ;;  %v5385_v14 = vpop.f32.mrb[18].mxu0  ;;  %v1824_v3 = vpack.c.bf16 %v917_v46, %v917_v46  ;;  %v920_v5 = vadd.f32 %v919_v60, %v5307_v54 }
 0x1be   : > { %v801_v18 = vpop.f32.mrb[19].mxu0  ;;  %v939_v41 = vpack.c.bf16 %v796_v29, %v796_v29  ;;  %v5421_v6 = vsel %vm1831_vm1, %v1826_v58, 0  ;;  %v800_v32 = vadd.f32 %v5385_v14, %v5318_v62 }
 0x1bf   : > { %v955_v25 = vpack.c.bf16 %v798_v13, %v798_v13  ;;  %v5424_v10 = vsel %vm1831_vm1, %v1824_v3, 0  ;;  %v1825_v11 = vpack.c.bf16 %v920_v5, %v920_v5  ;;  %v802_v13 = vadd.f32 %v801_v18, %v5312_v56 }
 0x1c0   : > { %4191 = vmatmul.mubr.bf16.vlgmr.msra.gmra.mrb[28].mxu1 %v934_v17  ;;  %4209 = vmatmul.mubr.bf16.vlgmr.msra.gmra.mrb[36].mxu0 %v937_v9  ;;  %v1827_v9 = vpack.c.bf16 %v928_v59, %v928_v59 }
 0x1c1   : > { %4201 = vmatpush3.bf16.xpose.msra.mxu1 %v952_v24  ;;  %4219 = vmatpush3.bf16.xpose.msra.mxu0 %v955_v25  ;;  %v5439_v16 = vsel %vm1831_vm1, %v1825_v11, 0  ;;  %v956_v26 = vpack.c.bf16 %v802_v13, %v802_v13 }
 0x1c2   : > { %4202 = vmatprep.mubr.msk.bf16.mxu1 %vm4963_vm0, %v4962_v49  ;;  %4220 = vmatprep.mubr.msk.bf16.mxu0 %vm4963_vm0, %v4962_v49  ;;  %v5433_v54 = vsel %vm1831_vm1, %v1827_v9, 0 }
 0x1c3   : > { %v805_v39 = vpop.f32.mrb[20].mxu0  ;;  %4212 = vmatprep.subr.bf16.mxu1 %v4962_v49  ;;  %4230 = vmatprep.subr.bf16.mxu0 %v4962_v49 }
 0x1c4   : > { %v807_v43 = vpop.f32.mrb[21].mxu0  ;;  %v806_v7 = vadd.f32 %v805_v39, %v5318_v62 }
 0x1c5   : > { %v808_v47 = vadd.f32 %v807_v43, %v5312_v56  ;;  %v5414_v48 = vpop.f32.mrb[22].mxu0  ;;  %v940_v43 = vpack.c.bf16 %v800_v32, %v800_v32 }
 0x1c6   : > { %v811_v53 = vpop.f32.mrb[23].mxu0  ;;  %v941_v42 = vpack.c.bf16 %v806_v7, %v806_v7 }
 0x1c7   : > { %v957_v2 = vpack.c.bf16 %v808_v47, %v808_v47  ;;  %v812_v35 = vadd.f32 %v811_v53, %v5312_v56 }
 0x1c8   : > { %4203 = vmatmul.mubr.bf16.vlgmr.msra.gmra.mrb[32].mxu1 %v936_v52  ;;  %4221 = vmatmul.mubr.bf16.vlgmr.msra.gmra.mrb[40].mxu0 %v939_v41  ;;  %v810_v52 = vadd.f32 %v5414_v48, %v5318_v62  ;;  %v1813_v48 = vpack.c.bf16 %v5339_v28, %v5339_v28 }
 0x1c9   : > { %4213 = vmatpush3.bf16.xpose.msra.mxu1 %v954_v63  ;;  %4231 = vmatpush3.bf16.xpose.msra.mxu0 %v957_v2  ;;  %v958_v45 = vpack.c.bf16 %v812_v35, %v812_v35 }
 0x1ca   : > { %4214 = vmatprep.mubr.msk.bf16.mxu1 %vm4963_vm0, %v4962_v49  ;;  %4232 = vmatprep.mubr.msk.bf16.mxu0 %vm4963_vm0, %v4962_v49  ;;  %v942_v58 = vpack.c.bf16 %v810_v52, %v810_v52  ;;  %v1879_v2 = vsel %vm1831_vm1, %v1813_v48, 0 }
 0x1cb   : > { %v815_v15 = vpop.f32.mrb[24].mxu0  ;;  %4224 = vmatprep.subr.bf16.mxu1 %v4962_v49  ;;  %4242 = vmatprep.subr.bf16.mxu0 %v4962_v49 }
 0x1cc   : > { %v817_v17 = vpop.f32.mrb[25].mxu0  ;;  %v816_v29 = vadd.f32 %v815_v15, %v5318_v62 }
 0x1cd   : > { %v818_v21 = vadd.f32 %v817_v17, %v5312_v56  ;;  %v819_v22 = vpop.f32.mrb[26].mxu0 }
 0x1ce   : > { %v820_v24 = vadd.f32 %v819_v22, %v5318_v62  ;;  %v821_v25 = vpop.f32.mrb[27].mxu0  ;;  %v943_v38 = vpack.c.bf16 %v816_v29, %v816_v29 }
 0x1cf   : > { %v959_v27 = vpack.c.bf16 %v818_v21, %v818_v21  ;;  %v822_v18 = vadd.f32 %v821_v25, %v5312_v56 }
 0x1d0   : > { %4215 = vmatmul.mubr.bf16.vlgmr.msra.gmra.mrb[36].mxu1 %v938_v23  ;;  %4233 = vmatmul.mubr.bf16.vlgmr.msra.gmra.mrb[44].mxu0 %v941_v42 }
 0x1d1   : > { %4225 = vmatpush3.bf16.xpose.msra.mxu1 %v956_v26  ;;  %4243 = vmatpush3.bf16.xpose.msra.mxu0 %v959_v27  ;;  %v960_v59 = vpack.c.bf16 %v822_v18, %v822_v18 }
 0x1d2   : > { %4226 = vmatprep.mubr.msk.bf16.mxu1 %vm4963_vm0, %v4962_v49  ;;  %4244 = vmatprep.mubr.msk.bf16.mxu0 %vm4963_vm0, %v4962_v49 }
 0x1d3   : > { %v825_v36 = vpop.f32.mrb[28].mxu0  ;;  %4236 = vmatprep.subr.bf16.mxu1 %v4962_v49  ;;  %4254 = vmatprep.subr.bf16.mxu0 %v4962_v49 }
 0x1d4   : > { %v827_v39 = vpop.f32.mrb[29].mxu0  ;;  %v826_v50 = vadd.f32 %v825_v36, %v5318_v62 }
 0x1d5   : > { %v828_v19 = vadd.f32 %v827_v39, %v5312_v56  ;;  %v829_v41 = vpop.f32.mrb[30].mxu0 }
 0x1d6   : > { %v830_v14 = vadd.f32 %v829_v41, %v5318_v62  ;;  %v831_v44 = vpop.f32.mrb[31].mxu0  ;;  %v945_v53 = vpack.c.bf16 %v826_v50, %v826_v50  ;;  %v944_v62 = vpack.c.bf16 %v820_v24, %v820_v24 }
 0x1d7   : > { %v961_v47 = vpack.c.bf16 %v828_v19, %v828_v19  ;;  %v832_v46 = vadd.f32 %v831_v44, %v5312_v56  ;;  %v1812_v56 = vpack.c.bf16 %v5335_v20, %v5335_v20 }
 0x1d8   : > { %4227 = vmatmul.mubr.bf16.vlgmr.msra.gmra.mrb[40].mxu1 %v940_v43  ;;  %4245 = vmatmul.mubr.bf16.vlgmr.msra.gmra.mrb[48].mxu0 %v943_v38  ;;  %v946_v63 = vpack.c.bf16 %v830_v14, %v830_v14 }
 0x1d9   : > { %4237 = vmatpush3.bf16.xpose.msra.mxu1 %v958_v45  ;;  %4255 = vmatpush3.bf16.xpose.msra.mxu0 %v961_v47  ;;  %v1833_v60 = vsel %vm1831_vm1, %v1812_v56, 0  ;;  %v962_v20 = vpack.c.bf16 %v832_v46, %v832_v46 }
 0x1da   : > { %4238 = vmatprep.mubr.msk.bf16.mxu1 %vm4963_vm0, %v4962_v49  ;;  %4256 = vmatprep.mubr.msk.bf16.mxu0 %vm4963_vm0, %v4962_v49 }
 0x1db   : > { %4248 = vmatprep.subr.bf16.mxu1 %v4962_v49  ;;  %4266 = vmatprep.subr.bf16.mxu0 %v4962_v49 }
 0x1e0   : > { %4239 = vmatmul.mubr.bf16.vlgmr.msra.gmra.mrb[44].mxu1 %v942_v58  ;;  %4257 = vmatmul.mubr.bf16.vlgmr.msra.gmra.mrb[52].mxu0 %v945_v53 }
 0x1e1   : > { %4249 = vmatpush3.bf16.xpose.msra.mxu1 %v960_v59  ;;  %4250 = vmatprep.mubr.msk.bf16.mxu1 %vm4963_vm0, %v4962_v49 }
 0x1e2   : > { %4260 = vmatprep.subr.bf16.mxu1 %v4962_v49  ;;  %4267 = vmatpush3.bf16.msra.mxu0 %v1833_v60 }
 0x1e3   : > { %4268 = vmatprep.mubr.msk.bf16.mxu0 %vm4963_vm0, %v4962_v49  ;;  %4278 = vmatprep.subr.bf16.mxu0 %v4962_v49 }
 0x1e8   : > { %4251 = vmatmul.mubr.bf16.vlgmr.msra.gmra.mrb[48].mxu1 %v944_v62 }
 0x1e9   : > { %4261 = vmatpush3.bf16.xpose.msra.mxu1 %v962_v20  ;;  %4262 = vmatprep.mubr.msk.bf16.mxu1 %vm4963_vm0, %v4962_v49 }
 0x1ea   : > { %4272 = vmatprep.subr.bf16.mxu1 %v4962_v49 }
 0x1f0   : > { %4263 = vmatmul.mubr.bf16.vlgmr.msra.gmra.mrb[52].mxu1 %v946_v63 }
 0x1f1   : > { %4273 = vmatpush3.bf16.msra.mxu1 %v1879_v2  ;;  %4274 = vmatprep.mubr.msk.bf16.mxu1 %vm4963_vm0, %v4962_v49 }
 0x1f2   : > { %4284 = vmatprep.subr.bf16.mxu1 %v4962_v49 }
 0x27b   : > { %v997_v3 = vpop.f32.mrb[16].mxu1 }
 0x27c   : > { %v5484_v5 = vmul.f32 0.088388346, %v997_v3  ;;  %v4174_v7 = vpop.f32.mrb[17].mxu1 }
 0x27d   : > { %v1000_v9 = vpop.f32.mrb[18].mxu1 }
 0x27e   : > { %v4175_v11 = vpop.f32.mrb[19].mxu1  ;;  %v1620_v28 = vsel %vm1619_vm2, %v5484_v5, -inf }
 0x27f   : > { %1621 = vmax.xlane.f32.xlu0 %v1620_v28 }
 0x283   : > { %v1037_v12 = vpop.f32.mrb[20].mxu1 }
 0x284   : > { %v5488_v13 = vmul.f32 0.088388346, %v1037_v12  ;;  %v4180_v15 = vpop.f32.mrb[21].mxu1 }
 0x285   : > { %v1040_v42 = vpop.f32.mrb[22].mxu1 }
 0x286   : > { %v4181_v17 = vpop.f32.mrb[23].mxu1  ;;  %v1623_v21 = vsel %vm1619_vm2, %v5488_v13, -inf }
 0x287   : > { %1624 = vmax.xlane.f32.xlu0 %v1623_v21 }
 0x28b   : > { %v1077_v22 = vpop.f32.mrb[24].mxu1  ;;  %v1157_v23 = vpop.f32.mrb[32].mxu0 }
 0x28c   : > { %v5492_v24 = vmul.f32 0.088388346, %v1077_v22  ;;  %v5494_v25 = vmul.f32 0.088388346, %v1157_v23  ;;  %v4186_v26 = vpop.f32.mrb[25].mxu1  ;;  %v4198_v27 = vpop.f32.mrb[33].mxu0 }
 0x28d   : > { %v1080_v18 = vpop.f32.mrb[26].mxu1  ;;  %v1160_v29 = vpop.f32.mrb[34].mxu0 }
 0x28e   : > { %v4187_v32 = vpop.f32.mrb[27].mxu1  ;;  %v4199_v35 = vpop.f32.mrb[35].mxu0  ;;  %v1632_v36 = vsel %vm1619_vm2, %v5494_v25, -inf  ;;  %v1626_v38 = vsel %vm1619_vm2, %v5492_v24, -inf }
 0x28f   : > { %1633 = vmax.xlane.f32.xlu0 %v1632_v36  ;;  %1627 = vmax.xlane.f32.xlu1 %v1626_v38 }
 0x293   : > { %v1117_v39 = vpop.f32.mrb[28].mxu1  ;;  %v1237_v19 = vpop.f32.mrb[36].mxu0 }
 0x294   : > { %v5500_v41 = vmul.f32 0.088388346, %v1117_v39  ;;  %v5502_v43 = vmul.f32 0.088388346, %v1237_v19  ;;  %v4192_v14 = vpop.f32.mrb[29].mxu1  ;;  %v4210_v44 = vpop.f32.mrb[37].mxu0 }
 0x295   : > { %v1120_v45 = vpop.f32.mrb[30].mxu1  ;;  %v1240_v47 = vpop.f32.mrb[38].mxu0 }
 0x296   : > { %v4193_v46 = vpop.f32.mrb[31].mxu1  ;;  %v1638_v50 = vsel %vm1619_vm2, %v5502_v43, -inf  ;;  %v1629_v52 = vsel %vm1619_vm2, %v5500_v41, -inf  ;;  %v4211_v56 = vpop.f32.mrb[39].mxu0 }
 0x297   : > { %1639 = vmax.xlane.f32.xlu0 %v1638_v50  ;;  %1630 = vmax.xlane.f32.xlu1 %v1629_v52 }
 0x29b   : > { %v1197_v53 = vpop.f32.mrb[32].mxu1  ;;  %v1317_v58 = vpop.f32.mrb[40].mxu0 }
 0x29c   : > { %v5508_v59 = vmul.f32 0.088388346, %v1197_v53  ;;  %v5510_v60 = vmul.f32 0.088388346, %v1317_v58  ;;  %v4204_v62 = vpop.f32.mrb[33].mxu1  ;;  %v4222_v20 = vpop.f32.mrb[41].mxu0 }
 0x29d   : > { %v1200_v48 = vpop.f32.mrb[34].mxu1  ;;  %v1320_v63 = vpop.f32.mrb[42].mxu0 }
 0x29e   : > { %v4205_v2 = vpop.f32.mrb[35].mxu1  ;;  %v1644_v3 = vsel %vm1619_vm2, %v5510_v60, -inf  ;;  %v1635_v7 = vsel %vm1619_vm2, %v5508_v59, -inf  ;;  %v4223_v9 = vpop.f32.mrb[43].mxu0 }
 0x29f   : > { %1645 = vmax.xlane.f32.xlu0 %v1644_v3  ;;  %1636 = vmax.xlane.f32.xlu1 %v1635_v7 }
 0x2a3   : > { %v1277_v11 = vpop.f32.mrb[36].mxu1  ;;  %v1397_v28 = vpop.f32.mrb[44].mxu0 }
 0x2a4   : > { %v5516_v12 = vmul.f32 0.088388346, %v1277_v11  ;;  %v5518_v15 = vmul.f32 0.088388346, %v1397_v28  ;;  %v4216_v42 = vpop.f32.mrb[37].mxu1  ;;  %v4234_v17 = vpop.f32.mrb[45].mxu0 }
 0x2a5   : > { %v1280_v21 = vpop.f32.mrb[38].mxu1  ;;  %v1400_v22 = vpop.f32.mrb[46].mxu0 }
 0x2a6   : > { %v1650_v23 = vsel %vm1619_vm2, %v5518_v15, -inf  ;;  %v1641_v26 = vsel %vm1619_vm2, %v5516_v12, -inf  ;;  %v4217_v27 = vpop.f32.mrb[39].mxu1  ;;  %v4235_v18 = vpop.f32.mrb[47].mxu0 }
 0x2a7   : > { %1651 = vmax.xlane.f32.xlu0 %v1650_v23  ;;  %1642 = vmax.xlane.f32.xlu1 %v1641_v26 }
 0x2ab   : > { %v1357_v29 = vpop.f32.mrb[40].mxu1  ;;  %v1477_v32 = vpop.f32.mrb[48].mxu0 }
 0x2ac   : > { %v5524_v35 = vmul.f32 0.088388346, %v1357_v29  ;;  %v5526_v36 = vmul.f32 0.088388346, %v1477_v32  ;;  %v4228_v38 = vpop.f32.mrb[41].mxu1  ;;  %v4246_v39 = vpop.f32.mrb[49].mxu0 }
 0x2ad   : > { %v1360_v19 = vpop.f32.mrb[42].mxu1  ;;  %v1480_v14 = vpop.f32.mrb[50].mxu0 }
 0x2ae   : > { %v1656_v44 = vsel %vm1619_vm2, %v5526_v36, -inf  ;;  %v1647_v45 = vsel %vm1619_vm2, %v5524_v35, -inf  ;;  %v4229_v47 = vpop.f32.mrb[43].mxu1  ;;  %v4247_v46 = vpop.f32.mrb[51].mxu0 }
 0x2af   : > { %1657 = vmax.xlane.f32.xlu0 %v1656_v44  ;;  %1648 = vmax.xlane.f32.xlu1 %v1647_v45 }
 0x2b3   : > { %v1437_v50 = vpop.f32.mrb[44].mxu1  ;;  %v1557_v52 = vpop.f32.mrb[52].mxu0 }
 0x2b4   : > { %v5532_v56 = vmul.f32 0.088388346, %v1437_v50  ;;  %v5534_v53 = vmul.f32 0.088388346, %v1557_v52  ;;  %v4240_v58 = vpop.f32.mrb[45].mxu1  ;;  %v4258_v62 = vpop.f32.mrb[53].mxu0 }
 0x2b5   : > { %v1440_v20 = vpop.f32.mrb[46].mxu1  ;;  %v1560_v48 = vpop.f32.mrb[54].mxu0 }
 0x2b6   : > { %v1662_v63 = vsel %vm1619_vm2, %v5534_v53, -inf  ;;  %v1653_v2 = vsel %vm1619_vm2, %v5532_v56, -inf  ;;  %v4241_v3 = vpop.f32.mrb[47].mxu1  ;;  %v4259_v7 = vpop.f32.mrb[55].mxu0 }
 0x2b7   : > { %1663 = vmax.xlane.f32.xlu0 %v1662_v63  ;;  %1654 = vmax.xlane.f32.xlu1 %v1653_v2 }
 0x2bb   : > { %v1517_v9 = vpop.f32.mrb[48].mxu1 }
 0x2bc   : > { %v5540_v11 = vmul.f32 0.088388346, %v1517_v9  ;;  %v4252_v28 = vpop.f32.mrb[49].mxu1 }
 0x2bd   : > { %v1520_v42 = vpop.f32.mrb[50].mxu1 }
 0x2be   : > { %v1659_v17 = vsel %vm1619_vm2, %v5540_v11, -inf  ;;  %v4253_v21 = vpop.f32.mrb[51].mxu1 }
 0x2bf   : > { %1660 = vmax.xlane.f32.xlu1 %v1659_v17 }
 0x2c3   : > { %v1597_v22 = vpop.f32.mrb[52].mxu1 }
 0x2c4   : > { %v5544_v23 = vmul.f32 0.088388346, %v1597_v22  ;;  %v4264_v26 = vpop.f32.mrb[53].mxu1 }
 0x2c5   : > { %v1600_v27 = vpop.f32.mrb[54].mxu1 }
 0x2c6   : > { %v1665_v18 = vsel %vm1619_vm2, %v5544_v23, -inf  ;;  %v4265_v29 = vpop.f32.mrb[55].mxu1 }
 0x2c7   : > { %1666 = vmax.xlane.f32.xlu1 %v1665_v18 }
 0x30c   : > { %v1622_v32 = vpop.xlane.xlu0 %1621 }
 0x30d   : > { %v1668_v38 = vsub.f32 %v5484_v5, %v1622_v32 }
 0x30f   : > { %v1684_v39 = vmul.f32 1.442695, %v1668_v38 }
 0x311   : > { %4588 = vpow2.f32 %v1684_v39 }
 0x314   : > { %v1625_v19 = vpop.xlane.xlu0 %1624 }
 0x315   : > { %v1669_v14 = vsub.f32 %v5488_v13, %v1625_v19 }
 0x317   : > { %v1686_v44 = vmul.f32 1.442695, %v1669_v14 }
 0x319   : > { %4590 = vpow2.f32 %v1686_v44 }
 0x31b   : > { %v5550_v45 = vpop.eup %4588 }
 0x31c   : > { %v1634_v47 = vpop.xlane.xlu0 %1633  ;;  %v1628_v46 = vpop.xlane.xlu1 %1627  ;;  %v1716_v50 = vsel %vm1619_vm2, %v5550_v45, 0.0 }
 0x31d   : > { %v1672_v52 = vsub.f32 %v5494_v25, %v1634_v47  ;;  %v1670_v58 = vsub.f32 %v5492_v24, %v1628_v46  ;;  %1717 = vadd.xlane.f32.xlu0 %v1716_v50 }
 0x31f   : > { %v1688_v5 = vmul.f32 1.442695, %v1670_v58  ;;  %v1692_v62 = vmul.f32 1.442695, %v1672_v52 }
 0x321   : > { %4592 = vpow2.f32 %v1688_v5 }
 0x322   : > { %4594 = vpow2.f32 %v1692_v62 }
 0x323   : > { %v5556_v20 = vpop.eup %4590 }
 0x324   : > { %v1640_v13 = vpop.xlane.xlu0 %1639  ;;  %v1631_v48 = vpop.xlane.xlu1 %1630  ;;  %v1719_v63 = vsel %vm1619_vm2, %v5556_v20, 0.0 }
 0x325   : > { %v1674_v2 = vsub.f32 %v5502_v43, %v1640_v13  ;;  %v1671_v3 = vsub.f32 %v5500_v41, %v1631_v48  ;;  %1720 = vadd.xlane.f32.xlu1 %v1719_v63 }
 0x327   : > { %v1696_v25 = vmul.f32 1.442695, %v1674_v2  ;;  %v1690_v7 = vmul.f32 1.442695, %v1671_v3 }
 0x329   : > { %4596 = vpow2.f32 %v1696_v25 }
 0x32a   : > { %4598 = vpow2.f32 %v1690_v7 }
 0x32b   : > { %v5562_v24 = vpop.eup %4592 }
 0x32c   : > { %v1646_v9 = vpop.xlane.xlu0 %1645  ;;  %v1637_v28 = vpop.xlane.xlu1 %1636  ;;  %v1722_v21 = vsel %vm1619_vm2, %v5562_v24, 0.0 }
 0x32d   : > { %v1676_v42 = vsub.f32 %v5510_v60, %v1646_v9  ;;  %v1673_v17 = vsub.f32 %v5508_v59, %v1637_v28  ;;  %v5568_v22 = vpop.eup %4594  ;;  %1723 = vadd.xlane.f32.xlu0 %v1722_v21 }
 0x32e   : > { %v1728_v26 = vsel %vm1619_vm2, %v5568_v22, 0.0 }
 0x32f   : > { %v1700_v41 = vmul.f32 1.442695, %v1676_v42  ;;  %v1694_v43 = vmul.f32 1.442695, %v1673_v17 }
 0x331   : > { %4600 = vpow2.f32 %v1700_v41  ;;  %1729 = vadd.xlane.f32.xlu0 %v1728_v26 }
 0x332   : > { %4602 = vpow2.f32 %v1694_v43 }
 0x333   : > { %v5572_v27 = vpop.eup %4596 }
 0x334   : > { %v5574_v18 = vpop.eup %4598  ;;  %v1652_v60 = vpop.xlane.xlu0 %1651  ;;  %v1734_v29 = vsel %vm1619_vm2, %v5572_v27, 0.0 }
 0x335   : > { %v1643_v59 = vpop.xlane.xlu1 %1642  ;;  %v1678_v32 = vsub.f32 %v5518_v15, %v1652_v60  ;;  %v1725_v39 = vsel %vm1619_vm2, %v5574_v18, 0.0  ;;  %1735 = vadd.xlane.f32.xlu0 %v1734_v29 }
 0x336   : > { %v1675_v38 = vsub.f32 %v5516_v12, %v1643_v59  ;;  %1726 = vadd.xlane.f32.xlu1 %v1725_v39 }
 0x337   : > { %v1704_v19 = vmul.f32 1.442695, %v1678_v32 }
 0x338   : > { %v1698_v14 = vmul.f32 1.442695, %v1675_v38 }
 0x339   : > { %4604 = vpow2.f32 %v1704_v19 }
 0x33a   : > { %4606 = vpow2.f32 %v1698_v14 }
 0x33b   : > { %v5582_v44 = vpop.eup %4600 }
 0x33c   : > { %v5584_v47 = vpop.eup %4602  ;;  %v1658_v46 = vpop.xlane.xlu0 %1657  ;;  %v1740_v15 = vsel %vm1619_vm2, %v5582_v44, 0.0 }
 0x33d   : > { %v1649_v50 = vpop.xlane.xlu1 %1648  ;;  %v1680_v12 = vsub.f32 %v5526_v36, %v1658_v46  ;;  %1741 = vadd.xlane.f32.xlu0 %v1740_v15  ;;  %v1731_v58 = vsel %vm1619_vm2, %v5584_v47, 0.0 }
 0x33e   : > { %v1677_v52 = vsub.f32 %v5524_v35, %v1649_v50  ;;  %1732 = vadd.xlane.f32.xlu1 %v1731_v58 }
 0x33f   : > { %v1708_v5 = vmul.f32 1.442695, %v1680_v12 }
 0x340   : > { %v1702_v62 = vmul.f32 1.442695, %v1677_v52 }
 0x341   : > { %4608 = vpow2.f32 %v1708_v5 }
 0x342   : > { %4610 = vpow2.f32 %v1702_v62 }
 0x343   : > { %v5592_v13 = vpop.eup %4604 }
 0x344   : > { %v5594_v48 = vpop.eup %4606  ;;  %v1664_v63 = vpop.xlane.xlu0 %1663  ;;  %v1746_v36 = vsel %vm1619_vm2, %v5592_v13, 0.0 }
 0x345   : > { %v1655_v2 = vpop.xlane.xlu1 %1654  ;;  %v1682_v35 = vsub.f32 %v5534_v53, %v1664_v63  ;;  %1747 = vadd.xlane.f32.xlu0 %v1746_v36  ;;  %v1737_v25 = vsel %vm1619_vm2, %v5594_v48, 0.0 }
 0x346   : > { %v1679_v3 = vsub.f32 %v5532_v56, %v1655_v2  ;;  %1738 = vadd.xlane.f32.xlu1 %v1737_v25 }
 0x347   : > { %v1712_v7 = vmul.f32 1.442695, %v1682_v35 }
 0x348   : > { %v1706_v9 = vmul.f32 1.442695, %v1679_v3 }
 0x349   : > { %4612 = vpow2.f32 %v1712_v7 }
 0x34a   : > { %4614 = vpow2.f32 %v1706_v9 }
 0x34b   : > { %v5602_v28 = vpop.eup %4608 }
 0x34c   : > { %v5604_v42 = vpop.eup %4610  ;;  %v1661_v17 = vpop.xlane.xlu1 %1660  ;;  %v1752_v21 = vsel %vm1619_vm2, %v5602_v28, 0.0 }
 0x34d   : > { %v1681_v53 = vsub.f32 %v5540_v11, %v1661_v17  ;;  %1753 = vadd.xlane.f32.xlu0 %v1752_v21  ;;  %v1743_v56 = vsel %vm1619_vm2, %v5604_v42, 0.0 }
 0x34e   : > { %1744 = vadd.xlane.f32.xlu1 %v1743_v56 }
 0x34f   : > { %v1710_v41 = vmul.f32 1.442695, %v1681_v53 }
 0x351   : > { %4616 = vpow2.f32 %v1710_v41 }
 0x353   : > { %v5611_v43 = vpop.eup %4612 }
 0x354   : > { %v5613_v26 = vpop.eup %4614  ;;  %v1667_v60 = vpop.xlane.xlu1 %1666  ;;  %v1758_v59 = vsel %vm1619_vm2, %v5611_v43, 0.0 }
 0x355   : > { %v1683_v29 = vsub.f32 %v5544_v23, %v1667_v60  ;;  %1759 = vadd.xlane.f32.xlu0 %v1758_v59  ;;  %v1749_v11 = vsel %vm1619_vm2, %v5613_v26, 0.0 }
 0x356   : > { %1750 = vadd.xlane.f32.xlu1 %v1749_v11 }
 0x357   : > { %v1714_v32 = vmul.f32 1.442695, %v1683_v29 }
 0x359   : > { %4618 = vpow2.f32 %v1714_v32 }
 0x35b   : > { %v5620_v38 = vpop.eup %4616 }
 0x35c   : > { %v1755_v39 = vsel %vm1619_vm2, %v5620_v38, 0.0 }
 0x35d   : > { %1756 = vadd.xlane.f32.xlu1 %v1755_v39 }
 0x363   : > { %v5624_v19 = vpop.eup %4618 }
 0x364   : > { %v1761_v14 = vsel %vm1619_vm2, %v5624_v19, 0.0 }
 0x365   : > { %1762 = vadd.xlane.f32.xlu1 %v1761_v14 }
 0x3aa   : > { %v1718_v23 = vpop.xlane.xlu0 %1717 }
 0x3ab   : > { %4620 = vrcp.f32 %v1718_v23 }
 0x3b2   : > { %v1721_v46 = vpop.xlane.xlu1 %1720 }
 0x3b3   : > { %4622 = vrcp.f32 %v1721_v46 }
 0x3b5   : > { %v4621_v50 = vpop.eup %4620 }
 0x3b6   : > { %v1780_v15 = vmul.f32 %v4621_v50, %v5550_v45 }
 0x3b8   : > { %v1796_v12 = vpack.c.bf16 %v1780_v15, %v1780_v15 }
 0x3ba   : > { %4269 = vmatmul.mubr.msk.bf16.vlgmr.msra.gmra.mrb[56].mxu0 %vm1619_vm2, %v1796_v12  ;;  %v1724_v52 = vpop.xlane.xlu0 %1723 }
 0x3bb   : > { %4279 = vmatpush3.bf16.msra.mxu0 %v5343_v30  ;;  %4280 = vmatprep.mubr.msk.bf16.mxu0 %vm4963_vm0, %v4962_v49  ;;  %4624 = vrcp.f32 %v1724_v52 }
 0x3bc   : > { %4290 = vmatprep.subr.bf16.mxu0 %v4962_v49 }
 0x3bd   : > { %v4623_v58 = vpop.eup %4622 }
 0x3be   : > { %v1781_v5 = vmul.f32 %v4623_v58, %v5556_v20  ;;  %v1730_v62 = vpop.xlane.xlu0 %1729 }
 0x3bf   : > { %4626 = vrcp.f32 %v1730_v62 }
 0x3c0   : > { %v1797_v63 = vpack.c.bf16 %v1781_v5, %v1781_v5 }
 0x3c2   : > { %4275 = vmatmul.mubr.msk.bf16.vlgmr.msra.gmra.mrb[56].mxu1 %vm1619_vm2, %v1797_v63  ;;  %v1736_v30 = vpop.xlane.xlu0 %1735  ;;  %v4541_v63 = vld [vmem:[#allocation7 + $0x8] sm:$0xff]  }
 0x3c3   : > { %4285 = vmatpush3.bf16.msra.mxu1 %v5350_v33  ;;  %v1727_v45 = vpop.xlane.xlu1 %1726  ;;  %4286 = vmatprep.mubr.msk.bf16.mxu1 %vm4963_vm0, %v4962_v49 }
 0x3c4   : > { %4296 = vmatprep.subr.bf16.mxu1 %v4962_v49  ;;  %4628 = vrcp.f32 %v1727_v45  ;;  %v4543_v45 = vld [vmem:[#allocation7 + $0x18] sm:$0xff]  }
 0x3c5   : > { %v4625_v2 = vpop.eup %4624  ;;  %4630 = vrcp.f32 %v1736_v30  ;;  %v4544_v30 = vld [vmem:[#allocation7 + $0x20] sm:$0xff]  }
 0x3c6   : > { %v1782_v36 = vmul.f32 %v4625_v2, %v5562_v24 }
 0x3c8   : > { %v1798_v20 = vpack.c.bf16 %v1782_v36, %v1782_v36 }
 0x3c9   : > { %v4627_v35 = vpop.eup %4626 }
 0x3ca   : > { %4281 = vmatmul.mubr.msk.bf16.vlgmr.msra.gmra.mrb[60].mxu0 %vm1619_vm2, %v1798_v20  ;;  %v1784_v33 = vmul.f32 %v4627_v35, %v5568_v22  ;;  %v1742_v25 = vpop.xlane.xlu0 %1741 }
 0x3cb   : > { %v1733_v3 = vpop.xlane.xlu1 %1732  ;;  %4291 = vmatpush3.bf16.msra.mxu0 %v5366_v1  ;;  %4292 = vmatprep.mubr.msk.bf16.mxu0 %vm4963_vm0, %v4962_v49 }
 0x3cc   : > { %4632 = vrcp.f32 %v1733_v3  ;;  %4302 = vmatprep.subr.bf16.mxu0 %v4962_v49  ;;  %v1800_v9 = vpack.c.bf16 %v1784_v33, %v1784_v33 }
 0x3cd   : > { %4634 = vrcp.f32 %v1742_v25 }
 0x3ce   : > { %v4629_v7 = vpop.eup %4628 }
 0x3cf   : > { %v1783_v24 = vmul.f32 %v4629_v7, %v5574_v18  ;;  %v4631_v17 = vpop.eup %4630 }
 0x3d0   : > { %v1786_v1 = vmul.f32 %v4631_v17, %v5572_v27 }
 0x3d1   : > { %v1799_v21 = vpack.c.bf16 %v1783_v24, %v1783_v24 }
 0x3d2   : > { %4293 = vmatmul.mubr.msk.bf16.vlgmr.msra.gmra.mrb[64].mxu0 %vm1619_vm2, %v1800_v9  ;;  %v1748_v22 = vpop.xlane.xlu0 %1747 }
 0x3d3   : > { %v1739_v53 = vpop.xlane.xlu1 %1738  ;;  %4303 = vmatpush3.bf16.msra.mxu0 %v5363_v61  ;;  %4287 = vmatmul.mubr.msk.bf16.vlgmr.msra.gmra.mrb[60].mxu1 %vm1619_vm2, %v1799_v21  ;;  %v1802_v61 = vpack.c.bf16 %v1786_v1, %v1786_v1 }
 0x3d4   : > { %4636 = vrcp.f32 %v1739_v53  ;;  %4297 = vmatpush3.bf16.msra.mxu1 %v5381_v8  ;;  %4298 = vmatprep.mubr.msk.bf16.mxu1 %vm4963_vm0, %v4962_v49 }
 0x3d5   : > { %4304 = vmatprep.mubr.msk.bf16.mxu0 %vm4963_vm0, %v4962_v49  ;;  %4308 = vmatprep.subr.bf16.mxu1 %v4962_v49  ;;  %4638 = vrcp.f32 %v1748_v22 }
 0x3d6   : > { %v4633_v18 = vpop.eup %4632  ;;  %4314 = vmatprep.subr.bf16.mxu0 %v4962_v49 }
 0x3d7   : > { %v1785_v56 = vmul.f32 %v4633_v18, %v5584_v47  ;;  %v4635_v27 = vpop.eup %4634 }
 0x3d8   : > { %v1788_v60 = vmul.f32 %v4635_v27, %v5582_v44 }
 0x3d9   : > { %v1801_v41 = vpack.c.bf16 %v1785_v56, %v1785_v56 }
 0x3da   : > { %4305 = vmatmul.mubr.msk.bf16.vlgmr.msra.gmra.mrb[68].mxu0 %vm1619_vm2, %v1802_v61  ;;  %v1754_v59 = vpop.xlane.xlu0 %1753 }
 0x3db   : > { %v1745_v8 = vpop.xlane.xlu1 %1744  ;;  %4315 = vmatpush3.bf16.msra.mxu0 %v5395_v34  ;;  %4299 = vmatmul.mubr.msk.bf16.vlgmr.msra.gmra.mrb[64].mxu1 %vm1619_vm2, %v1801_v41  ;;  %v1804_v34 = vpack.c.bf16 %v1788_v60, %v1788_v60 }
 0x3dc   : > { %4640 = vrcp.f32 %v1745_v8  ;;  %4309 = vmatpush3.bf16.msra.mxu1 %v5375_v4  ;;  %4310 = vmatprep.mubr.msk.bf16.mxu1 %vm4963_vm0, %v4962_v49 }
 0x3dd   : > { %4316 = vmatprep.mubr.msk.bf16.mxu0 %vm4963_vm0, %v4962_v49  ;;  %4320 = vmatprep.subr.bf16.mxu1 %v4962_v49  ;;  %4642 = vrcp.f32 %v1754_v59 }
 0x3de   : > { %v4637_v47 = vpop.eup %4636  ;;  %4326 = vmatprep.subr.bf16.mxu0 %v4962_v49 }
 0x3df   : > { %v1787_v29 = vmul.f32 %v4637_v47, %v5594_v48  ;;  %v4639_v44 = vpop.eup %4638 }
 0x3e0   : > { %v1790_v32 = vmul.f32 %v4639_v44, %v5592_v13 }
 0x3e1   : > { %v1803_v11 = vpack.c.bf16 %v1787_v29, %v1787_v29 }
 0x3e2   : > { %4317 = vmatmul.mubr.msk.bf16.vlgmr.msra.gmra.mrb[72].mxu0 %vm1619_vm2, %v1804_v34  ;;  %v1760_v39 = vpop.xlane.xlu0 %1759  ;;  %v1806_v23 = vpack.c.bf16 %v1790_v32, %v1790_v32 }
 0x3e3   : > { %v1751_v4 = vpop.xlane.xlu1 %1750  ;;  %4327 = vmatpush3.bf16.msra.mxu0 %v5392_v31  ;;  %4311 = vmatmul.mubr.msk.bf16.vlgmr.msra.gmra.mrb[68].mxu1 %vm1619_vm2, %v1803_v11 }
 0x3e4   : > { %4644 = vrcp.f32 %v1751_v4  ;;  %4321 = vmatpush3.bf16.msra.mxu1 %v5410_v40  ;;  %4322 = vmatprep.mubr.msk.bf16.mxu1 %vm4963_vm0, %v4962_v49 }
 0x3e5   : > { %4328 = vmatprep.mubr.msk.bf16.mxu0 %vm4963_vm0, %v4962_v49  ;;  %4332 = vmatprep.subr.bf16.mxu1 %v4962_v49  ;;  %4646 = vrcp.f32 %v1760_v39 }
 0x3e6   : > { %v4641_v48 = vpop.eup %4640  ;;  %4338 = vmatprep.subr.bf16.mxu0 %v4962_v49 }
 0x3e7   : > { %v1789_v14 = vmul.f32 %v4641_v48, %v5604_v42  ;;  %v4643_v13 = vpop.eup %4642 }
 0x3e8   : > { %v1792_v40 = vmul.f32 %v4643_v13, %v5602_v28 }
 0x3e9   : > { %v1805_v31 = vpack.c.bf16 %v1789_v14, %v1789_v14 }
 0x3ea   : > { %v1757_v46 = vpop.xlane.xlu1 %1756  ;;  %4329 = vmatmul.mubr.msk.bf16.vlgmr.msra.gmra.mrb[76].mxu0 %vm1619_vm2, %v1806_v23  ;;  %v1808_v12 = vpack.c.bf16 %v1792_v40, %v1792_v40 }
 0x3eb   : > { %4648 = vrcp.f32 %v1757_v46  ;;  %4323 = vmatmul.mubr.msk.bf16.vlgmr.msra.gmra.mrb[72].mxu1 %vm1619_vm2, %v1805_v31  ;;  %4339 = vmatpush3.bf16.msra.mxu0 %v5424_v10 }
 0x3ec   : > { %4333 = vmatpush3.bf16.msra.mxu1 %v5404_v37  ;;  %4334 = vmatprep.mubr.msk.bf16.mxu1 %vm4963_vm0, %v4962_v49  ;;  %v4540_v37 = vld [vmem:[#allocation7] sm:$0xff]  }
 0x3ed   : > { %4340 = vmatprep.mubr.msk.bf16.mxu0 %vm4963_vm0, %v4962_v49  ;;  %4344 = vmatprep.subr.bf16.mxu1 %v4962_v49 }
 0x3ee   : > { %v4645_v42 = vpop.eup %4644  ;;  %4350 = vmatprep.subr.bf16.mxu0 %v4962_v49 }
 0x3ef   : > { %v1791_v50 = vmul.f32 %v4645_v42, %v5613_v26  ;;  %v4647_v10 = vpop.eup %4646 }
 0x3f0   : > { %v1794_v58 = vmul.f32 %v4647_v10, %v5611_v43 }
 0x3f1   : > { %v1807_v15 = vpack.c.bf16 %v1791_v50, %v1791_v50 }
 0x3f2   : > { %v1763_v52 = vpop.xlane.xlu1 %1762  ;;  %4341 = vmatmul.mubr.msk.bf16.vlgmr.msra.gmra.mrb[80].mxu0 %vm1619_vm2, %v1808_v12  ;;  %v1810_v62 = vpack.c.bf16 %v1794_v58, %v1794_v58 }
 0x3f3   : > { %4650 = vrcp.f32 %v1763_v52  ;;  %4335 = vmatmul.mubr.msk.bf16.vlgmr.msra.gmra.mrb[76].mxu1 %vm1619_vm2, %v1807_v15  ;;  %4351 = vmatpush3.bf16.msra.mxu0 %v5421_v6 }
 0x3f4   : > { %4345 = vmatpush3.bf16.msra.mxu1 %v5439_v16  ;;  %4346 = vmatprep.mubr.msk.bf16.mxu1 %vm4963_vm0, %v4962_v49 }
 0x3f5   : > { %v4649_v28 = vpop.eup %4648  ;;  %4352 = vmatprep.mubr.msk.bf16.mxu0 %vm4963_vm0, %v4962_v49  ;;  %4356 = vmatprep.subr.bf16.mxu1 %v4962_v49 }
 0x3f6   : > { %v1793_v26 = vmul.f32 %v4649_v28, %v5620_v38  ;;  %4362 = vmatprep.subr.bf16.mxu0 %v4540_v37  ;;  %v4542_v38 = vld [vmem:[#allocation7 + $0x10] sm:$0xff]  }
 0x3f8   : > { %v1809_v5 = vpack.c.bf16 %v1793_v26, %v1793_v26 }
 0x3fa   : > { %4353 = vmatmul.mubr.msk.bf16.vlgmr.msra.gmra.mrb[84].mxu0 %vm1619_vm2, %v1810_v62 }
 0x3fb   : > { %4347 = vmatmul.mubr.msk.bf16.vlgmr.msra.gmra.mrb[80].mxu1 %vm1619_vm2, %v1809_v5  ;;  %4363 = vmatpush3.bf16.msra.mxu0 %v4540_v37 }
 0x3fc   : > { %4357 = vmatpush3.bf16.msra.mxu1 %v5433_v54  ;;  %4358 = vmatprep.mubr.msk.bf16.mxu1 %vm4963_vm0, %v4962_v49  ;;  %v4545_v54 = vld [vmem:[#allocation7 + $0x28] sm:$0xff]   ;;  %v4546_v49 = vld [vmem:[#allocation7 + $0x30] sm:$0xff]  }
 0x3fd   : > { %v4651_v6 = vpop.eup %4650  ;;  %4364 = vmatprep.subr.bf16.mxu0 %v4541_v63 }
 0x3fe   : > { %v1795_v16 = vmul.f32 %v4651_v6, %v5624_v19  ;;  %v4547_v19 = vld [vmem:[#allocation7 + $0x38] sm:$0xff]  }
 0x3ff   : > { %4365 = vmatpush3.bf16.msra.mxu0 %v4541_v63 }
 0x400   : > { %v1811_v43 = vpack.c.bf16 %v1795_v16, %v1795_v16  ;;  %4366 = vmatprep.subr.bf16.mxu0 %v4542_v38 }
 0x403   : > { %4359 = vmatmul.mubr.msk.bf16.vlgmr.msra.gmra.mrb[84].mxu1 %vm1619_vm2, %v1811_v43  ;;  %4367 = vmatpush3.bf16.msra.mxu0 %v4542_v38 }
 0x404   : > { %3128 = vmatprep.mubr.bf16.mxu1 %v4961_v0  ;;  %4368 = vmatprep.subr.bf16.mxu0 %v4543_v45 }
 0x407   : > { %4369 = vmatpush3.bf16.msra.mxu0 %v4543_v45 }
 0x408   : > { %4370 = vmatprep.subr.bf16.mxu0 %v4544_v30 }
 0x40b   : > { %4371 = vmatpush3.bf16.msra.mxu0 %v4544_v30 }
 0x40c   : > { %4372 = vmatprep.subr.bf16.mxu0 %v4545_v54 }
 0x40f   : > { %4373 = vmatpush3.bf16.msra.mxu0 %v4545_v54 }
 0x410   : > { %4374 = vmatprep.subr.bf16.mxu0 %v4546_v49 }
 0x413   : > { %4375 = vmatpush3.bf16.msra.mxu0 %v4546_v49 }
 0x414   : > { %4376 = vmatprep.subr.bf16.mxu0 %v4547_v19 }
 0x417   : > { %4377 = vmatpush3.bf16.msra.mxu0 %v4547_v19 }
 0x48d   : > { %v1869_v2 = vpop.f32.mrb[56].mxu0 }
 0x48e   : > { %v4270_v36 = vpop.f32.mrb[57].mxu0 }
 0x48f   : > { %v1872_v20 = vpop.f32.mrb[58].mxu0 }
 0x490   : > { %v4271_v35 = vpop.f32.mrb[59].mxu0 }
 0x495   : > { %v1915_v3 = vpop.f32.mrb[56].mxu1 }
 0x496   : > { %v2565_v33 = vpack.c.bf16 %v1915_v3, %v1869_v2  ;;  %v4276_v25 = vpop.f32.mrb[57].mxu1 }
 0x497   : > { %v1918_v7 = vpop.f32.mrb[58].mxu1 }
 0x498   : > { %v4277_v24 = vpop.f32.mrb[59].mxu1  ;;  %4378 = vmatprep.mubr.bf16.mxu0 %v2565_v33 }
 0x49d   : > { %v1961_v9 = vpop.f32.mrb[60].mxu0 }
 0x49e   : > { %v4282_v17 = vpop.f32.mrb[61].mxu0 }
 0x49f   : > { %v1964_v21 = vpop.f32.mrb[62].mxu0 }
 0x4a0   : > { %v4283_v53 = vpop.f32.mrb[63].mxu0 }
 0x4a1   : > { %v5718_v53 = vld [vmem:[%s6374_s4] ss:$0 sm:$0xff] }
 0x4a5   : > { %v2053_v1 = vpop.f32.mrb[64].mxu0 }
 0x4a6   : > { %v2007_v22 = vpop.f32.mrb[60].mxu1  ;;  %v4294_v18 = vpop.f32.mrb[65].mxu0 }
 0x4a7   : > { %v2566_v56 = vpack.c.bf16 %v2007_v22, %v1961_v9  ;;  %v4288_v61 = vpop.f32.mrb[61].mxu1  ;;  %v2056_v41 = vpop.f32.mrb[66].mxu0 }
 0x4a8   : > { %v2010_v27 = vpop.f32.mrb[62].mxu1  ;;  %v4295_v8 = vpop.f32.mrb[67].mxu0 }
 0x4a9   : > { %v4289_v60 = vpop.f32.mrb[63].mxu1  ;;  %4379 = vmatmul.mubr.bf16.vlgmr.msra.gmra.mrb[88].mxu0 %v2566_v56  ;;  %v4716_v8 = vld [vmem:[%s5257_s25] sm:$0xff] }
 0x4ad   : > { %v2145_v59 = vpop.f32.mrb[68].mxu0 }
 0x4ae   : > { %v2099_v47 = vpop.f32.mrb[64].mxu1  ;;  %v4306_v29 = vpop.f32.mrb[69].mxu0 }
 0x4af   : > { %v2567_v34 = vpack.c.bf16 %v2099_v47, %v2053_v1  ;;  %v4300_v11 = vpop.f32.mrb[65].mxu1  ;;  %v2148_v44 = vpop.f32.mrb[70].mxu0  ;;  %v4717_v47 = vld [vmem:[%s5257_s25 + $0x8] sm:$0xff] }
 0x4b0   : > { %v2102_v4 = vpop.f32.mrb[66].mxu1  ;;  %v4307_v32 = vpop.f32.mrb[71].mxu0  ;;  %v4719_v44 = vld [vmem:[%s5257_s25 + $0x18] sm:$0xff] }
 0x4b1   : > { %v4301_v39 = vpop.f32.mrb[67].mxu1  ;;  %4382 = vmatprep.mubr.bf16.mxu0 %v2567_v34  ;;  %v4718_v34 = vld [vmem:[%s5257_s25 + $0x10] sm:$0xff] }
 0x4b5   : > { %v2237_v48 = vpop.f32.mrb[72].mxu0 }
 0x4b6   : > { %v2191_v14 = vpop.f32.mrb[68].mxu1  ;;  %v4318_v31 = vpop.f32.mrb[73].mxu0 }
 0x4b7   : > { %v2568_v23 = vpack.c.bf16 %v2191_v14, %v2145_v59  ;;  %v4312_v13 = vpop.f32.mrb[69].mxu1  ;;  %v2240_v46 = vpop.f32.mrb[74].mxu0 }
 0x4b8   : > { %v2194_v40 = vpop.f32.mrb[70].mxu1  ;;  %v4319_v42 = vpop.f32.mrb[75].mxu0  ;;  %v4720_v46 = vld [vmem:[%s5257_s25 + $0x20] sm:$0xff] }
 0x4b9   : > { %v4313_v50 = vpop.f32.mrb[71].mxu1  ;;  %4383 = vmatmul.mubr.bf16.gmra.mrb[92].mxu0 %v2568_v23 }
 0x4ba   : > { %v4721_v50 = vld [vmem:[%s5257_s25 + $0x28] sm:$0xff] }
 0x4bd   : > { %v2329_v15 = vpop.f32.mrb[76].mxu0 }
 0x4be   : > { %v2283_v12 = vpop.f32.mrb[72].mxu1  ;;  %v4330_v10 = vpop.f32.mrb[77].mxu0 }
 0x4bf   : > { %v2569_v52 = vpack.c.bf16 %v2283_v12, %v2237_v48  ;;  %v4324_v37 = vpop.f32.mrb[73].mxu1  ;;  %v2332_v28 = vpop.f32.mrb[78].mxu0  ;;  %v4722_v12 = vld [vmem:[%s5257_s25 + $0x30] sm:$0xff] }
 0x4c0   : > { %v2286_v58 = vpop.f32.mrb[74].mxu1  ;;  %v4331_v26 = vpop.f32.mrb[79].mxu0 }
 0x4c1   : > { %v4325_v5 = vpop.f32.mrb[75].mxu1  ;;  %4386 = vmatprep.mubr.bf16.mxu0 %v2569_v52  ;;  %v4723_v52 = vld [vmem:[%s5257_s25 + $0x38] sm:$0xff] }
 0x4c5   : > { %v2421_v62 = vpop.f32.mrb[80].mxu0 }
 0x4c6   : > { %v2375_v63 = vpop.f32.mrb[76].mxu1  ;;  %v4342_v6 = vpop.f32.mrb[81].mxu0 }
 0x4c7   : > { %v2570_v16 = vpack.c.bf16 %v2375_v63, %v2329_v15  ;;  %v4336_v43 = vpop.f32.mrb[77].mxu1  ;;  %v2424_v38 = vpop.f32.mrb[82].mxu0 }
 0x4c8   : > { %v2378_v45 = vpop.f32.mrb[78].mxu1  ;;  %v4343_v30 = vpop.f32.mrb[83].mxu0 }
 0x4c9   : > { %v4337_v54 = vpop.f32.mrb[79].mxu1  ;;  %4387 = vmatmul.mubr.bf16.gmra.mrb[96].mxu0 %v2570_v16  ;;  %v4724_v16 = vld [vmem:[%s5257_s25 + $0x40] sm:$0xff]  ;;  %v4725_v45 = vld [vmem:[%s5257_s25 + $0x48] sm:$0xff] }
 0x4ca   : > { %v4726_v54 = vld [vmem:[%s5257_s25 + $0x50] sm:$0xff] }
 0x4cd   : > { %v2513_v49 = vpop.f32.mrb[84].mxu0 }
 0x4ce   : > { %v2467_v19 = vpop.f32.mrb[80].mxu1  ;;  %v4354_v2 = vpop.f32.mrb[85].mxu0 }
 0x4cf   : > { %v2571_v36 = vpack.c.bf16 %v2467_v19, %v2421_v62  ;;  %v4348_v20 = vpop.f32.mrb[81].mxu1  ;;  %v2516_v35 = vpop.f32.mrb[86].mxu0  ;;  %v4727_v19 = vld [vmem:[%s5257_s25 + $0x58] sm:$0xff] }
 0x4d0   : > { %v2470_v3 = vpop.f32.mrb[82].mxu1  ;;  %v4355_v33 = vpop.f32.mrb[87].mxu0 }
 0x4d1   : > { %v4349_v25 = vpop.f32.mrb[83].mxu1  ;;  %4390 = vmatprep.mubr.bf16.mxu0 %v2571_v36 }
 0x4d6   : > { %v2559_v7 = vpop.f32.mrb[84].mxu1 }
 0x4d7   : > { %v2572_v24 = vpack.c.bf16 %v2559_v7, %v2513_v49  ;;  %v4360_v9 = vpop.f32.mrb[85].mxu1 }
 0x4d8   : > { %v2562_v17 = vpop.f32.mrb[86].mxu1 }
 0x4d9   : > { %v4361_v21 = vpop.f32.mrb[87].mxu1  ;;  %4391 = vmatmul.mubr.bf16.gmra.mrb[100].mxu0 %v2572_v24  ;;  %v4728_v24 = vld [vmem:[%s5257_s25 + $0x60] sm:$0xff] }
 0x4da   : > { %v4729_v21 = vld [vmem:[%s5257_s25 + $0x68] sm:$0xff] }
 0x57c   : > { %v4380_v1 = vpop.f32.mrb[88].mxu0 }
 0x57d   : > { %v2678_v22 = vpop.f32.mrb[89].mxu0  ;;  %v2687_v41 = vadd.f32 %v4380_v1, %v5718_v53 }
 0x57e   : > { %v2679_v18 = vadd.f32 %v5718_v53, %v2678_v22  ;;  %v4381_v56 = vpop.f32.mrb[90].mxu0  ;;  %v4730_v22 = vld [vmem:[%s5257_s25 + $0x70] sm:$0xff] }
 0x57f   : > { %v2681_v61 = vpop.f32.mrb[91].mxu0  ;;  %v2690_v59 = vadd.f32 %v4381_v56, %v5718_v53  ;;  %v5733_v11 = vadd.f32 %v4718_v34, %v2687_v41  ;;  %v4731_v56 = vld [vmem:[%s5257_s25 + $0x78] sm:$0xff]  ;;  %v4548_v41 = vld [vmem:[#allocation8] ss:$8 sps:$4 sm:$0xff]   ;;  %s6416_s25 = sld [smem:[#allocation19_spill]] }
 0x580   : > { %v2682_v27 = vadd.f32 %v5718_v53, %v2681_v61  ;;  %v5724_v60 = vadd.f32 %v4716_v8, %v2679_v18  ;;  %v4551_v8 = vld [vmem:[#allocation8 + $0x10] ss:$8 sps:$4 sm:$0xff]  }
 0x581   : > { %v5737_v4 = vadd.f32 %v4719_v44, %v2690_v59 }
 0x582   : > { %2757 = vadd.xlane.f32.xlu0 %v5724_v60  ;;  %v5729_v29 = vadd.f32 %v4717_v47, %v2682_v27  ;;  %v4550_v27 = vld [vmem:[#allocation8 + $0x4] ss:$8 sps:$4 sm:$0xff]  }
 0x583   : > { %3096 = vmatprep.subr.bf16.mxu1 %v4550_v27  ;;  %v4568_v27 = vld [vmem:[#allocation8 + $0x64] ss:$8 sps:$4 sm:$0xff]  }
 0x584   : > { %2759 = vadd.xlane.f32.xlu1 %v5729_v29  ;;  %3097 = vmatpush1.bf16.msra.mxu1 %v4548_v41 }
 0x586   : > { %2761 = vadd.xlane.f32.xlu0 %v5733_v11 }
 0x588   : > { %2763 = vadd.xlane.f32.xlu1 %v5737_v4 }
 0x58c   : > { %v4384_v32 = vpop.f32.mrb[92].mxu0 }
 0x58d   : > { %v2694_v39 = vpop.f32.mrb[93].mxu0  ;;  %v2703_v23 = vadd.f32 %v4384_v32, %v5718_v53 }
 0x58e   : > { %v2695_v48 = vadd.f32 %v5718_v53, %v2694_v39  ;;  %v4385_v14 = vpop.f32.mrb[94].mxu0 }
 0x58f   : > { %v2697_v31 = vpop.f32.mrb[95].mxu0  ;;  %v2706_v42 = vadd.f32 %v4385_v14, %v5718_v53  ;;  %v5753_v10 = vadd.f32 %v4722_v12, %v2703_v23 }
 0x590   : > { %v2698_v13 = vadd.f32 %v5718_v53, %v2697_v31  ;;  %v5744_v40 = vadd.f32 %v4720_v46, %v2695_v48 }
 0x591   : > { %v5757_v37 = vadd.f32 %v4723_v52, %v2706_v42 }
 0x592   : > { %2765 = vadd.xlane.f32.xlu0 %v5744_v40  ;;  %v5749_v15 = vadd.f32 %v4721_v50, %v2698_v13 }
 0x594   : > { %2767 = vadd.xlane.f32.xlu1 %v5749_v15 }
 0x596   : > { %2769 = vadd.xlane.f32.xlu0 %v5753_v10 }
 0x598   : > { %2771 = vadd.xlane.f32.xlu1 %v5757_v37 }
 0x59c   : > { %v4388_v28 = vpop.f32.mrb[96].mxu0 }
 0x59d   : > { %v2710_v58 = vpop.f32.mrb[97].mxu0  ;;  %v2719_v63 = vadd.f32 %v4388_v28, %v5718_v53 }
 0x59e   : > { %v2711_v26 = vadd.f32 %v5718_v53, %v2710_v58  ;;  %v4389_v5 = vpop.f32.mrb[98].mxu0 }
 0x59f   : > { %v2713_v62 = vpop.f32.mrb[99].mxu0  ;;  %v2722_v38 = vadd.f32 %v4389_v5, %v5718_v53  ;;  %v5773_v49 = vadd.f32 %v4726_v54, %v2719_v63  ;;  %v4556_v63 = vld [vmem:[#allocation8 + $0x24] ss:$8 sps:$4 sm:$0xff]  }
 0x5a0   : > { %v2714_v6 = vadd.f32 %v5718_v53, %v2713_v62  ;;  %v5764_v43 = vadd.f32 %v4724_v16, %v2711_v26  ;;  %v4554_v16 = vld [vmem:[#allocation8 + $0x20] ss:$8 sps:$4 sm:$0xff]  }
 0x5a1   : > { %v5777_v2 = vadd.f32 %v4727_v19, %v2722_v38  ;;  %v4559_v19 = vld [vmem:[#allocation8 + $0x34] ss:$8 sps:$4 sm:$0xff]  }
 0x5a2   : > { %2773 = vadd.xlane.f32.xlu0 %v5764_v43  ;;  %v5769_v30 = vadd.f32 %v4725_v45, %v2714_v6 }
 0x5a4   : > { %2775 = vadd.xlane.f32.xlu1 %v5769_v30 }
 0x5a6   : > { %2777 = vadd.xlane.f32.xlu0 %v5773_v49 }
 0x5a8   : > { %2779 = vadd.xlane.f32.xlu1 %v5777_v2 }
 0x5ac   : > { %v4392_v36 = vpop.f32.mrb[100].mxu0 }
 0x5ad   : > { %v2726_v20 = vpop.f32.mrb[101].mxu0  ;;  %v2735_v25 = vadd.f32 %v4392_v36, %v5718_v53  ;;  %v4557_v36 = vld [vmem:[#allocation8 + $0x30] ss:$8 sps:$4 sm:$0xff]  }
 0x5ae   : > { %v2727_v35 = vadd.f32 %v5718_v53, %v2726_v20  ;;  %v4393_v3 = vpop.f32.mrb[102].mxu0  ;;  %v4562_v20 = vld [vmem:[#allocation8 + $0x44] ss:$8 sps:$4 sm:$0xff]  }
 0x5af   : > { %v2729_v33 = vpop.f32.mrb[103].mxu0  ;;  %v2738_v17 = vadd.f32 %v4393_v3, %v5718_v53  ;;  %v5793_v18 = vadd.f32 %v4730_v22, %v2735_v25 }
 0x5b0   : > { %v2730_v7 = vadd.f32 %v5718_v53, %v2729_v33  ;;  %v5784_v9 = vadd.f32 %v4728_v24, %v2727_v35  ;;  %v4553_v53 = vld [vmem:[#allocation8 + $0x14] ss:$8 sps:$4 sm:$0xff]   ;;  %v4560_v35 = vld [vmem:[#allocation8 + $0x40] ss:$8 sps:$4 sm:$0xff]  }
 0x5b1   : > { %v5797_v61 = vadd.f32 %v4731_v56, %v2738_v17  ;;  %3098 = vmatprep.subr.bf16.mxu1 %v4553_v53  ;;  %v4565_v33 = vld [vmem:[#allocation8 + $0x54] ss:$8 sps:$4 sm:$0xff]  }
 0x5b2   : > { %2781 = vadd.xlane.f32.xlu0 %v5784_v9  ;;  %v5789_v1 = vadd.f32 %v4729_v21, %v2730_v7  ;;  %3099 = vmatpush1.bf16.msra.mxu1 %v4551_v8  ;;  %v4563_v7 = vld [vmem:[#allocation8 + $0x50] ss:$8 sps:$4 sm:$0xff]   ;;  %v4566_v8 = vld [vmem:[#allocation8 + $0x60] ss:$8 sps:$4 sm:$0xff]  }
 0x5b3   : > { %3100 = vmatprep.subr.bf16.mxu1 %v4556_v63  ;;  %v5882_v63 = vld [vmem:[#allocation10 + $0x48] sm:$0xff]  }
 0x5b4   : > { %2783 = vadd.xlane.f32.xlu1 %v5789_v1 }
 0x5b6   : > { %2785 = vadd.xlane.f32.xlu0 %v5793_v18  ;;  %3101 = vmatpush1.bf16.msra.mxu1 %v4554_v16  ;;  %v5891_v16 = vld [vmem:[#allocation10 + $0x10] sm:$0xff]  }
 0x5b7   : > { %3102 = vmatprep.subr.bf16.mxu1 %v4559_v19  ;;  %v5903_v19 = vld [vmem:[#allocation10 + $0x20] sm:$0xff]  }
 0x5b8   : > { %2787 = vadd.xlane.f32.xlu1 %v5797_v61 }
 0x5ba   : > { %3103 = vmatpush1.bf16.msra.mxu1 %v4557_v36  ;;  %v5906_v36 = vld [vmem:[#allocation10 + $0x68] sm:$0xff]  }
 0x5bb   : > { %3104 = vmatprep.subr.bf16.mxu1 %v4562_v20 }
 0x5be   : > { %3105 = vmatpush1.bf16.msra.mxu1 %v4560_v35 }
 0x5bf   : > { %3106 = vmatprep.subr.bf16.mxu1 %v4565_v33 }
 0x5c2   : > { %3107 = vmatpush1.bf16.msra.mxu1 %v4563_v7 }
 0x5c3   : > { %3108 = vmatprep.subr.bf16.mxu1 %v4568_v27 }
 0x5c6   : > { %3109 = vmatpush1.bf16.msra.mxu1 %v4566_v8 }
 0x60f   : > { %v2758_v59 = vpop.xlane.xlu0 %2757 }
 0x610   : > { %v2790_v47 = vmul.f32 0.0078125, %v2758_v59 }
 0x611   : > { %v2760_v34 = vpop.xlane.xlu1 %2759 }
 0x612   : > { %v5801_v44 = vsub.f32 %v5724_v60, %v2790_v47  ;;  %v2791_v32 = vmul.f32 0.0078125, %v2760_v34 }
 0x613   : > { %v2762_v39 = vpop.xlane.xlu0 %2761 }
 0x614   : > { %v5804_v48 = vsub.f32 %v5729_v29, %v2791_v32  ;;  %v2792_v14 = vmul.f32 0.0078125, %v2762_v39  ;;  %v2822_v31 = vmul.f32 %v5801_v44, %v5801_v44  ;;  %v4571_v32 = vld [vmem:[#allocation8 + $0x74] ss:$8 sps:$4 sm:$0xff]   ;;  %v4569_v39 = vld [vmem:[#allocation8 + $0x70] ss:$8 sps:$4 sm:$0xff]  }
 0x615   : > { %v2764_v23 = vpop.xlane.xlu1 %2763  ;;  %3110 = vmatprep.subr.bf16.mxu1 %v4571_v32 }
 0x616   : > { %v5809_v13 = vsub.f32 %v5733_v11, %v2792_v14  ;;  %v2793_v46 = vmul.f32 0.0078125, %v2764_v23  ;;  %2838 = vadd.xlane.f32.xlu0 %v2822_v31  ;;  %v2823_v42 = vmul.f32 %v5804_v48, %v5804_v48  ;;  %3111 = vmatpush1.bf16.msra.mxu1 %v4569_v39 }
 0x618   : > { %v5814_v60 = vsub.f32 %v5737_v4, %v2793_v46  ;;  %2840 = vadd.xlane.f32.xlu1 %v2823_v42  ;;  %v2824_v29 = vmul.f32 %v5809_v13, %v5809_v13 }
 0x61a   : > { %2842 = vadd.xlane.f32.xlu0 %v2824_v29  ;;  %v2825_v50 = vmul.f32 %v5814_v60, %v5814_v60 }
 0x61c   : > { %2844 = vadd.xlane.f32.xlu1 %v2825_v50 }
 0x61f   : > { %v2766_v12 = vpop.xlane.xlu0 %2765 }
 0x620   : > { %v2794_v11 = vmul.f32 0.0078125, %v2766_v12 }
 0x621   : > { %v2768_v52 = vpop.xlane.xlu1 %2767 }
 0x622   : > { %v5821_v28 = vsub.f32 %v5744_v40, %v2794_v11  ;;  %v2795_v58 = vmul.f32 0.0078125, %v2768_v52 }
 0x623   : > { %v2770_v26 = vpop.xlane.xlu0 %2769 }
 0x624   : > { %v5824_v4 = vsub.f32 %v5749_v15, %v2795_v58  ;;  %v2796_v5 = vmul.f32 0.0078125, %v2770_v26  ;;  %v2826_v62 = vmul.f32 %v5821_v28, %v5821_v28 }
 0x625   : > { %v2772_v6 = vpop.xlane.xlu1 %2771 }
 0x626   : > { %v5829_v38 = vsub.f32 %v5753_v10, %v2796_v5  ;;  %v2797_v45 = vmul.f32 0.0078125, %v2772_v6  ;;  %2846 = vadd.xlane.f32.xlu0 %v2826_v62  ;;  %v2827_v40 = vmul.f32 %v5824_v4, %v5824_v4  ;;  %v4572_v62 = vld [vmem:[#allocation10 + $0x40] sm:$0xff]   ;;  %v5888_v6 = vld [vmem:[#allocation10 + $0x50] sm:$0xff]  }
 0x627   : > { %4074 = vmatprep.subr.bf16.mxu0 %v4572_v62  ;;  %4394 = vmatprep.subr.bf16.mxu1 %v4572_v62 }
 0x628   : > { %v5834_v15 = vsub.f32 %v5757_v37, %v2797_v45  ;;  %2848 = vadd.xlane.f32.xlu1 %v2827_v40  ;;  %v2828_v54 = vmul.f32 %v5829_v38, %v5829_v38  ;;  %v5894_v45 = vld [vmem:[#allocation10 + $0x58] sm:$0xff]  }
 0x629   : > { %v5897_v40 = vld [vmem:[#allocation10 + $0x18] sm:$0xff]  }
 0x62a   : > { %2850 = vadd.xlane.f32.xlu0 %v2828_v54  ;;  %v2829_v10 = vmul.f32 %v5834_v15, %v5834_v15  ;;  %v5900_v54 = vld [vmem:[#allocation10 + $0x60] sm:$0xff]  }
 0x62c   : > { %2852 = vadd.xlane.f32.xlu1 %v2829_v10 }
 0x62f   : > { %v2774_v3 = vpop.xlane.xlu0 %2773 }
 0x630   : > { %v2798_v37 = vmul.f32 0.0078125, %v2774_v3 }
 0x631   : > { %v2776_v25 = vpop.xlane.xlu1 %2775 }
 0x632   : > { %v5841_v24 = vsub.f32 %v5764_v43, %v2798_v37  ;;  %v2799_v17 = vmul.f32 0.0078125, %v2776_v25 }
 0x633   : > { %v2778_v21 = vpop.xlane.xlu0 %2777 }
 0x634   : > { %v5844_v22 = vsub.f32 %v5769_v30, %v2799_v17  ;;  %v2800_v56 = vmul.f32 0.0078125, %v2778_v21  ;;  %v2830_v41 = vmul.f32 %v5841_v24, %v5841_v24 }
 0x635   : > { %v2780_v53 = vpop.xlane.xlu1 %2779 }
 0x636   : > { %v5849_v59 = vsub.f32 %v5773_v49, %v2800_v56  ;;  %v2801_v47 = vmul.f32 0.0078125, %v2780_v53  ;;  %2854 = vadd.xlane.f32.xlu0 %v2830_v41  ;;  %v2831_v43 = vmul.f32 %v5844_v22, %v5844_v22  ;;  %v5913_v53 = vld [vmem:[%s6379_s9] ss:$0 sm:$0xff] }
 0x638   : > { %v5854_v30 = vsub.f32 %v5777_v2, %v2801_v47  ;;  %2856 = vadd.xlane.f32.xlu1 %v2831_v43  ;;  %v2832_v34 = vmul.f32 %v5849_v59, %v5849_v59 }
 0x63a   : > { %2858 = vadd.xlane.f32.xlu0 %v2832_v34  ;;  %v2833_v49 = vmul.f32 %v5854_v30, %v5854_v30 }
 0x63c   : > { %2860 = vadd.xlane.f32.xlu1 %v2833_v49 }
 0x63f   : > { %v2782_v14 = vpop.xlane.xlu0 %2781 }
 0x640   : > { %v2802_v31 = vmul.f32 0.0078125, %v2782_v14 }
 0x641   : > { %v2784_v23 = vpop.xlane.xlu1 %2783 }
 0x642   : > { %v5861_v46 = vsub.f32 %v5784_v9, %v2802_v31  ;;  %v2803_v2 = vmul.f32 0.0078125, %v2784_v23 }
 0x643   : > { %v2786_v42 = vpop.xlane.xlu0 %2785 }
 0x644   : > { %v5864_v29 = vsub.f32 %v5789_v1, %v2803_v2  ;;  %v2804_v50 = vmul.f32 0.0078125, %v2786_v42  ;;  %v2834_v12 = vmul.f32 %v5861_v46, %v5861_v46  ;;  %v5921_v2 = vld [vmem:[%s6380_s10] ss:$0 sm:$0xff] }
 0x645   : > { %v2788_v11 = vpop.xlane.xlu1 %2787 }
 0x646   : > { %v5869_v52 = vsub.f32 %v5793_v18, %v2804_v50  ;;  %v2805_v58 = vmul.f32 0.0078125, %v2788_v11  ;;  %2862 = vadd.xlane.f32.xlu0 %v2834_v12  ;;  %v2835_v26 = vmul.f32 %v5864_v29, %v5864_v29  ;;  %v5880_v18 = vld [vmem:[#allocation10] sm:$0xff]  }
 0x647   : > { %4075 = vmatpush3.bf16.msra.mxu0 %v5880_v18 }
 0x648   : > { %v5874_v9 = vsub.f32 %v5797_v61, %v2805_v58  ;;  %2864 = vadd.xlane.f32.xlu1 %v2835_v26  ;;  %v2836_v1 = vmul.f32 %v5869_v52, %v5869_v52  ;;  %v5885_v61 = vld [vmem:[#allocation10 + $0x8] sm:$0xff]   ;;  %4076 = vmatprep.subr.bf16.mxu0 %v5882_v63 }
 0x64a   : > { %2866 = vadd.xlane.f32.xlu0 %v2836_v1  ;;  %v2837_v5 = vmul.f32 %v5874_v9, %v5874_v9 }
 0x64b   : > { %4077 = vmatpush3.bf16.msra.mxu0 %v5885_v61 }
 0x64c   : > { %2868 = vadd.xlane.f32.xlu1 %v2837_v5  ;;  %4078 = vmatprep.subr.bf16.mxu0 %v5888_v6 }
 0x64f   : > { %4079 = vmatpush3.bf16.msra.mxu0 %v5891_v16 }
 0x650   : > { %4080 = vmatprep.subr.bf16.mxu0 %v5894_v45 }
 0x653   : > { %4081 = vmatpush3.bf16.msra.mxu0 %v5897_v40 }
 0x654   : > { %4082 = vmatprep.subr.bf16.mxu0 %v5900_v54 }
 0x657   : > { %4083 = vmatpush3.bf16.msra.mxu0 %v5903_v19 }
 0x658   : > { %4084 = vmatprep.subr.bf16.mxu0 %v5906_v36 }
 0x6a3   : > { %v2839_v10 = vpop.xlane.xlu0 %2838 }
 0x6a4   : > { %v2870_v20 = vmul.f32 0.0078125, %v2839_v10 }
 0x6a5   : > { %v2841_v35 = vpop.xlane.xlu1 %2840 }
 0x6a6   : > { %v2886_v3 = vadd.f32 1e-05, %v2870_v20  ;;  %v2871_v37 = vmul.f32 0.0078125, %v2841_v35 }
 0x6a7   : > { %v2843_v33 = vpop.xlane.xlu0 %2842 }
 0x6a8   : > { %4652 = vrsqrt.f32 %v2886_v3  ;;  %v2887_v25 = vadd.f32 1e-05, %v2871_v37  ;;  %v2872_v7 = vmul.f32 0.0078125, %v2843_v33 }
 0x6a9   : > { %v2845_v17 = vpop.xlane.xlu1 %2844 }
 0x6aa   : > { %4654 = vrsqrt.f32 %v2887_v25  ;;  %v2888_v21 = vadd.f32 1e-05, %v2872_v7  ;;  %v2873_v56 = vmul.f32 0.0078125, %v2845_v17 }
 0x6ac   : > { %4656 = vrsqrt.f32 %v2888_v21  ;;  %v2889_v41 = vadd.f32 1e-05, %v2873_v56 }
 0x6ae   : > { %4658 = vrsqrt.f32 %v2889_v41 }
 0x6b2   : > { %v4653_v27 = vpop.eup %4652 }
 0x6b3   : > { %v2918_v8 = vmul.f32 %v4653_v27, %v5801_v44  ;;  %v2847_v47 = vpop.xlane.xlu0 %2846 }
 0x6b4   : > { %v4655_v43 = vpop.eup %4654  ;;  %v2874_v34 = vmul.f32 0.0078125, %v2847_v47 }
 0x6b5   : > { %v2919_v32 = vmul.f32 %v4655_v43, %v5804_v48  ;;  %v2849_v39 = vpop.xlane.xlu1 %2848  ;;  %v2941_v49 = vmul.f32 %v5913_v53, %v2918_v8 }
 0x6b6   : > { %v4657_v14 = vpop.eup %4656  ;;  %v2890_v31 = vadd.f32 1e-05, %v2874_v34  ;;  %v2875_v23 = vmul.f32 0.0078125, %v2849_v39 }
 0x6b7   : > { %v2851_v42 = vpop.xlane.xlu0 %2850  ;;  %v2942_v50 = vmul.f32 %v5913_v53, %v2919_v32  ;;  %v5925_v48 = vadd.f32 %v5921_v2, %v2941_v49  ;;  %v2920_v1 = vmul.f32 %v4657_v14, %v5809_v13 }
 0x6b8   : > { %v4659_v44 = vpop.eup %4658  ;;  %4660 = vrsqrt.f32 %v2890_v31  ;;  %v2891_v12 = vadd.f32 1e-05, %v2875_v23  ;;  %v2876_v11 = vmul.f32 0.0078125, %v2851_v42 }
 0x6b9   : > { %v2853_v58 = vpop.xlane.xlu1 %2852  ;;  %v5928_v26 = vadd.f32 %v5921_v2, %v2942_v50  ;;  %v2921_v5 = vmul.f32 %v4659_v44, %v5814_v60  ;;  %v2943_v37 = vmul.f32 %v5913_v53, %v2920_v1 }
 0x6ba   : > { %4662 = vrsqrt.f32 %v2891_v12  ;;  %v2892_v62 = vadd.f32 1e-05, %v2876_v11  ;;  %v2877_v10 = vmul.f32 0.0078125, %v2853_v58 }
 0x6bb   : > { %v2980_v20 = vpack.c.bf16 %v5928_v26, %v5925_v48  ;;  %v2944_v35 = vmul.f32 %v5913_v53, %v2921_v5  ;;  %v5943_v60 = vadd.f32 %v5921_v2, %v2943_v37 }
 0x6bc   : > { %4664 = vrsqrt.f32 %v2892_v62  ;;  %v2893_v3 = vadd.f32 1e-05, %v2877_v10 }
 0x6bd   : > { %3129 = vmatmul.mubr.bf16.vlgmr.msra.gmra.mrb[88].mxu1 %v2980_v20  ;;  %v5939_v13 = vadd.f32 %v5921_v2, %v2944_v35 }
 0x6be   : > { %4666 = vrsqrt.f32 %v2893_v3  ;;  %3138 = vmatprep.mubr.bf16.mxu1 %v4961_v0  ;;  %4402 = vmatpush3.bf16.msra.mxu1 %v5880_v18 }
 0x6bf   : > { %4395 = vmatprep.subr.bf16.mxu1 %v5882_v63  ;;  %v2981_v7 = vpack.c.bf16 %v5939_v13, %v5943_v60 }
 0x6c2   : > { %v4661_v33 = vpop.eup %4660  ;;  %4403 = vmatpush3.bf16.msra.mxu1 %v5885_v61 }
 0x6c3   : > { %v2855_v25 = vpop.xlane.xlu0 %2854  ;;  %v2922_v17 = vmul.f32 %v4661_v33, %v5821_v28  ;;  %4396 = vmatprep.subr.bf16.mxu1 %v5888_v6 }
 0x6c4   : > { %v4663_v18 = vpop.eup %4662  ;;  %v2878_v21 = vmul.f32 0.0078125, %v2855_v25 }
 0x6c5   : > { %v2857_v56 = vpop.xlane.xlu1 %2856  ;;  %3139 = vmatmul.mubr.bf16.gmra.mrb[92].mxu1 %v2981_v7  ;;  %v2923_v63 = vmul.f32 %v4663_v18, %v5824_v4  ;;  %v2945_v41 = vmul.f32 %v5913_v53, %v2922_v17 }
 0x6c6   : > { %v4665_v27 = vpop.eup %4664  ;;  %v2894_v8 = vadd.f32 1e-05, %v2878_v21  ;;  %v2879_v47 = vmul.f32 0.0078125, %v2857_v56  ;;  %3148 = vmatprep.mubr.bf16.mxu1 %v4961_v0  ;;  %4404 = vmatpush3.bf16.msra.mxu1 %v5891_v16 }
 0x6c7   : > { %v2859_v61 = vpop.xlane.xlu0 %2858  ;;  %v2946_v28 = vmul.f32 %v5913_v53, %v2923_v63  ;;  %4397 = vmatprep.subr.bf16.mxu1 %v5894_v45  ;;  %v5957_v4 = vadd.f32 %v5921_v2, %v2945_v41  ;;  %v2924_v49 = vmul.f32 %v4665_v27, %v5829_v38 }
 0x6c8   : > { %v4667_v6 = vpop.eup %4666  ;;  %4668 = vrsqrt.f32 %v2894_v8  ;;  %v2895_v43 = vadd.f32 1e-05, %v2879_v47  ;;  %v2880_v34 = vmul.f32 0.0078125, %v2859_v61 }
 0x6c9   : > { %v2861_v32 = vpop.xlane.xlu1 %2860  ;;  %v5960_v39 = vadd.f32 %v5921_v2, %v2946_v28  ;;  %v2925_v16 = vmul.f32 %v4667_v6, %v5834_v15  ;;  %v2947_v50 = vmul.f32 %v5913_v53, %v2924_v49 }
 0x6ca   : > { %4670 = vrsqrt.f32 %v2895_v43  ;;  %v2896_v14 = vadd.f32 1e-05, %v2880_v34  ;;  %v2881_v31 = vmul.f32 0.0078125, %v2861_v32  ;;  %4405 = vmatpush3.bf16.msra.mxu1 %v5897_v40 }
 0x6cb   : > { %v2982_v45 = vpack.c.bf16 %v5960_v39, %v5957_v4  ;;  %v2948_v23 = vmul.f32 %v5913_v53, %v2925_v16  ;;  %4398 = vmatprep.subr.bf16.mxu1 %v5900_v54  ;;  %v5977_v15 = vadd.f32 %v5921_v2, %v2947_v50 }
 0x6cc   : > { %4672 = vrsqrt.f32 %v2896_v14  ;;  %v2897_v42 = vadd.f32 1e-05, %v2881_v31 }
 0x6cd   : > { %3149 = vmatmul.mubr.bf16.gmra.mrb[96].mxu1 %v2982_v45  ;;  %v5973_v38 = vadd.f32 %v5921_v2, %v2948_v23 }
 0x6ce   : > { %4674 = vrsqrt.f32 %v2897_v42  ;;  %3158 = vmatprep.mubr.bf16.mxu1 %v4961_v0  ;;  %4406 = vmatpush3.bf16.msra.mxu1 %v5903_v19 }
 0x6cf   : > { %4399 = vmatprep.subr.bf16.mxu1 %v5906_v36  ;;  %v2983_v44 = vpack.c.bf16 %v5973_v38, %v5977_v15 }
 0x6d2   : > { %v4669_v40 = vpop.eup %4668 }
 0x6d3   : > { %v2863_v54 = vpop.xlane.xlu0 %2862  ;;  %v2926_v12 = vmul.f32 %v4669_v40, %v5841_v24  ;;  %v4584_v40 = vld [vmem:[#allocation10 + $0x70] sm:$0xff]  }
 0x6d4   : > { %v4671_v11 = vpop.eup %4670  ;;  %v2882_v58 = vmul.f32 0.0078125, %v2863_v54  ;;  %v4585_v54 = vld [vmem:[#allocation10 + $0x30] sm:$0xff]  }
 0x6d5   : > { %v2865_v1 = vpop.xlane.xlu1 %2864  ;;  %3159 = vmatmul.mubr.bf16.gmra.mrb[100].mxu1 %v2983_v44  ;;  %v2927_v19 = vmul.f32 %v4671_v11, %v5844_v22  ;;  %v2949_v5 = vmul.f32 %v5913_v53, %v2926_v12 }
 0x6d6   : > { %v4673_v62 = vpop.eup %4672  ;;  %v2898_v36 = vadd.f32 1e-05, %v2882_v58  ;;  %v2883_v10 = vmul.f32 0.0078125, %v2865_v1  ;;  %3168 = vmatprep.mubr.bf16.mxu1 %v4961_v0 }
 0x6d7   : > { %v2867_v20 = vpop.xlane.xlu0 %2866  ;;  %v2950_v35 = vmul.f32 %v5913_v53, %v2927_v19  ;;  %v5987_v25 = vadd.f32 %v5921_v2, %v2949_v5  ;;  %v2928_v7 = vmul.f32 %v4673_v62, %v5849_v59 }
 0x6d8   : > { %v4675_v3 = vpop.eup %4674  ;;  %4676 = vrsqrt.f32 %v2898_v36  ;;  %v2899_v37 = vadd.f32 1e-05, %v2883_v10  ;;  %v2884_v24 = vmul.f32 0.0078125, %v2867_v20 }
 0x6d9   : > { %v2869_v33 = vpop.xlane.xlu1 %2868  ;;  %v5990_v22 = vadd.f32 %v5921_v2, %v2950_v35  ;;  %v2929_v17 = vmul.f32 %v4675_v3, %v5854_v30  ;;  %v2951_v27 = vmul.f32 %v5913_v53, %v2928_v7 }
 0x6da   : > { %4678 = vrsqrt.f32 %v2899_v37  ;;  %v2900_v18 = vadd.f32 1e-05, %v2884_v24  ;;  %v2885_v21 = vmul.f32 0.0078125, %v2869_v33 }
 0x6db   : > { %v2984_v56 = vpack.c.bf16 %v5990_v22, %v5987_v25  ;;  %v2952_v63 = vmul.f32 %v5913_v53, %v2929_v17  ;;  %v6003_v30 = vadd.f32 %v5921_v2, %v2951_v27 }
 0x6dc   : > { %4680 = vrsqrt.f32 %v2900_v18  ;;  %v2901_v41 = vadd.f32 1e-05, %v2885_v21 }
 0x6dd   : > { %3169 = vmatmul.mubr.bf16.gmra.mrb[104].mxu1 %v2984_v56  ;;  %v6000_v59 = vadd.f32 %v5921_v2, %v2952_v63 }
 0x6de   : > { %4682 = vrsqrt.f32 %v2901_v41  ;;  %3178 = vmatprep.mubr.bf16.mxu1 %v4961_v0 }
 0x6df   : > { %v2985_v47 = vpack.c.bf16 %v6000_v59, %v6003_v30 }
 0x6e2   : > { %v4677_v8 = vpop.eup %4676 }
 0x6e3   : > { %v2930_v61 = vmul.f32 %v4677_v8, %v5861_v46 }
 0x6e4   : > { %v4679_v28 = vpop.eup %4678 }
 0x6e5   : > { %3179 = vmatmul.mubr.bf16.gmra.mrb[108].mxu1 %v2985_v47  ;;  %v2931_v6 = vmul.f32 %v4679_v28, %v5864_v29  ;;  %v2953_v43 = vmul.f32 %v5913_v53, %v2930_v61 }
 0x6e6   : > { %v4681_v34 = vpop.eup %4680  ;;  %3188 = vmatprep.mubr.bf16.mxu1 %v4961_v0 }
 0x6e7   : > { %v2954_v32 = vmul.f32 %v5913_v53, %v2931_v6  ;;  %v6013_v16 = vadd.f32 %v5921_v2, %v2953_v43  ;;  %v2932_v46 = vmul.f32 %v4681_v34, %v5869_v52 }
 0x6e8   : > { %v4683_v49 = vpop.eup %4682 }
 0x6e9   : > { %v6016_v14 = vadd.f32 %v5921_v2, %v2954_v32  ;;  %v2933_v31 = vmul.f32 %v4683_v49, %v5874_v9  ;;  %v2955_v23 = vmul.f32 %v5913_v53, %v2932_v46  ;;  %v4583_v9 = vld [vmem:[#allocation10 + $0x28] sm:$0xff]  }
 0x6ea   : > { %4085 = vmatpush3.bf16.msra.mxu0 %v4583_v9  ;;  %4407 = vmatpush3.bf16.msra.mxu1 %v4583_v9 }
 0x6eb   : > { %v2986_v29 = vpack.c.bf16 %v6016_v14, %v6013_v16  ;;  %v2956_v45 = vmul.f32 %v5913_v53, %v2933_v31  ;;  %v6029_v50 = vadd.f32 %v5921_v2, %v2955_v23  ;;  %4086 = vmatprep.subr.bf16.mxu0 %v4584_v40  ;;  %4400 = vmatprep.subr.bf16.mxu1 %v4584_v40  ;;  %v4587_v53 = vld [vmem:[#allocation10 + $0x38] sm:$0xff]  }
 0x6ed   : > { %3189 = vmatmul.mubr.bf16.gmra.mrb[112].mxu1 %v2986_v29  ;;  %v6026_v42 = vadd.f32 %v5921_v2, %v2956_v45  ;;  %v3004_v2 = vld [vmem:[%s6376_s6] sm:$0x3] }
 0x6ee   : > { %3198 = vmatprep.mubr.bf16.mxu1 %v4961_v0  ;;  %4087 = vmatpush3.bf16.msra.mxu0 %v4585_v54  ;;  %v4586_v0 = vld [vmem:[#allocation10 + $0x78] sm:$0xff]   ;;  %v6038_v44 = vrot.slane %v3004_v2, %v580_v57  ;;  %v6042_v12 = vrot.slane %v3004_v2, %v584_v55 }
 0x6ef   : > { %v2987_v52 = vpack.c.bf16 %v6026_v42, %v6029_v50  ;;  %4408 = vmatpush3.bf16.msra.mxu1 %v4585_v54  ;;  %4088 = vmatprep.subr.bf16.mxu0 %v4586_v0 }
 0x6f0   : > { %4401 = vmatprep.subr.bf16.mxu1 %v4586_v0 }
 0x6f2   : > { %4089 = vmatpush3.bf16.msra.mxu0 %v4587_v53 }
 0x6f3   : > { %4409 = vmatpush3.bf16.msra.mxu1 %v4587_v53 }
 0x6f5   : > { %3199 = vmatmul.mubr.bf16.gmra.mrb[116].mxu1 %v2987_v52 }
 0x790   : > { %v3130_v11 = vpop.f32.mrb[88].mxu1 }
 0x791   : > { %v3131_v58 = vadd.f32 %v3130_v11, %v6038_v44  ;;  %v3132_v1 = vpop.f32.mrb[89].mxu1 }
 0x792   : > { %v3133_v19 = vadd.f32 %v3132_v1, %v6042_v12  ;;  %v3134_v5 = vpop.f32.mrb[90].mxu1 }
 0x793   : > { %v3135_v62 = vadd.f32 %v3134_v5, %v6038_v44  ;;  %v3136_v36 = vpop.f32.mrb[91].mxu1  ;;  %v3209_v20 = vmax.f32 %v3131_v58, 0.0 }
 0x794   : > { %v3137_v10 = vadd.f32 %v3136_v36, %v6042_v12  ;;  %v3210_v57 = vmax.f32 %v3133_v19, 0.0 }
 0x795   : > { %v3211_v35 = vmax.f32 %v3135_v62, 0.0 }
 0x796   : > { %v3212_v3 = vmax.f32 %v3137_v10, 0.0 }
 0x797   : > { %v3241_v37 = vpack.c.bf16 %v3211_v35, %v3209_v20 }
 0x798   : > { %v3242_v51 = vpack.c.bf16 %v3212_v3, %v3210_v57  ;;  %v3140_v55 = vpop.f32.mrb[92].mxu1 }
 0x799   : > { %v3141_v24 = vadd.f32 %v3140_v55, %v6038_v44  ;;  %v3142_v33 = vpop.f32.mrb[93].mxu1 }
 0x79a   : > { %v3143_v7 = vadd.f32 %v3142_v33, %v6042_v12  ;;  %v3144_v17 = vpop.f32.mrb[94].mxu1  ;;  %3424 = vmatprep.mubr.bf16.mxu0 %v3242_v51 }
 0x79b   : > { %v3145_v18 = vadd.f32 %v3144_v17, %v6038_v44  ;;  %v3146_v21 = vpop.f32.mrb[95].mxu1  ;;  %3425 = vmatmul.mubr.bf16.vlgmr.msra.gmra.mrb[104].mxu0 %v3241_v37  ;;  %v3213_v63 = vmax.f32 %v3141_v24, 0.0 }
 0x79c   : > { %v3147_v56 = vadd.f32 %v3146_v21, %v6042_v12  ;;  %v3214_v27 = vmax.f32 %v3143_v7, 0.0 }
 0x79d   : > { %v3215_v41 = vmax.f32 %v3145_v18, 0.0 }
 0x79e   : > { %v3216_v8 = vmax.f32 %v3147_v56, 0.0 }
 0x79f   : > { %v3243_v47 = vpack.c.bf16 %v3215_v41, %v3213_v63 }
 0x7a0   : > { %v3244_v61 = vpack.c.bf16 %v3216_v8, %v3214_v27  ;;  %v3150_v28 = vpop.f32.mrb[96].mxu1 }
 0x7a1   : > { %v3151_v6 = vadd.f32 %v3150_v28, %v6038_v44  ;;  %v3152_v43 = vpop.f32.mrb[97].mxu1 }
 0x7a2   : > { %v3153_v34 = vadd.f32 %v3152_v43, %v6042_v12  ;;  %v3154_v32 = vpop.f32.mrb[98].mxu1  ;;  %3432 = vmatprep.mubr.bf16.mxu0 %v3244_v61 }
 0x7a3   : > { %v3155_v49 = vadd.f32 %v3154_v32, %v6038_v44  ;;  %v3156_v46 = vpop.f32.mrb[99].mxu1  ;;  %3433 = vmatmul.mubr.bf16.gmra.mrb[108].mxu0 %v3243_v47  ;;  %v3217_v29 = vmax.f32 %v3151_v6, 0.0 }
 0x7a4   : > { %v3157_v31 = vadd.f32 %v3156_v46, %v6042_v12  ;;  %v3218_v23 = vmax.f32 %v3153_v34, 0.0 }
 0x7a5   : > { %v3219_v45 = vmax.f32 %v3155_v49, 0.0 }
 0x7a6   : > { %v3220_v52 = vmax.f32 %v3157_v31, 0.0 }
 0x7a7   : > { %v3245_v9 = vpack.c.bf16 %v3219_v45, %v3217_v29 }
 0x7a8   : > { %v3246_v40 = vpack.c.bf16 %v3220_v52, %v3218_v23  ;;  %v3160_v54 = vpop.f32.mrb[100].mxu1 }
 0x7a9   : > { %v3161_v0 = vadd.f32 %v3160_v54, %v6038_v44  ;;  %v3162_v53 = vpop.f32.mrb[101].mxu1 }
 0x7aa   : > { %v3163_v2 = vadd.f32 %v3162_v53, %v6042_v12  ;;  %v3164_v11 = vpop.f32.mrb[102].mxu1  ;;  %3440 = vmatprep.mubr.bf16.mxu0 %v3246_v40 }
 0x7ab   : > { %v3165_v58 = vadd.f32 %v3164_v11, %v6038_v44  ;;  %v3166_v1 = vpop.f32.mrb[103].mxu1  ;;  %3441 = vmatmul.mubr.bf16.gmra.mrb[112].mxu0 %v3245_v9  ;;  %v3221_v5 = vmax.f32 %v3161_v0, 0.0 }
 0x7ac   : > { %v3167_v19 = vadd.f32 %v3166_v1, %v6042_v12  ;;  %v3222_v36 = vmax.f32 %v3163_v2, 0.0 }
 0x7ad   : > { %v3223_v62 = vmax.f32 %v3165_v58, 0.0 }
 0x7ae   : > { %v3224_v10 = vmax.f32 %v3167_v19, 0.0 }
 0x7af   : > { %v3247_v20 = vpack.c.bf16 %v3223_v62, %v3221_v5 }
 0x7b0   : > { %v3248_v35 = vpack.c.bf16 %v3224_v10, %v3222_v36  ;;  %v3170_v57 = vpop.f32.mrb[104].mxu1 }
 0x7b1   : > { %v3171_v3 = vadd.f32 %v3170_v57, %v6038_v44  ;;  %v3172_v37 = vpop.f32.mrb[105].mxu1 }
 0x7b2   : > { %v3173_v51 = vadd.f32 %v3172_v37, %v6042_v12  ;;  %v3174_v55 = vpop.f32.mrb[106].mxu1  ;;  %3448 = vmatprep.mubr.bf16.mxu0 %v3248_v35 }
 0x7b3   : > { %v3175_v24 = vadd.f32 %v3174_v55, %v6038_v44  ;;  %v3176_v33 = vpop.f32.mrb[107].mxu1  ;;  %3449 = vmatmul.mubr.bf16.gmra.mrb[116].mxu0 %v3247_v20  ;;  %v3225_v17 = vmax.f32 %v3171_v3, 0.0 }
 0x7b4   : > { %v3177_v7 = vadd.f32 %v3176_v33, %v6042_v12  ;;  %v3226_v21 = vmax.f32 %v3173_v51, 0.0 }
 0x7b5   : > { %v3227_v18 = vmax.f32 %v3175_v24, 0.0 }
 0x7b6   : > { %v3228_v56 = vmax.f32 %v3177_v7, 0.0 }
 0x7b7   : > { %v3249_v63 = vpack.c.bf16 %v3227_v18, %v3225_v17 }
 0x7b8   : > { %v3250_v41 = vpack.c.bf16 %v3228_v56, %v3226_v21  ;;  %v3180_v27 = vpop.f32.mrb[108].mxu1  ;;  %v6079_v56 = vld [vmem:[%s6416_s25] ss:$0 sm:$0xff]  ;;  %s4874_s25 = scalar_lea.vmem %s6323_s18, 2048 }
 0x7b9   : > { %v3181_v8 = vadd.f32 %v3180_v27, %v6038_v44  ;;  %v3182_v47 = vpop.f32.mrb[109].mxu1  ;;  %p4875_p3 = scmp.ne.s32.totalorder %s6323_s18, %s4874_s25 }
 0x7ba   : > { %v3183_v61 = vadd.f32 %v3182_v47, %v6042_v12  ;;  %v3184_v28 = vpop.f32.mrb[110].mxu1  ;;  %3456 = vmatprep.mubr.bf16.mxu0 %v3250_v41 }
 0x7bb   : > { %v3185_v6 = vadd.f32 %v3184_v28, %v6038_v44  ;;  %v3186_v43 = vpop.f32.mrb[111].mxu1  ;;  %3457 = vmatmul.mubr.bf16.gmra.mrb[120].mxu0 %v3249_v63  ;;  %v3229_v32 = vmax.f32 %v3181_v8, 0.0  ;;  %p4876_p5 = pnand %p4875_p3, %p5196_p10 }
 0x7bc   : > { %v3187_v34 = vadd.f32 %v3186_v43, %v6042_v12  ;;  %v3230_v46 = vmax.f32 %v3183_v61, 0.0 }
 0x7bd   : > { %v3231_v49 = vmax.f32 %v3185_v6, 0.0  ;;  %p4877_p7 = pneg %p4876_p5 }
 0x7be   : > { %v3232_v31 = vmax.f32 %v3187_v34, 0.0 }
 0x7bf   : > { %v3251_v29 = vpack.c.bf16 %v3231_v49, %v3229_v32 }
 0x7c0   : > { %v3252_v45 = vpack.c.bf16 %v3232_v31, %v3230_v46  ;;  %v3190_v23 = vpop.f32.mrb[112].mxu1 }
 0x7c1   : > { %v3191_v52 = vadd.f32 %v3190_v23, %v6038_v44  ;;  %v3192_v9 = vpop.f32.mrb[113].mxu1 }
 0x7c2   : > { %v3193_v40 = vadd.f32 %v3192_v9, %v6042_v12  ;;  %v3194_v54 = vpop.f32.mrb[114].mxu1  ;;  %3464 = vmatprep.mubr.bf16.mxu0 %v3252_v45 }
 0x7c3   : > { %v3195_v0 = vadd.f32 %v3194_v54, %v6038_v44  ;;  %v3196_v53 = vpop.f32.mrb[115].mxu1  ;;  %3465 = vmatmul.mubr.bf16.gmra.mrb[124].mxu0 %v3251_v29  ;;  %v3233_v11 = vmax.f32 %v3191_v52, 0.0 }
 0x7c4   : > { %v3197_v2 = vadd.f32 %v3196_v53, %v6042_v12  ;;  %v3234_v1 = vmax.f32 %v3193_v40, 0.0 }
 0x7c5   : > { %v3235_v58 = vmax.f32 %v3195_v0, 0.0 }
 0x7c6   : > { %v3236_v19 = vmax.f32 %v3197_v2, 0.0 }
 0x7c7   : > { %v3253_v5 = vpack.c.bf16 %v3235_v58, %v3233_v11 }
 0x7c8   : > { %v3254_v62 = vpack.c.bf16 %v3236_v19, %v3234_v1  ;;  %v3200_v36 = vpop.f32.mrb[116].mxu1 }
 0x7c9   : > { %v3201_v10 = vadd.f32 %v3200_v36, %v6038_v44  ;;  %v3202_v20 = vpop.f32.mrb[117].mxu1 }
 0x7ca   : > { %v3203_v35 = vadd.f32 %v3202_v20, %v6042_v12  ;;  %v3204_v57 = vpop.f32.mrb[118].mxu1  ;;  %3472 = vmatprep.mubr.bf16.mxu1 %v3254_v62 }
 0x7cb   : > { %v3205_v3 = vadd.f32 %v3204_v57, %v6038_v44  ;;  %v3206_v37 = vpop.f32.mrb[119].mxu1  ;;  %3473 = vmatmul.mubr.bf16.vlgmr.msra.gmra.mrb[120].mxu1 %v3253_v5  ;;  %v3237_v55 = vmax.f32 %v3201_v10, 0.0 }
 0x7cc   : > { %v3207_v51 = vadd.f32 %v3206_v37, %v6042_v12  ;;  %v3238_v33 = vmax.f32 %v3203_v35, 0.0 }
 0x7cd   : > { %v3239_v24 = vmax.f32 %v3205_v3, 0.0 }
 0x7ce   : > { %v3240_v7 = vmax.f32 %v3207_v51, 0.0 }
 0x7cf   : > { %v3255_v17 = vpack.c.bf16 %v3239_v24, %v3237_v55 }
 0x7d0   : > { %v3256_v18 = vpack.c.bf16 %v3240_v7, %v3238_v33 }
 0x7d2   : > { %3480 = vmatprep.mubr.bf16.mxu1 %v3256_v18 }
 0x7d3   : > { %3481 = vmatmul.mubr.bf16.gmra.mrb[124].mxu1 %v3255_v17 }
 0x86e   : > { %v4090_v21 = vpop.f32.mrb[104].mxu0 }
 0x86f   : > { %v4091_v63 = vpop.f32.mrb[105].mxu0 }
 0x870   : > { %v4092_v44 = vadd.f32 %v4091_v63, %v4090_v21  ;;  %v4093_v41 = vpop.f32.mrb[106].mxu0 }
 0x871   : > { %v4094_v27 = vpop.f32.mrb[107].mxu0 }
 0x872   : > { %v3427_v12 = vadd.f32 %v4092_v44, %v6079_v56  ;;  %v4095_v8 = vadd.f32 %v4094_v27, %v4093_v41 }
 0x874   : > { %v3430_v47 = vadd.f32 %v4095_v8, %v6079_v56  ;;  %v6084_v61 = vadd.f32 %v3427_v12, %v5925_v48 }
 0x876   : > { %v4096_v28 = vpop.f32.mrb[108].mxu0  ;;  %3505 = vadd.xlane.f32.xlu0 %v6084_v61  ;;  %v6088_v6 = vadd.f32 %v3430_v47, %v5928_v26 }
 0x877   : > { %v4097_v43 = vpop.f32.mrb[109].mxu0 }
 0x878   : > { %v4098_v34 = vadd.f32 %v4097_v43, %v4096_v28  ;;  %v4099_v32 = vpop.f32.mrb[110].mxu0  ;;  %3507 = vadd.xlane.f32.xlu1 %v6088_v6 }
 0x879   : > { %v4100_v49 = vpop.f32.mrb[111].mxu0 }
 0x87a   : > { %v3435_v46 = vadd.f32 %v4098_v34, %v6079_v56  ;;  %v4101_v31 = vadd.f32 %v4100_v49, %v4099_v32 }
 0x87c   : > { %v3438_v29 = vadd.f32 %v4101_v31, %v6079_v56  ;;  %v6094_v48 = vadd.f32 %v3435_v46, %v5943_v60 }
 0x87e   : > { %v4102_v45 = vpop.f32.mrb[112].mxu0  ;;  %3509 = vadd.xlane.f32.xlu0 %v6094_v48  ;;  %v6098_v26 = vadd.f32 %v3438_v29, %v5939_v13 }
 0x87f   : > { %v4103_v23 = vpop.f32.mrb[113].mxu0 }
 0x880   : > { %v4104_v52 = vadd.f32 %v4103_v23, %v4102_v45  ;;  %v4105_v9 = vpop.f32.mrb[114].mxu0  ;;  %3511 = vadd.xlane.f32.xlu1 %v6098_v26 }
 0x881   : > { %v4106_v40 = vpop.f32.mrb[115].mxu0 }
 0x882   : > { %v3443_v54 = vadd.f32 %v4104_v52, %v6079_v56  ;;  %v4107_v0 = vadd.f32 %v4106_v40, %v4105_v9 }
 0x884   : > { %v3446_v53 = vadd.f32 %v4107_v0, %v6079_v56  ;;  %v6104_v60 = vadd.f32 %v3443_v54, %v5957_v4 }
 0x886   : > { %v4108_v2 = vpop.f32.mrb[116].mxu0  ;;  %3513 = vadd.xlane.f32.xlu0 %v6104_v60  ;;  %v6108_v13 = vadd.f32 %v3446_v53, %v5960_v39 }
 0x887   : > { %v4109_v11 = vpop.f32.mrb[117].mxu0 }
 0x888   : > { %v4110_v58 = vadd.f32 %v4109_v11, %v4108_v2  ;;  %v4111_v1 = vpop.f32.mrb[118].mxu0  ;;  %3515 = vadd.xlane.f32.xlu1 %v6108_v13 }
 0x889   : > { %v4112_v19 = vpop.f32.mrb[119].mxu0 }
 0x88a   : > { %v3451_v5 = vadd.f32 %v4110_v58, %v6079_v56  ;;  %v4113_v62 = vadd.f32 %v4112_v19, %v4111_v1 }
 0x88c   : > { %v3454_v36 = vadd.f32 %v4113_v62, %v6079_v56  ;;  %v6114_v4 = vadd.f32 %v3451_v5, %v5977_v15 }
 0x88e   : > { %v4114_v10 = vpop.f32.mrb[120].mxu0  ;;  %3517 = vadd.xlane.f32.xlu0 %v6114_v4  ;;  %v6118_v39 = vadd.f32 %v3454_v36, %v5973_v38 }
 0x88f   : > { %v4115_v20 = vpop.f32.mrb[121].mxu0 }
 0x890   : > { %v4116_v35 = vadd.f32 %v4115_v20, %v4114_v10  ;;  %v4117_v57 = vpop.f32.mrb[122].mxu0  ;;  %3519 = vadd.xlane.f32.xlu1 %v6118_v39 }
 0x891   : > { %v4118_v3 = vpop.f32.mrb[123].mxu0 }
 0x892   : > { %v3459_v37 = vadd.f32 %v4116_v35, %v6079_v56  ;;  %v4119_v51 = vadd.f32 %v4118_v3, %v4117_v57 }
 0x894   : > { %v3462_v55 = vadd.f32 %v4119_v51, %v6079_v56  ;;  %v6124_v15 = vadd.f32 %v3459_v37, %v5987_v25 }
 0x896   : > { %v4120_v24 = vpop.f32.mrb[124].mxu0  ;;  %3521 = vadd.xlane.f32.xlu0 %v6124_v15  ;;  %v6128_v38 = vadd.f32 %v3462_v55, %v5990_v22 }
 0x897   : > { %v4121_v33 = vpop.f32.mrb[125].mxu0 }
 0x898   : > { %v4122_v7 = vadd.f32 %v4121_v33, %v4120_v24  ;;  %v4123_v17 = vpop.f32.mrb[126].mxu0  ;;  %3523 = vadd.xlane.f32.xlu1 %v6128_v38 }
 0x899   : > { %v4124_v18 = vpop.f32.mrb[127].mxu0 }
 0x89a   : > { %v3467_v21 = vadd.f32 %v4122_v7, %v6079_v56  ;;  %v4125_v63 = vadd.f32 %v4124_v18, %v4123_v17 }
 0x89c   : > { %v3470_v44 = vadd.f32 %v4125_v63, %v6079_v56  ;;  %v6134_v25 = vadd.f32 %v3467_v21, %v6003_v30 }
 0x89e   : > { %v4126_v41 = vpop.f32.mrb[120].mxu1  ;;  %3525 = vadd.xlane.f32.xlu0 %v6134_v25  ;;  %v6138_v22 = vadd.f32 %v3470_v44, %v6000_v59 }
 0x89f   : > { %v4127_v27 = vpop.f32.mrb[121].mxu1 }
 0x8a0   : > { %v4128_v12 = vadd.f32 %v4127_v27, %v4126_v41  ;;  %v4129_v8 = vpop.f32.mrb[122].mxu1  ;;  %3527 = vadd.xlane.f32.xlu1 %v6138_v22 }
 0x8a1   : > { %v4130_v47 = vpop.f32.mrb[123].mxu1 }
 0x8a2   : > { %v3475_v28 = vadd.f32 %v4128_v12, %v6079_v56  ;;  %v4131_v43 = vadd.f32 %v4130_v47, %v4129_v8 }
 0x8a4   : > { %v3478_v34 = vadd.f32 %v4131_v43, %v6079_v56  ;;  %v6144_v30 = vadd.f32 %v3475_v28, %v6013_v16 }
 0x8a6   : > { %v4132_v32 = vpop.f32.mrb[124].mxu1  ;;  %3529 = vadd.xlane.f32.xlu0 %v6144_v30  ;;  %v6148_v59 = vadd.f32 %v3478_v34, %v6016_v14 }
 0x8a7   : > { %v4133_v49 = vpop.f32.mrb[125].mxu1 }
 0x8a8   : > { %v4134_v46 = vadd.f32 %v4133_v49, %v4132_v32  ;;  %v4135_v31 = vpop.f32.mrb[126].mxu1  ;;  %3531 = vadd.xlane.f32.xlu1 %v6148_v59 }
 0x8a9   : > { %v4136_v29 = vpop.f32.mrb[127].mxu1 }
 0x8aa   : > { %v3483_v45 = vadd.f32 %v4134_v46, %v6079_v56  ;;  %v4137_v23 = vadd.f32 %v4136_v29, %v4135_v31 }
 0x8ac   : > { %v3486_v52 = vadd.f32 %v4137_v23, %v6079_v56  ;;  %v6154_v16 = vadd.f32 %v3483_v45, %v6029_v50 }
 0x8ae   : > { %3533 = vadd.xlane.f32.xlu0 %v6154_v16  ;;  %v6158_v9 = vadd.f32 %v3486_v52, %v6026_v42 }
 0x8b0   : > { %3535 = vadd.xlane.f32.xlu1 %v6158_v9 }
 0x903   : > { %v3506_v14 = vpop.xlane.xlu0 %3505 }
 0x904   : > { %v3537_v40 = vmul.f32 0.0078125, %v3506_v14 }
 0x905   : > { %v3508_v54 = vpop.xlane.xlu1 %3507 }
 0x906   : > { %v6162_v0 = vsub.f32 %v6084_v61, %v3537_v40  ;;  %v3538_v53 = vmul.f32 0.0078125, %v3508_v54 }
 0x908   : > { %v6165_v2 = vsub.f32 %v6088_v6, %v3538_v53  ;;  %v3569_v50 = vmul.f32 %v6162_v0, %v6162_v0 }
 0x90a   : > { %3585 = vadd.xlane.f32.xlu0 %v3569_v50  ;;  %v3570_v42 = vmul.f32 %v6165_v2, %v6165_v2 }
 0x90b   : > { %v3510_v56 = vpop.xlane.xlu0 %3509 }
 0x90c   : > { %v3539_v11 = vmul.f32 0.0078125, %v3510_v56  ;;  %3587 = vadd.xlane.f32.xlu1 %v3570_v42 }
 0x90d   : > { %v3512_v58 = vpop.xlane.xlu1 %3511 }
 0x90e   : > { %v6172_v1 = vsub.f32 %v6094_v48, %v3539_v11  ;;  %v3540_v61 = vmul.f32 0.0078125, %v3512_v58 }
 0x910   : > { %v6175_v19 = vsub.f32 %v6098_v26, %v3540_v61  ;;  %v3571_v6 = vmul.f32 %v6172_v1, %v6172_v1 }
 0x912   : > { %3589 = vadd.xlane.f32.xlu0 %v3571_v6  ;;  %v3572_v5 = vmul.f32 %v6175_v19, %v6175_v19 }
 0x913   : > { %v3514_v62 = vpop.xlane.xlu0 %3513 }
 0x914   : > { %v3541_v36 = vmul.f32 0.0078125, %v3514_v62  ;;  %3591 = vadd.xlane.f32.xlu1 %v3572_v5 }
 0x915   : > { %v3516_v10 = vpop.xlane.xlu1 %3515 }
 0x916   : > { %v6182_v20 = vsub.f32 %v6104_v60, %v3541_v36  ;;  %v3542_v48 = vmul.f32 0.0078125, %v3516_v10  ;;  %v6244_v36 = vld [vmem:[%s6417_s22] ss:$0 sm:$0xff]  ;;  %s4880_s22 = scalar_lea.vmem %s4879_s16, 4096 }
 0x917   : > { %p4882_p2 = scmp.lt.s32.totalorder %s4880_s22, %s4874_s25 }
 0x918   : > { %v6185_v35 = vsub.f32 %v6108_v13, %v3542_v48  ;;  %v3573_v26 = vmul.f32 %v6182_v20, %v6182_v20 }
 0x919   : > { %p4883_p1 = por %p4882_p2, %p4881_p12 }
 0x91a   : > { %3593 = vadd.xlane.f32.xlu0 %v3573_v26  ;;  %v3574_v57 = vmul.f32 %v6185_v35, %v6185_v35 }
 0x91b   : > { %v3518_v3 = vpop.xlane.xlu0 %3517  ;;  %p4884_p13 = pnand %p4883_p1, %p4877_p7 }
 0x91c   : > { %v3543_v37 = vmul.f32 0.0078125, %v3518_v3  ;;  %3595 = vadd.xlane.f32.xlu1 %v3574_v57  ;;  %v6250_v57 = vld [vmem:[%s6418_s17] ss:$0 sm:$0xff] }
 0x91d   : > { %v3520_v51 = vpop.xlane.xlu1 %3519 }
 0x91e   : > { %v6192_v55 = vsub.f32 %v6114_v4, %v3543_v37  ;;  %v3544_v60 = vmul.f32 0.0078125, %v3520_v51 }
 0x920   : > { %v6195_v24 = vsub.f32 %v6118_v39, %v3544_v60  ;;  %v3575_v13 = vmul.f32 %v6192_v55, %v6192_v55 }
 0x922   : > { %3597 = vadd.xlane.f32.xlu0 %v3575_v13  ;;  %v3576_v33 = vmul.f32 %v6195_v24, %v6195_v24 }
 0x923   : > { %v3522_v7 = vpop.xlane.xlu0 %3521 }
 0x924   : > { %v3545_v17 = vmul.f32 0.0078125, %v3522_v7  ;;  %3599 = vadd.xlane.f32.xlu1 %v3576_v33 }
 0x925   : > { %v3524_v18 = vpop.xlane.xlu1 %3523 }
 0x926   : > { %v6202_v21 = vsub.f32 %v6124_v15, %v3545_v17  ;;  %v3546_v4 = vmul.f32 0.0078125, %v3524_v18 }
 0x928   : > { %v6205_v63 = vsub.f32 %v6128_v38, %v3546_v4  ;;  %v3577_v39 = vmul.f32 %v6202_v21, %v6202_v21 }
 0x92a   : > { %3601 = vadd.xlane.f32.xlu0 %v3577_v39  ;;  %v3578_v44 = vmul.f32 %v6205_v63, %v6205_v63 }
 0x92b   : > { %v3526_v41 = vpop.xlane.xlu0 %3525 }
 0x92c   : > { %v3547_v27 = vmul.f32 0.0078125, %v3526_v41  ;;  %3603 = vadd.xlane.f32.xlu1 %v3578_v44 }
 0x92d   : > { %v3528_v12 = vpop.xlane.xlu1 %3527 }
 0x92e   : > { %v6212_v8 = vsub.f32 %v6134_v25, %v3547_v27  ;;  %v3548_v15 = vmul.f32 0.0078125, %v3528_v12 }
 0x930   : > { %v6215_v47 = vsub.f32 %v6138_v22, %v3548_v15  ;;  %v3579_v38 = vmul.f32 %v6212_v8, %v6212_v8 }
 0x932   : > { %3605 = vadd.xlane.f32.xlu0 %v3579_v38  ;;  %v3580_v28 = vmul.f32 %v6215_v47, %v6215_v47 }
 0x933   : > { %v3530_v43 = vpop.xlane.xlu0 %3529 }
 0x934   : > { %v3549_v34 = vmul.f32 0.0078125, %v3530_v43  ;;  %3607 = vadd.xlane.f32.xlu1 %v3580_v28 }
 0x935   : > { %v3532_v32 = vpop.xlane.xlu1 %3531 }
 0x936   : > { %v6222_v49 = vsub.f32 %v6144_v30, %v3549_v34  ;;  %v3550_v25 = vmul.f32 0.0078125, %v3532_v32 }
 0x938   : > { %v6225_v46 = vsub.f32 %v6148_v59, %v3550_v25  ;;  %v3581_v22 = vmul.f32 %v6222_v49, %v6222_v49 }
 0x93a   : > { %3609 = vadd.xlane.f32.xlu0 %v3581_v22  ;;  %v3582_v31 = vmul.f32 %v6225_v46, %v6225_v46 }
 0x93b   : > { %v3534_v29 = vpop.xlane.xlu0 %3533 }
 0x93c   : > { %v3551_v45 = vmul.f32 0.0078125, %v3534_v29  ;;  %3611 = vadd.xlane.f32.xlu1 %v3582_v31 }
 0x93d   : > { %v3536_v23 = vpop.xlane.xlu1 %3535 }
 0x93e   : > { %v6232_v52 = vsub.f32 %v6154_v16, %v3551_v45  ;;  %v3552_v30 = vmul.f32 0.0078125, %v3536_v23 }
 0x940   : > { %v6235_v14 = vsub.f32 %v6158_v9, %v3552_v30  ;;  %v3583_v59 = vmul.f32 %v6232_v52, %v6232_v52 }
 0x942   : > { %3613 = vadd.xlane.f32.xlu0 %v3583_v59  ;;  %v3584_v40 = vmul.f32 %v6235_v14, %v6235_v14 }
 0x944   : > { %3615 = vadd.xlane.f32.xlu1 %v3584_v40 }
 0x997   : > { %v3586_v54 = vpop.xlane.xlu0 %3585 }
 0x998   : > { %v3617_v53 = vmul.f32 0.0078125, %v3586_v54 }
 0x999   : > { %v3588_v50 = vpop.xlane.xlu1 %3587 }
 0x99a   : > { %v3633_v42 = vadd.f32 1e-05, %v3617_v53  ;;  %v3618_v56 = vmul.f32 0.0078125, %v3588_v50 }
 0x99c   : > { %4684 = vrsqrt.f32 %v3633_v42  ;;  %v3634_v16 = vadd.f32 1e-05, %v3618_v56 }
 0x99e   : > { %4686 = vrsqrt.f32 %v3634_v16 }
 0x99f   : > { %v3590_v11 = vpop.xlane.xlu0 %3589 }
 0x9a0   : > { %v3619_v58 = vmul.f32 0.0078125, %v3590_v11 }
 0x9a1   : > { %v3592_v9 = vpop.xlane.xlu1 %3591 }
 0x9a2   : > { %v3635_v61 = vadd.f32 1e-05, %v3619_v58  ;;  %v3620_v6 = vmul.f32 0.0078125, %v3592_v9 }
 0x9a4   : > { %4688 = vrsqrt.f32 %v3635_v61  ;;  %v3636_v5 = vadd.f32 1e-05, %v3620_v6 }
 0x9a6   : > { %v4685_v62 = vpop.eup %4684  ;;  %4690 = vrsqrt.f32 %v3636_v5 }
 0x9a7   : > { %v3665_v10 = vmul.f32 %v4685_v62, %v6162_v0  ;;  %v3594_v48 = vpop.xlane.xlu0 %3593 }
 0x9a8   : > { %v4687_v26 = vpop.eup %4686  ;;  %v3621_v3 = vmul.f32 0.0078125, %v3594_v48 }
 0x9a9   : > { %v3688_v37 = vmul.f32 %v6244_v36, %v3665_v10  ;;  %v3666_v51 = vmul.f32 %v4687_v26, %v6165_v2  ;;  %v3596_v60 = vpop.xlane.xlu1 %3595 }
 0x9aa   : > { %v3637_v13 = vadd.f32 1e-05, %v3621_v3  ;;  %v3622_v33 = vmul.f32 0.0078125, %v3596_v60 }
 0x9ab   : > { %v3711_v7 = vadd.f32 %v6250_v57, %v3688_v37  ;;  %v3689_v17 = vmul.f32 %v6244_v36, %v3666_v51 }
 0x9ac   : > { %4692 = vrsqrt.f32 %v3637_v13  ;;  %v3638_v0 = vadd.f32 1e-05, %v3622_v33 }
 0x9ad   : > { %3727 = vst [vmem:[%s6258_s30] sm:$0xff] %v3711_v7  ;;  %v3712_v18 = vadd.f32 %v6250_v57, %v3689_v17 }
 0x9ae   : > { %v4689_v4 = vpop.eup %4688  ;;  %4694 = vrsqrt.f32 %v3638_v0 }
 0x9af   : > { %3728 = vst [vmem:[%s6258_s30 + $0x8] sm:$0xff] %v3712_v18  ;;  %v3667_v2 = vmul.f32 %v4689_v4, %v6172_v1  ;;  %v3598_v39 = vpop.xlane.xlu0 %3597 }
 0x9b0   : > { %v4691_v44 = vpop.eup %4690  ;;  %v3623_v41 = vmul.f32 0.0078125, %v3598_v39 }
 0x9b1   : > { %v3690_v27 = vmul.f32 %v6244_v36, %v3667_v2  ;;  %v3668_v12 = vmul.f32 %v4691_v44, %v6175_v19  ;;  %v3600_v15 = vpop.xlane.xlu1 %3599 }
 0x9b2   : > { %v3639_v38 = vadd.f32 1e-05, %v3623_v41  ;;  %v3624_v28 = vmul.f32 0.0078125, %v3600_v15 }
 0x9b3   : > { %v3713_v43 = vadd.f32 %v6250_v57, %v3690_v27  ;;  %v3691_v34 = vmul.f32 %v6244_v36, %v3668_v12 }
 0x9b4   : > { %4696 = vrsqrt.f32 %v3639_v38  ;;  %v3640_v32 = vadd.f32 1e-05, %v3624_v28 }
 0x9b5   : > { %3729 = vst [vmem:[%s6258_s30 + $0x10] sm:$0xff] %v3713_v43  ;;  %v3714_v1 = vadd.f32 %v6250_v57, %v3691_v34 }
 0x9b6   : > { %v4693_v25 = vpop.eup %4692  ;;  %4698 = vrsqrt.f32 %v3640_v32 }
 0x9b7   : > { %3730 = vst [vmem:[%s6258_s30 + $0x18] sm:$0xff] %v3714_v1  ;;  %v3669_v22 = vmul.f32 %v4693_v25, %v6182_v20  ;;  %v3602_v31 = vpop.xlane.xlu0 %3601 }
 0x9b8   : > { %v4695_v19 = vpop.eup %4694  ;;  %v3625_v29 = vmul.f32 0.0078125, %v3602_v31 }
 0x9b9   : > { %v3692_v45 = vmul.f32 %v6244_v36, %v3669_v22  ;;  %v3670_v23 = vmul.f32 %v4695_v19, %v6185_v35  ;;  %v3604_v30 = vpop.xlane.xlu1 %3603 }
 0x9ba   : > { %v3641_v59 = vadd.f32 1e-05, %v3625_v29  ;;  %v3626_v40 = vmul.f32 0.0078125, %v3604_v30 }
 0x9bb   : > { %v3715_v54 = vadd.f32 %v6250_v57, %v3692_v45  ;;  %v3693_v53 = vmul.f32 %v6244_v36, %v3670_v23 }
 0x9bc   : > { %4700 = vrsqrt.f32 %v3641_v59  ;;  %v3642_v50 = vadd.f32 1e-05, %v3626_v40 }
 0x9bd   : > { %3731 = vst [vmem:[%s6258_s30 + $0x20] sm:$0xff] %v3715_v54  ;;  %v3716_v20 = vadd.f32 %v6250_v57, %v3693_v53 }
 0x9be   : > { %v4697_v42 = vpop.eup %4696  ;;  %4702 = vrsqrt.f32 %v3642_v50 }
 0x9bf   : > { %3732 = vst [vmem:[%s6258_s30 + $0x28] sm:$0xff] %v3716_v20  ;;  %v3671_v56 = vmul.f32 %v4697_v42, %v6192_v55  ;;  %v3606_v16 = vpop.xlane.xlu0 %3605 }
 0x9c0   : > { %v4699_v35 = vpop.eup %4698  ;;  %v3627_v11 = vmul.f32 0.0078125, %v3606_v16 }
 0x9c1   : > { %v3694_v58 = vmul.f32 %v6244_v36, %v3671_v56  ;;  %v3672_v9 = vmul.f32 %v4699_v35, %v6195_v24  ;;  %v3608_v61 = vpop.xlane.xlu1 %3607 }
 0x9c2   : > { %v3643_v6 = vadd.f32 1e-05, %v3627_v11  ;;  %v3628_v5 = vmul.f32 0.0078125, %v3608_v61 }
 0x9c3   : > { %v3717_v62 = vadd.f32 %v6250_v57, %v3694_v58  ;;  %v3695_v10 = vmul.f32 %v6244_v36, %v3672_v9 }
 0x9c4   : > { %4704 = vrsqrt.f32 %v3643_v6  ;;  %v3644_v48 = vadd.f32 1e-05, %v3628_v5 }
 0x9c5   : > { %3733 = vst [vmem:[%s6258_s30 + $0x30] sm:$0xff] %v3717_v62  ;;  %v3718_v55 = vadd.f32 %v6250_v57, %v3695_v10 }
 0x9c6   : > { %v4701_v26 = vpop.eup %4700  ;;  %4706 = vrsqrt.f32 %v3644_v48 }
 0x9c7   : > { %3734 = vst [vmem:[%s6258_s30 + $0x38] sm:$0xff] %v3718_v55  ;;  %v3673_v3 = vmul.f32 %v4701_v26, %v6202_v21  ;;  %v3610_v37 = vpop.xlane.xlu0 %3609 }
 0x9c8   : > { %v4703_v24 = vpop.eup %4702  ;;  %v3629_v51 = vmul.f32 0.0078125, %v3610_v37 }
 0x9c9   : > { %v3696_v60 = vmul.f32 %v6244_v36, %v3673_v3  ;;  %v3674_v13 = vmul.f32 %v4703_v24, %v6205_v63  ;;  %v3612_v33 = vpop.xlane.xlu1 %3611 }
 0x9ca   : > { %v3645_v7 = vadd.f32 1e-05, %v3629_v51  ;;  %v3630_v17 = vmul.f32 0.0078125, %v3612_v33 }
 0x9cb   : > { %v3719_v0 = vadd.f32 %v6250_v57, %v3696_v60  ;;  %v3697_v18 = vmul.f32 %v6244_v36, %v3674_v13 }
 0x9cc   : > { %4708 = vrsqrt.f32 %v3645_v7  ;;  %v3646_v4 = vadd.f32 1e-05, %v3630_v17 }
 0x9cd   : > { %3735 = vst [vmem:[%s6258_s30 + $0x40] sm:$0xff] %v3719_v0  ;;  %v3720_v21 = vadd.f32 %v6250_v57, %v3697_v18 }
 0x9ce   : > { %v4705_v2 = vpop.eup %4704  ;;  %4710 = vrsqrt.f32 %v3646_v4 }
 0x9cf   : > { %3736 = vst [vmem:[%s6258_s30 + $0x48] sm:$0xff] %v3720_v21  ;;  %v3675_v39 = vmul.f32 %v4705_v2, %v6212_v8  ;;  %v3614_v44 = vpop.xlane.xlu0 %3613 }
 0x9d0   : > { %v4707_v63 = vpop.eup %4706  ;;  %v3631_v41 = vmul.f32 0.0078125, %v3614_v44 }
 0x9d1   : > { %v3698_v27 = vmul.f32 %v6244_v36, %v3675_v39  ;;  %v3676_v12 = vmul.f32 %v4707_v63, %v6215_v47  ;;  %v3616_v15 = vpop.xlane.xlu1 %3615 }
 0x9d2   : > { %v3647_v38 = vadd.f32 1e-05, %v3631_v41  ;;  %v3632_v28 = vmul.f32 0.0078125, %v3616_v15 }
 0x9d3   : > { %v3721_v43 = vadd.f32 %v6250_v57, %v3698_v27  ;;  %v3699_v34 = vmul.f32 %v6244_v36, %v3676_v12 }
 0x9d4   : > { %4712 = vrsqrt.f32 %v3647_v38  ;;  %v3648_v32 = vadd.f32 1e-05, %v3632_v28 }
 0x9d5   : > { %3737 = vst [vmem:[%s6258_s30 + $0x50] sm:$0xff] %v3721_v43  ;;  %v3722_v8 = vadd.f32 %v6250_v57, %v3699_v34 }
 0x9d6   : > { %v4709_v1 = vpop.eup %4708  ;;  %4714 = vrsqrt.f32 %v3648_v32 }
 0x9d7   : > { %3738 = vst [vmem:[%s6258_s30 + $0x58] sm:$0xff] %v3722_v8  ;;  %v3677_v47 = vmul.f32 %v4709_v1, %v6222_v49 }
 0x9d8   : > { %v4711_v25 = vpop.eup %4710 }
 0x9d9   : > { %v3700_v22 = vmul.f32 %v6244_v36, %v3677_v47  ;;  %v3678_v31 = vmul.f32 %v4711_v25, %v6225_v46 }
 0x9db   : > { %v3723_v19 = vadd.f32 %v6250_v57, %v3700_v22  ;;  %v3701_v29 = vmul.f32 %v6244_v36, %v3678_v31 }
 0x9dd   : > { %3739 = vst [vmem:[%s6258_s30 + $0x60] sm:$0xff] %v3723_v19  ;;  %v3724_v45 = vadd.f32 %v6250_v57, %v3701_v29 }
 0x9de   : > { %v4713_v23 = vpop.eup %4712 }
 0x9df   : > { %3740 = vst [vmem:[%s6258_s30 + $0x68] sm:$0xff] %v3724_v45  ;;  %v3679_v30 = vmul.f32 %v4713_v23, %v6232_v52 }
 0x9e0   : > { %v4715_v49 = vpop.eup %4714 }
 0x9e1   : > { %v3702_v59 = vmul.f32 %v6244_v36, %v3679_v30  ;;  %v3680_v46 = vmul.f32 %v4715_v49, %v6235_v14 }
 0x9e3   : > { %v3725_v40 = vadd.f32 %v6250_v57, %v3702_v59  ;;  %v3703_v54 = vmul.f32 %v6244_v36, %v3680_v46 }
 0x9e5   : > { %3741 = vst [vmem:[%s6258_s30 + $0x70] sm:$0xff] %v3725_v40  ;;  %v3726_v52 = vadd.f32 %v6250_v57, %v3703_v54 }
 0x9e7   : > { %3742 = vst [vmem:[%s6258_s30 + $0x78] sm:$0xff] %v3726_v52 }
 0x9e8   : > { %4887 = shalt.err (!%p4884_p13)
}
 0x9e9   : > { %s4888_s21 = scalar_lea.hbm %s6321_s13, 2048  ;;  %s4892_s30 = scalar_lea.hbm %s6419_s19, 4096 }
 0x9ea   : > { %p4889_p9 = scmp.ne.s32.totalorder %s6321_s13, %s4888_s21  ;;  %p4893_p4 = scmp.lt.u32.totalorder %s6321_s13, %s6419_s19 }
 0x9eb   : > { %p4894_p8 = scmp.lt.u32.totalorder %s4892_s30, %s4888_s21  ;;  %p4896_p3 = scmp.lt.u32.totalorder %s4888_s21, %s6321_s13 }
 0x9ec   : > { %p4890_p0 = pnand %p4889_p9, %p5196_p10 }
 0x9ed   : > { %p4895_p6 = por %p4894_p8, %p4893_p4 }
 0x9ee   : > { %p4891_p11 = pneg %p4890_p0 }
 0x9ef   : > { %p4897_p5 = por %p4896_p3, %p4895_p6 }
 0x9f1   : > { %p4898_p7 = pnand %p4897_p5, %p4891_p11 }
 0x9f3   : > { %4901 = shalt.err (!%p4898_p7)
}
 0x9f4   : > { %s4965_s23 = smov 128   ;;  %s4966_s25 = smov 8  }
 0x9f5   : > { %4428 = dma.vmem_to_hbm [thread:$0]  (%p5196_p10), %s6323_s18, 2048, %s6321_s13, %s3744_s29, %s4965_s23, %s4965_s23, %s4966_s25  }
 0x9f6 PF: > { %s6420_s14 = sld [smem:[#allocation16_spill]]  ;;  %s6421_s16 = sld [smem:[#allocation17_spill]] }
 0x9f7   : > { %p6423_p2 = scmp.ge.s32.totalorder %s4948_s28, 2 }
 0x9fc   : > { %s3772_s22 = sand.u32 1, %s6420_s14   ;;  %p6422_p12 = scmp.ne.s32.totalorder %s6421_s16, 0 }
 0x9fd   : > { %s3773_s21 = scalar_lea.sflag [#allocation4], %s3772_s22 }
 0x9fe   : > { %p4448_p1 = pnand %p6423_p2, %p6422_p12 }
 0xa00   : > { %4931 = dma.done.wait (!%p4448_p1), %s3773_s21, 2048  }
 0xa01   : > { %4933 = vsyncadd (!%p4448_p1), %s3773_s21, 4294965248  ;;  %p28_p13 = scmp.ge.s32.totalorder %s5186_s15, 4   ;;  %s6424_s25 = smov %s4940_s26 }
 0xa02   : > { %s6425_s26 = smov %s4944_s27  ;;  %s6426_s27 = smov %s5202_s24 }
 0xa03   : > { %s6427_s28 = smov %s5186_s15  ;;  %30 = sbr.rel (!%p28_p13) target bundleno = 13 (0xd), region = 133 }
 0xa0a   :  { %3778 = vsyncpa [#allocation3], 1 }
 0xa0b   :  { %3780 = vsyncpa [#allocation3 + $0x1], 1 }
 0xa0c   :  { %3781 = vsyncpa [#allocation6], 1 }
 0xa0d   :  { %3782 = vsyncpa [#allocation9], 1 }
 0xa0e   :  { %3783 = vsyncpa [#allocation4], 1 }
 0xa0f   :  { %3785 = vsyncpa [#allocation4 + $0x1], 1 }

</bundles_post_ra>
